<compile_context>
chip_gen: v7x
topology: tpu7x:2x2x1
jax: 0.10.0
libtpu: 0.0.40
codegen_flags: <defaults>
</compile_context>

<pallas_src>
import jax
import jax.numpy as jnp
import numpy as np
from jax.experimental import pallas as pl
from jax.experimental.pallas import tpu as pltpu


# ---------------------------------------------------------------------------
# Pallas kernel 1: fused 3x3 conv (pad=1) + bias + ReLU + 2x2 stride-2 max-pool
# ---------------------------------------------------------------------------
def _conv_relu_pool_kernel(x_ref, w_ref, b_ref, o_ref):
    """
    x_ref: (4, M, 4*Cin)     bf16 -- 4 space-to-depth "shift groups", M = Ho*Wo pooled rows
    w_ref: (16, 4*Cin, Cout) bf16 -- index = pool_offset*4 + shift_group (taps pre-scattered)
    b_ref: (1, Cout)         f32
    o_ref: (M, Cout)         bf16 -- pooled + biased + ReLU'd output (NHWC-flat per image)
    """
    xg = [x_ref[g] for g in range(4)]
    pooled = None
    for po in range(4):                      # 2x2 pool-window offsets (dh, dw)
        acc = None
        for g in range(4):                   # space-to-depth shift groups (r1, s1)
            p = jnp.dot(xg[g], w_ref[po * 4 + g],
                        preferred_element_type=jnp.float32)
            acc = p if acc is None else acc + p
        pooled = acc if pooled is None else jnp.maximum(pooled, acc)
    # max-pool commutes with (+bias, ReLU) (both monotone), so they are applied once, post-pool.
    o_ref[...] = jnp.maximum(pooled + b_ref[...], 0.0).astype(o_ref.dtype)


def conv3x3_relu_pool(xg, w16, bias, *, cout):
    """xg: (N, 4, M, 4*Cin) bf16 -> (N, M, cout) bf16.  One image per grid step, parallel grid."""
    n, _, m, k4 = xg.shape
    return pl.pallas_call(
        _conv_relu_pool_kernel,
        out_shape=jax.ShapeDtypeStruct((n, m, cout), jnp.bfloat16),
        grid=(n,),
        in_specs=[
            pl.BlockSpec((None, 4, m, k4), lambda i: (i, 0, 0, 0)),
            pl.BlockSpec((16, k4, cout), lambda i: (0, 0, 0)),
            pl.BlockSpec((1, cout), lambda i: (0, 0)),
        ],
        out_specs=pl.BlockSpec((None, m, cout), lambda i: (i, 0, 0)),
        compiler_params=pltpu.CompilerParams(dimension_semantics=("parallel",)),
    )(xg, w16, bias)


# ---------------------------------------------------------------------------
# Pallas kernel 2: fused fc1+ReLU -> fc2+ReLU -> fc3 -> softmax
# ---------------------------------------------------------------------------
def _fc_stack_kernel(x_ref, w1_ref, b1_ref, w2_ref, b2_ref, w3_ref, b3_ref, o_ref):
    h = jnp.dot(x_ref[...], w1_ref[...], preferred_element_type=jnp.float32)
    h = jnp.maximum(h + b1_ref[...], 0.0)          # dropout1: identity in eval mode
    h = jnp.dot(h.astype(jnp.bfloat16), w2_ref[...], preferred_element_type=jnp.float32)
    h = jnp.maximum(h + b2_ref[...], 0.0)          # dropout2: identity in eval mode
    z = jnp.dot(h.astype(jnp.bfloat16), w3_ref[...], preferred_element_type=jnp.float32)
    z = z + b3_ref[...]
    z = z - jnp.max(z, axis=-1, keepdims=True)
    e = jnp.exp(z)
    inv = pl.reciprocal(jnp.sum(e, axis=-1, keepdims=True), approx=True)
    o_ref[...] = (e * inv).astype(o_ref.dtype)


def fc_stack(x, p):
    n, d = x.shape
    tm = n if n <= 256 else 256                    # row tile; weights stay resident in VMEM
    return pl.pallas_call(
        _fc_stack_kernel,
        out_shape=jax.ShapeDtypeStruct((n, 10), jnp.float32),
        grid=(pl.cdiv(n, tm),),
        in_specs=[
            pl.BlockSpec((tm, d), lambda i: (i, 0)),
            pl.BlockSpec((d, 128), lambda i: (0, 0)),
            pl.BlockSpec((1, 128), lambda i: (0, 0)),
            pl.BlockSpec((128, 64), lambda i: (0, 0)),
            pl.BlockSpec((1, 64), lambda i: (0, 0)),
            pl.BlockSpec((64, 10), lambda i: (0, 0)),
            pl.BlockSpec((1, 10), lambda i: (0, 0)),
        ],
        out_specs=pl.BlockSpec((tm, 10), lambda i: (i, 0)),
        compiler_params=pltpu.CompilerParams(dimension_semantics=("parallel",)),
    )(x, p["w_fc1"], p["b_fc1"], p["w_fc2"], p["b_fc2"], p["w_fc3"], p["b_fc3"])


# ---------------------------------------------------------------------------
# Layout glue (plain JAX, runs fused under jit): space-to-depth shift groups
# ---------------------------------------------------------------------------
def _conv_pool_inputs(x_nhwc):
    """(N, H, W, C) NHWC activation -> (N, 4, (H//2)*(W//2), 4*C).

    pad=1 each spatial side, space-to-depth(2) with depth order (dr, dc, c), then the four
    (row, col) shift groups consumed by the fused conv+pool kernel.
    """
    n, h, w, c = x_nhwc.shape
    ho, wo, hs, ws = h // 2, w // 2, (h + 2) // 2, (w + 2) // 2
    xp = jnp.pad(x_nhwc, ((0, 0), (1, 1), (1, 1), (0, 0)))
    xs2d = xp.reshape(n, hs, 2, ws, 2, c).transpose(0, 1, 3, 2, 4, 5)
    xs2d = xs2d.reshape(n, hs, ws, 4 * c)
    groups = [xs2d[:, r1:r1 + ho, s1:s1 + wo, :].reshape(n, ho * wo, 4 * c)
              for r1 in range(2) for s1 in range(2)]
    return jnp.stack(groups, axis=1)               # (N, 4, Ho*Wo, 4*C)


# ---------------------------------------------------------------------------
# Parameters: PyTorch layout -> kernel-ready layout (done ONCE)
# ---------------------------------------------------------------------------
def _prep_conv_weight(w_torch, dtype=jnp.bfloat16):
    """(Cout, Cin, 3, 3) torch conv weight -> (16, 4*Cin, Cout):
    index = (pool dh*2+dw)*4 + (shift r1*2+s1); rows ordered ((r0*2+s0), cin)."""
    w = np.asarray(w_torch, np.float32)
    cout, cin, kh_n, kw_n = w.shape
    out = np.zeros((4, 4, 4 * cin, cout), np.float32)
    for dh in range(2):
        for dw in range(2):
            for r1 in range(2):
                for s1 in range(2):
                    for r0 in range(2):
                        for s0 in range(2):
                            kh = 2 * r1 + r0 - dh
                            kw = 2 * s1 + s0 - dw
                            if 0 <= kh < kh_n and 0 <= kw < kw_n:
                                q = r0 * 2 + s0
                                out[dh * 2 + dw, r1 * 2 + s1,
                                    q * cin:(q + 1) * cin, :] = w[:, :, kh, kw].T
    return jnp.asarray(out.reshape(16, 4 * cin, cout), dtype)


def init_params(key):
    """Parameters in the original PyTorch layouts."""
    ks = jax.random.split(key, 10)
    s = 0.05
    return {
        "w_conv1": s * jax.random.normal(ks[0], (32, 1, 3, 3), jnp.float32),
        "b_conv1": s * jax.random.normal(ks[1], (32,), jnp.float32),
        "w_conv2": s * jax.random.normal(ks[2], (64, 32, 3, 3), jnp.float32),
        "b_conv2": s * jax.random.normal(ks[3], (64,), jnp.float32),
        "w_fc1": s * jax.random.normal(ks[4], (128, 7 * 7 * 64), jnp.float32),
        "b_fc1": s * jax.random.normal(ks[5], (128,), jnp.float32),
        "w_fc2": s * jax.random.normal(ks[6], (64, 128), jnp.float32),
        "b_fc2": s * jax.random.normal(ks[7], (64,), jnp.float32),
        "w_fc3": s * jax.random.normal(ks[8], (10, 64), jnp.float32),
        "b_fc3": s * jax.random.normal(ks[9], (10,), jnp.float32),
    }


def prepare_params(tp):
    """One-time layout transform: bf16 matmul weights, pre-transposed / pre-permuted."""
    # fc1 columns permuted from torch's NCHW-flatten order (c*49+h*7+w) to our NHWC-flat
    # order ((h*7+w)*64+c), then transposed to (in, out).
    w_fc1 = np.asarray(tp["w_fc1"], np.float32)
    w_fc1 = w_fc1.reshape(128, 64, 7, 7).transpose(0, 2, 3, 1).reshape(128, 7 * 7 * 64).T
    return {
        "w_conv1": _prep_conv_weight(tp["w_conv1"]),
        "b_conv1": jnp.asarray(tp["b_conv1"], jnp.float32).reshape(1, -1),
        "w_conv2": _prep_conv_weight(tp["w_conv2"]),
        "b_conv2": jnp.asarray(tp["b_conv2"], jnp.float32).reshape(1, -1),
        "w_fc1": jnp.asarray(w_fc1, jnp.bfloat16),
        "b_fc1": jnp.asarray(tp["b_fc1"], jnp.float32).reshape(1, -1),
        "w_fc2": jnp.asarray(np.asarray(tp["w_fc2"], np.float32).T, jnp.bfloat16),
        "b_fc2": jnp.asarray(tp["b_fc2"], jnp.float32).reshape(1, -1),
        "w_fc3": jnp.asarray(np.asarray(tp["w_fc3"], np.float32).T, jnp.bfloat16),
        "b_fc3": jnp.asarray(tp["b_fc3"], jnp.float32).reshape(1, -1),
    }


# ---------------------------------------------------------------------------
# Forward pass (jitted): NCHW input, same semantics as the PyTorch module (eval mode)
# ---------------------------------------------------------------------------
@jax.jit
def forward(params, x):
    """x: (N, 1, 28, 28) float32 NCHW -> (N, 10) softmax probabilities (float32)."""
    n = x.shape[0]
    x_nhwc = jnp.transpose(x, (0, 2, 3, 1)).astype(jnp.bfloat16)

    g1 = _conv_pool_inputs(x_nhwc)                                    # (N, 4, 196, 4)
    y1 = conv3x3_relu_pool(g1, params["w_conv1"], params["b_conv1"], cout=32)   # (N,196,32)

    g2 = _conv_pool_inputs(y1.reshape(n, 14, 14, 32))                 # (N, 4, 49, 128)
    y2 = conv3x3_relu_pool(g2, params["w_conv2"], params["b_conv2"], cout=64)   # (N,49,64)

    flat = y2.reshape(n, 7 * 7 * 64)      # NHWC-flat; fc1 weight columns pre-permuted to match
    return fc_stack(flat, params)         # (N, 10)


# ---------------------------------------------------------------------------
# Pure-JAX float32 reference (mirrors the PyTorch module exactly), for checking
# ---------------------------------------------------------------------------
def reference_forward(tp, x):
    def conv2d(v, w, b):
        y = jax.lax.conv_general_dilated(
            v, w, window_strides=(1, 1), padding=((1, 1), (1, 1)),
            dimension_numbers=("NCHW", "OIHW", "NCHW"))
        return y + b[None, :, None, None]

    def maxpool2(v):
        return jax.lax.reduce_window(v, -jnp.inf, jax.lax.max,
                                     (1, 1, 2, 2), (1, 1, 2, 2), "VALID")

    h = maxpool2(jax.nn.relu(conv2d(x, tp["w_conv1"], tp["b_conv1"])))
    h = maxpool2(jax.nn.relu(conv2d(h, tp["w_conv2"], tp["b_conv2"])))
    h = h.reshape(h.shape[0], -1)
    h = jax.nn.relu(h @ tp["w_fc1"].T + tp["b_fc1"])
    h = jax.nn.relu(h @ tp["w_fc2"].T + tp["b_fc2"])
    z = h @ tp["w_fc3"].T + tp["b_fc3"]
    return jax.nn.softmax(z, axis=1)


if __name__ == "__main__":
    key = jax.random.PRNGKey(0)
    k_param, k_x = jax.random.split(key)

    torch_params = init_params(k_param)          # PyTorch-layout f32 params
    params = prepare_params(torch_params)        # kernel-ready (bf16, pre-permuted)

    # Input must be 28x28 so 7*7*64 matches fc1; small batch for the demo.
    x = jax.random.normal(k_x, (2, 1, 28, 28), jnp.float32)

    out = jax.block_until_ready(forward(params, x))
    ref = jax.block_until_ready(reference_forward(torch_params, x))

    assert out.shape == (2, 10)
    assert bool(jnp.allclose(jnp.sum(out, axis=1), 1.0, atol=1e-2))       # softmax rows sum to 1
    assert float(jnp.max(jnp.abs(out - ref.astype(jnp.float32)))) < 5e-2  # matches f32 reference
    print("KERNEL_OK")
</pallas_src>

<mosaic_0001>
module attributes {stable_mosaic.version = 11 : i64} {
  func.func @_conv_relu_pool_kernel(%arg0: i32, %arg1: memref<1x4x196x4xbf16, #tpu.memory_space<vmem>>, %arg2: memref<16x4x32xbf16, #tpu.memory_space<vmem>>, %arg3: memref<1x32xf32, #tpu.memory_space<vmem>>, %arg4: memref<1x196x32xbf16, #tpu.memory_space<vmem>>) attributes {dimension_semantics = [#tpu.dimension_semantics<parallel>], iteration_bounds = array<i64: 2>, scalar_prefetch = 0 : i64, scratch_operands = 0 : i64, tpu.core_type = #tpu.core_type<tc>, window_params = [{transform_indices = @transform_0, window_bounds = array<i64: 1, 4, 196, 4>}, {pipeline_mode = #tpu.pipeline_mode<synchronous>, transform_indices = @transform_1, window_bounds = array<i64: 16, 4, 32>}, {pipeline_mode = #tpu.pipeline_mode<synchronous>, transform_indices = @transform_2, window_bounds = array<i64: 1, 32>}, {transform_indices = @transform_3, window_bounds = array<i64: 1, 196, 32>}]} {
    %c0 = arith.constant 0 : index
    %c0_0 = arith.constant 0 : index
    %c0_1 = arith.constant 0 : index
    %c0_2 = arith.constant 0 : index
    %0 = vector.load %arg1[%c0, %c0_0, %c0_1, %c0_2] : memref<1x4x196x4xbf16, #tpu.memory_space<vmem>>, vector<1x1x196x4xbf16>
    %1 = vector.shape_cast %0 : vector<1x1x196x4xbf16> to vector<196x4xbf16>
    %c0_3 = arith.constant 0 : index
    %c1 = arith.constant 1 : index
    %c0_4 = arith.constant 0 : index
    %c0_5 = arith.constant 0 : index
    %2 = vector.load %arg1[%c0_3, %c1, %c0_4, %c0_5] : memref<1x4x196x4xbf16, #tpu.memory_space<vmem>>, vector<1x1x196x4xbf16>
    %3 = vector.shape_cast %2 : vector<1x1x196x4xbf16> to vector<196x4xbf16>
    %c0_6 = arith.constant 0 : index
    %c2 = arith.constant 2 : index
    %c0_7 = arith.constant 0 : index
    %c0_8 = arith.constant 0 : index
    %4 = vector.load %arg1[%c0_6, %c2, %c0_7, %c0_8] : memref<1x4x196x4xbf16, #tpu.memory_space<vmem>>, vector<1x1x196x4xbf16>
    %5 = vector.shape_cast %4 : vector<1x1x196x4xbf16> to vector<196x4xbf16>
    %c0_9 = arith.constant 0 : index
    %c3 = arith.constant 3 : index
    %c0_10 = arith.constant 0 : index
    %c0_11 = arith.constant 0 : index
    %6 = vector.load %arg1[%c0_9, %c3, %c0_10, %c0_11] : memref<1x4x196x4xbf16, #tpu.memory_space<vmem>>, vector<1x1x196x4xbf16>
    %7 = vector.shape_cast %6 : vector<1x1x196x4xbf16> to vector<196x4xbf16>
    %c0_12 = arith.constant 0 : index
    %c0_13 = arith.constant 0 : index
    %c0_14 = arith.constant 0 : index
    %8 = vector.load %arg2[%c0_12, %c0_13, %c0_14] : memref<16x4x32xbf16, #tpu.memory_space<vmem>>, vector<1x4x32xbf16>
    %9 = vector.shape_cast %8 : vector<1x4x32xbf16> to vector<4x32xbf16>
    %cst = arith.constant dense<0.000000e+00> : vector<196x32xf32>
    %10 = tpu.matmul %1, %9, %cst {dimension_numbers = #tpu.dot_dimension_numbers<[1], [0], [0], [1], [0, 0, 1, 1], [], []>} : vector<196x4xbf16>, vector<4x32xbf16>, vector<196x32xf32> -> vector<196x32xf32>
    %c1_15 = arith.constant 1 : index
    %c0_16 = arith.constant 0 : index
    %c0_17 = arith.constant 0 : index
    %11 = vector.load %arg2[%c1_15, %c0_16, %c0_17] : memref<16x4x32xbf16, #tpu.memory_space<vmem>>, vector<1x4x32xbf16>
    %12 = vector.shape_cast %11 : vector<1x4x32xbf16> to vector<4x32xbf16>
    %cst_18 = arith.constant dense<0.000000e+00> : vector<196x32xf32>
    %13 = tpu.matmul %3, %12, %cst_18 {dimension_numbers = #tpu.dot_dimension_numbers<[1], [0], [0], [1], [0, 0, 1, 1], [], []>} : vector<196x4xbf16>, vector<4x32xbf16>, vector<196x32xf32> -> vector<196x32xf32>
    %14 = arith.addf %10, %13 : vector<196x32xf32>
    %c2_19 = arith.constant 2 : index
    %c0_20 = arith.constant 0 : index
    %c0_21 = arith.constant 0 : index
    %15 = vector.load %arg2[%c2_19, %c0_20, %c0_21] : memref<16x4x32xbf16, #tpu.memory_space<vmem>>, vector<1x4x32xbf16>
    %16 = vector.shape_cast %15 : vector<1x4x32xbf16> to vector<4x32xbf16>
    %cst_22 = arith.constant dense<0.000000e+00> : vector<196x32xf32>
    %17 = tpu.matmul %5, %16, %cst_22 {dimension_numbers = #tpu.dot_dimension_numbers<[1], [0], [0], [1], [0, 0, 1, 1], [], []>} : vector<196x4xbf16>, vector<4x32xbf16>, vector<196x32xf32> -> vector<196x32xf32>
    %18 = arith.addf %14, %17 : vector<196x32xf32>
    %c3_23 = arith.constant 3 : index
    %c0_24 = arith.constant 0 : index
    %c0_25 = arith.constant 0 : index
    %19 = vector.load %arg2[%c3_23, %c0_24, %c0_25] : memref<16x4x32xbf16, #tpu.memory_space<vmem>>, vector<1x4x32xbf16>
    %20 = vector.shape_cast %19 : vector<1x4x32xbf16> to vector<4x32xbf16>
    %cst_26 = arith.constant dense<0.000000e+00> : vector<196x32xf32>
    %21 = tpu.matmul %7, %20, %cst_26 {dimension_numbers = #tpu.dot_dimension_numbers<[1], [0], [0], [1], [0, 0, 1, 1], [], []>} : vector<196x4xbf16>, vector<4x32xbf16>, vector<196x32xf32> -> vector<196x32xf32>
    %22 = arith.addf %18, %21 : vector<196x32xf32>
    %c4 = arith.constant 4 : index
    %c0_27 = arith.constant 0 : index
    %c0_28 = arith.constant 0 : index
    %23 = vector.load %arg2[%c4, %c0_27, %c0_28] : memref<16x4x32xbf16, #tpu.memory_space<vmem>>, vector<1x4x32xbf16>
    %24 = vector.shape_cast %23 : vector<1x4x32xbf16> to vector<4x32xbf16>
    %cst_29 = arith.constant dense<0.000000e+00> : vector<196x32xf32>
    %25 = tpu.matmul %1, %24, %cst_29 {dimension_numbers = #tpu.dot_dimension_numbers<[1], [0], [0], [1], [0, 0, 1, 1], [], []>} : vector<196x4xbf16>, vector<4x32xbf16>, vector<196x32xf32> -> vector<196x32xf32>
    %c5 = arith.constant 5 : index
    %c0_30 = arith.constant 0 : index
    %c0_31 = arith.constant 0 : index
    %26 = vector.load %arg2[%c5, %c0_30, %c0_31] : memref<16x4x32xbf16, #tpu.memory_space<vmem>>, vector<1x4x32xbf16>
    %27 = vector.shape_cast %26 : vector<1x4x32xbf16> to vector<4x32xbf16>
    %cst_32 = arith.constant dense<0.000000e+00> : vector<196x32xf32>
    %28 = tpu.matmul %3, %27, %cst_32 {dimension_numbers = #tpu.dot_dimension_numbers<[1], [0], [0], [1], [0, 0, 1, 1], [], []>} : vector<196x4xbf16>, vector<4x32xbf16>, vector<196x32xf32> -> vector<196x32xf32>
    %29 = arith.addf %25, %28 : vector<196x32xf32>
    %c6 = arith.constant 6 : index
    %c0_33 = arith.constant 0 : index
    %c0_34 = arith.constant 0 : index
    %30 = vector.load %arg2[%c6, %c0_33, %c0_34] : memref<16x4x32xbf16, #tpu.memory_space<vmem>>, vector<1x4x32xbf16>
    %31 = vector.shape_cast %30 : vector<1x4x32xbf16> to vector<4x32xbf16>
    %cst_35 = arith.constant dense<0.000000e+00> : vector<196x32xf32>
    %32 = tpu.matmul %5, %31, %cst_35 {dimension_numbers = #tpu.dot_dimension_numbers<[1], [0], [0], [1], [0, 0, 1, 1], [], []>} : vector<196x4xbf16>, vector<4x32xbf16>, vector<196x32xf32> -> vector<196x32xf32>
    %33 = arith.addf %29, %32 : vector<196x32xf32>
    %c7 = arith.constant 7 : index
    %c0_36 = arith.constant 0 : index
    %c0_37 = arith.constant 0 : index
    %34 = vector.load %arg2[%c7, %c0_36, %c0_37] : memref<16x4x32xbf16, #tpu.memory_space<vmem>>, vector<1x4x32xbf16>
    %35 = vector.shape_cast %34 : vector<1x4x32xbf16> to vector<4x32xbf16>
    %cst_38 = arith.constant dense<0.000000e+00> : vector<196x32xf32>
    %36 = tpu.matmul %7, %35, %cst_38 {dimension_numbers = #tpu.dot_dimension_numbers<[1], [0], [0], [1], [0, 0, 1, 1], [], []>} : vector<196x4xbf16>, vector<4x32xbf16>, vector<196x32xf32> -> vector<196x32xf32>
    %37 = arith.addf %33, %36 : vector<196x32xf32>
    %38 = arith.maximumf %22, %37 : vector<196x32xf32>
    %c8 = arith.constant 8 : index
    %c0_39 = arith.constant 0 : index
    %c0_40 = arith.constant 0 : index
    %39 = vector.load %arg2[%c8, %c0_39, %c0_40] : memref<16x4x32xbf16, #tpu.memory_space<vmem>>, vector<1x4x32xbf16>
    %40 = vector.shape_cast %39 : vector<1x4x32xbf16> to vector<4x32xbf16>
    %cst_41 = arith.constant dense<0.000000e+00> : vector<196x32xf32>
    %41 = tpu.matmul %1, %40, %cst_41 {dimension_numbers = #tpu.dot_dimension_numbers<[1], [0], [0], [1], [0, 0, 1, 1], [], []>} : vector<196x4xbf16>, vector<4x32xbf16>, vector<196x32xf32> -> vector<196x32xf32>
    %c9 = arith.constant 9 : index
    %c0_42 = arith.constant 0 : index
    %c0_43 = arith.constant 0 : index
    %42 = vector.load %arg2[%c9, %c0_42, %c0_43] : memref<16x4x32xbf16, #tpu.memory_space<vmem>>, vector<1x4x32xbf16>
    %43 = vector.shape_cast %42 : vector<1x4x32xbf16> to vector<4x32xbf16>
    %cst_44 = arith.constant dense<0.000000e+00> : vector<196x32xf32>
    %44 = tpu.matmul %3, %43, %cst_44 {dimension_numbers = #tpu.dot_dimension_numbers<[1], [0], [0], [1], [0, 0, 1, 1], [], []>} : vector<196x4xbf16>, vector<4x32xbf16>, vector<196x32xf32> -> vector<196x32xf32>
    %45 = arith.addf %41, %44 : vector<196x32xf32>
    %c10 = arith.constant 10 : index
    %c0_45 = arith.constant 0 : index
    %c0_46 = arith.constant 0 : index
    %46 = vector.load %arg2[%c10, %c0_45, %c0_46] : memref<16x4x32xbf16, #tpu.memory_space<vmem>>, vector<1x4x32xbf16>
    %47 = vector.shape_cast %46 : vector<1x4x32xbf16> to vector<4x32xbf16>
    %cst_47 = arith.constant dense<0.000000e+00> : vector<196x32xf32>
    %48 = tpu.matmul %5, %47, %cst_47 {dimension_numbers = #tpu.dot_dimension_numbers<[1], [0], [0], [1], [0, 0, 1, 1], [], []>} : vector<196x4xbf16>, vector<4x32xbf16>, vector<196x32xf32> -> vector<196x32xf32>
    %49 = arith.addf %45, %48 : vector<196x32xf32>
    %c11 = arith.constant 11 : index
    %c0_48 = arith.constant 0 : index
    %c0_49 = arith.constant 0 : index
    %50 = vector.load %arg2[%c11, %c0_48, %c0_49] : memref<16x4x32xbf16, #tpu.memory_space<vmem>>, vector<1x4x32xbf16>
    %51 = vector.shape_cast %50 : vector<1x4x32xbf16> to vector<4x32xbf16>
    %cst_50 = arith.constant dense<0.000000e+00> : vector<196x32xf32>
    %52 = tpu.matmul %7, %51, %cst_50 {dimension_numbers = #tpu.dot_dimension_numbers<[1], [0], [0], [1], [0, 0, 1, 1], [], []>} : vector<196x4xbf16>, vector<4x32xbf16>, vector<196x32xf32> -> vector<196x32xf32>
    %53 = arith.addf %49, %52 : vector<196x32xf32>
    %54 = arith.maximumf %38, %53 : vector<196x32xf32>
    %c12 = arith.constant 12 : index
    %c0_51 = arith.constant 0 : index
    %c0_52 = arith.constant 0 : index
    %55 = vector.load %arg2[%c12, %c0_51, %c0_52] : memref<16x4x32xbf16, #tpu.memory_space<vmem>>, vector<1x4x32xbf16>
    %56 = vector.shape_cast %55 : vector<1x4x32xbf16> to vector<4x32xbf16>
    %cst_53 = arith.constant dense<0.000000e+00> : vector<196x32xf32>
    %57 = tpu.matmul %1, %56, %cst_53 {dimension_numbers = #tpu.dot_dimension_numbers<[1], [0], [0], [1], [0, 0, 1, 1], [], []>} : vector<196x4xbf16>, vector<4x32xbf16>, vector<196x32xf32> -> vector<196x32xf32>
    %c13 = arith.constant 13 : index
    %c0_54 = arith.constant 0 : index
    %c0_55 = arith.constant 0 : index
    %58 = vector.load %arg2[%c13, %c0_54, %c0_55] : memref<16x4x32xbf16, #tpu.memory_space<vmem>>, vector<1x4x32xbf16>
    %59 = vector.shape_cast %58 : vector<1x4x32xbf16> to vector<4x32xbf16>
    %cst_56 = arith.constant dense<0.000000e+00> : vector<196x32xf32>
    %60 = tpu.matmul %3, %59, %cst_56 {dimension_numbers = #tpu.dot_dimension_numbers<[1], [0], [0], [1], [0, 0, 1, 1], [], []>} : vector<196x4xbf16>, vector<4x32xbf16>, vector<196x32xf32> -> vector<196x32xf32>
    %61 = arith.addf %57, %60 : vector<196x32xf32>
    %c14 = arith.constant 14 : index
    %c0_57 = arith.constant 0 : index
    %c0_58 = arith.constant 0 : index
    %62 = vector.load %arg2[%c14, %c0_57, %c0_58] : memref<16x4x32xbf16, #tpu.memory_space<vmem>>, vector<1x4x32xbf16>
    %63 = vector.shape_cast %62 : vector<1x4x32xbf16> to vector<4x32xbf16>
    %cst_59 = arith.constant dense<0.000000e+00> : vector<196x32xf32>
    %64 = tpu.matmul %5, %63, %cst_59 {dimension_numbers = #tpu.dot_dimension_numbers<[1], [0], [0], [1], [0, 0, 1, 1], [], []>} : vector<196x4xbf16>, vector<4x32xbf16>, vector<196x32xf32> -> vector<196x32xf32>
    %65 = arith.addf %61, %64 : vector<196x32xf32>
    %c15 = arith.constant 15 : index
    %c0_60 = arith.constant 0 : index
    %c0_61 = arith.constant 0 : index
    %66 = vector.load %arg2[%c15, %c0_60, %c0_61] : memref<16x4x32xbf16, #tpu.memory_space<vmem>>, vector<1x4x32xbf16>
    %67 = vector.shape_cast %66 : vector<1x4x32xbf16> to vector<4x32xbf16>
    %cst_62 = arith.constant dense<0.000000e+00> : vector<196x32xf32>
    %68 = tpu.matmul %7, %67, %cst_62 {dimension_numbers = #tpu.dot_dimension_numbers<[1], [0], [0], [1], [0, 0, 1, 1], [], []>} : vector<196x4xbf16>, vector<4x32xbf16>, vector<196x32xf32> -> vector<196x32xf32>
    %69 = arith.addf %65, %68 : vector<196x32xf32>
    %70 = arith.maximumf %54, %69 : vector<196x32xf32>
    %c0_63 = arith.constant 0 : index
    %c0_64 = arith.constant 0 : index
    %71 = vector.load %arg3[%c0_63, %c0_64] : memref<1x32xf32, #tpu.memory_space<vmem>>, vector<1x32xf32>
    %72 = vector.broadcast %71 : vector<1x32xf32> to vector<196x32xf32>
    %73 = arith.addf %70, %72 : vector<196x32xf32>
    %cst_65 = arith.constant 0.000000e+00 : f32
    %74 = vector.broadcast %cst_65 : f32 to vector<196x32xf32>
    %75 = arith.maximumf %73, %74 : vector<196x32xf32>
    %76 = arith.truncf %75 : vector<196x32xf32> to vector<196x32xbf16>
    %c0_66 = arith.constant 0 : index
    %c0_67 = arith.constant 0 : index
    %c0_68 = arith.constant 0 : index
    %77 = vector.load %arg4[%c0_66, %c0_67, %c0_68] : memref<1x196x32xbf16, #tpu.memory_space<vmem>>, vector<1x196x32xbf16>
    %78 = vector.shape_cast %77 : vector<1x196x32xbf16> to vector<196x32xbf16>
    %79 = vector.shape_cast %76 : vector<196x32xbf16> to vector<1x196x32xbf16>
    tpu.vector_store %arg4[%c0_66, %c0_67, %c0_68], %79 {strides = array<i32>} : memref<1x196x32xbf16, #tpu.memory_space<vmem>>, vector<1x196x32xbf16>,
    return
  }
  func.func @transform_0(%arg0: i32) -> (i32, i32, i32, i32) {
    %c0_i32 = arith.constant 0 : i32
    %c0_i32_0 = arith.constant 0 : i32
    %c0_i32_1 = arith.constant 0 : i32
    %c0_i32_2 = arith.constant 0 : i32
    return %arg0, %c0_i32, %c0_i32_0, %c0_i32_1 : i32, i32, i32, i32
  }
  func.func @transform_1(%arg0: i32) -> (i32, i32, i32) {
    %c0_i32 = arith.constant 0 : i32
    %c0_i32_0 = arith.constant 0 : i32
    %c0_i32_1 = arith.constant 0 : i32
    %c0_i32_2 = arith.constant 0 : i32
    return %c0_i32, %c0_i32_0, %c0_i32_1 : i32, i32, i32
  }
  func.func @transform_2(%arg0: i32) -> (i32, i32) {
    %c0_i32 = arith.constant 0 : i32
    %c0_i32_0 = arith.constant 0 : i32
    %c0_i32_1 = arith.constant 0 : i32
    return %c0_i32, %c0_i32_0 : i32, i32
  }
  func.func @transform_3(%arg0: i32) -> (i32, i32, i32) {
    %c0_i32 = arith.constant 0 : i32
    %c0_i32_0 = arith.constant 0 : i32
    %c0_i32_1 = arith.constant 0 : i32
    return %arg0, %c0_i32, %c0_i32_0 : i32, i32, i32
  }
}

module attributes {stable_mosaic.version = 11 : i64} {
  func.func @_conv_relu_pool_kernel(%arg0: i32, %arg1: memref<1x4x49x128xbf16, #tpu.memory_space<vmem>>, %arg2: memref<16x128x64xbf16, #tpu.memory_space<vmem>>, %arg3: memref<1x64xf32, #tpu.memory_space<vmem>>, %arg4: memref<1x49x64xbf16, #tpu.memory_space<vmem>>) attributes {dimension_semantics = [#tpu.dimension_semantics<parallel>], iteration_bounds = array<i64: 2>, scalar_prefetch = 0 : i64, scratch_operands = 0 : i64, tpu.core_type = #tpu.core_type<tc>, window_params = [{transform_indices = @transform_0, window_bounds = array<i64: 1, 4, 49, 128>}, {pipeline_mode = #tpu.pipeline_mode<synchronous>, transform_indices = @transform_1, window_bounds = array<i64: 16, 128, 64>}, {pipeline_mode = #tpu.pipeline_mode<synchronous>, transform_indices = @transform_2, window_bounds = array<i64: 1, 64>}, {transform_indices = @transform_3, window_bounds = array<i64: 1, 49, 64>}]} {
    %c0 = arith.constant 0 : index
    %c0_0 = arith.constant 0 : index
    %c0_1 = arith.constant 0 : index
    %c0_2 = arith.constant 0 : index
    %0 = vector.load %arg1[%c0, %c0_0, %c0_1, %c0_2] : memref<1x4x49x128xbf16, #tpu.memory_space<vmem>>, vector<1x1x49x128xbf16>
    %1 = vector.shape_cast %0 : vector<1x1x49x128xbf16> to vector<49x128xbf16>
    %c0_3 = arith.constant 0 : index
    %c1 = arith.constant 1 : index
    %c0_4 = arith.constant 0 : index
    %c0_5 = arith.constant 0 : index
    %2 = vector.load %arg1[%c0_3, %c1, %c0_4, %c0_5] : memref<1x4x49x128xbf16, #tpu.memory_space<vmem>>, vector<1x1x49x128xbf16>
    %3 = vector.shape_cast %2 : vector<1x1x49x128xbf16> to vector<49x128xbf16>
    %c0_6 = arith.constant 0 : index
    %c2 = arith.constant 2 : index
    %c0_7 = arith.constant 0 : index
    %c0_8 = arith.constant 0 : index
    %4 = vector.load %arg1[%c0_6, %c2, %c0_7, %c0_8] : memref<1x4x49x128xbf16, #tpu.memory_space<vmem>>, vector<1x1x49x128xbf16>
    %5 = vector.shape_cast %4 : vector<1x1x49x128xbf16> to vector<49x128xbf16>
    %c0_9 = arith.constant 0 : index
    %c3 = arith.constant 3 : index
    %c0_10 = arith.constant 0 : index
    %c0_11 = arith.constant 0 : index
    %6 = vector.load %arg1[%c0_9, %c3, %c0_10, %c0_11] : memref<1x4x49x128xbf16, #tpu.memory_space<vmem>>, vector<1x1x49x128xbf16>
    %7 = vector.shape_cast %6 : vector<1x1x49x128xbf16> to vector<49x128xbf16>
    %c0_12 = arith.constant 0 : index
    %c0_13 = arith.constant 0 : index
    %c0_14 = arith.constant 0 : index
    %8 = vector.load %arg2[%c0_12, %c0_13, %c0_14] : memref<16x128x64xbf16, #tpu.memory_space<vmem>>, vector<1x128x64xbf16>
    %9 = vector.shape_cast %8 : vector<1x128x64xbf16> to vector<128x64xbf16>
    %cst = arith.constant dense<0.000000e+00> : vector<49x64xf32>
    %10 = tpu.matmul %1, %9, %cst {dimension_numbers = #tpu.dot_dimension_numbers<[1], [0], [0], [1], [0, 0, 1, 1], [], []>} : vector<49x128xbf16>, vector<128x64xbf16>, vector<49x64xf32> -> vector<49x64xf32>
    %c1_15 = arith.constant 1 : index
    %c0_16 = arith.constant 0 : index
    %c0_17 = arith.constant 0 : index
    %11 = vector.load %arg2[%c1_15, %c0_16, %c0_17] : memref<16x128x64xbf16, #tpu.memory_space<vmem>>, vector<1x128x64xbf16>
    %12 = vector.shape_cast %11 : vector<1x128x64xbf16> to vector<128x64xbf16>
    %cst_18 = arith.constant dense<0.000000e+00> : vector<49x64xf32>
    %13 = tpu.matmul %3, %12, %cst_18 {dimension_numbers = #tpu.dot_dimension_numbers<[1], [0], [0], [1], [0, 0, 1, 1], [], []>} : vector<49x128xbf16>, vector<128x64xbf16>, vector<49x64xf32> -> vector<49x64xf32>
    %14 = arith.addf %10, %13 : vector<49x64xf32>
    %c2_19 = arith.constant 2 : index
    %c0_20 = arith.constant 0 : index
    %c0_21 = arith.constant 0 : index
    %15 = vector.load %arg2[%c2_19, %c0_20, %c0_21] : memref<16x128x64xbf16, #tpu.memory_space<vmem>>, vector<1x128x64xbf16>
    %16 = vector.shape_cast %15 : vector<1x128x64xbf16> to vector<128x64xbf16>
    %cst_22 = arith.constant dense<0.000000e+00> : vector<49x64xf32>
    %17 = tpu.matmul %5, %16, %cst_22 {dimension_numbers = #tpu.dot_dimension_numbers<[1], [0], [0], [1], [0, 0, 1, 1], [], []>} : vector<49x128xbf16>, vector<128x64xbf16>, vector<49x64xf32> -> vector<49x64xf32>
    %18 = arith.addf %14, %17 : vector<49x64xf32>
    %c3_23 = arith.constant 3 : index
    %c0_24 = arith.constant 0 : index
    %c0_25 = arith.constant 0 : index
    %19 = vector.load %arg2[%c3_23, %c0_24, %c0_25] : memref<16x128x64xbf16, #tpu.memory_space<vmem>>, vector<1x128x64xbf16>
    %20 = vector.shape_cast %19 : vector<1x128x64xbf16> to vector<128x64xbf16>
    %cst_26 = arith.constant dense<0.000000e+00> : vector<49x64xf32>
    %21 = tpu.matmul %7, %20, %cst_26 {dimension_numbers = #tpu.dot_dimension_numbers<[1], [0], [0], [1], [0, 0, 1, 1], [], []>} : vector<49x128xbf16>, vector<128x64xbf16>, vector<49x64xf32> -> vector<49x64xf32>
    %22 = arith.addf %18, %21 : vector<49x64xf32>
    %c4 = arith.constant 4 : index
    %c0_27 = arith.constant 0 : index
    %c0_28 = arith.constant 0 : index
    %23 = vector.load %arg2[%c4, %c0_27, %c0_28] : memref<16x128x64xbf16, #tpu.memory_space<vmem>>, vector<1x128x64xbf16>
    %24 = vector.shape_cast %23 : vector<1x128x64xbf16> to vector<128x64xbf16>
    %cst_29 = arith.constant dense<0.000000e+00> : vector<49x64xf32>
    %25 = tpu.matmul %1, %24, %cst_29 {dimension_numbers = #tpu.dot_dimension_numbers<[1], [0], [0], [1], [0, 0, 1, 1], [], []>} : vector<49x128xbf16>, vector<128x64xbf16>, vector<49x64xf32> -> vector<49x64xf32>
    %c5 = arith.constant 5 : index
    %c0_30 = arith.constant 0 : index
    %c0_31 = arith.constant 0 : index
    %26 = vector.load %arg2[%c5, %c0_30, %c0_31] : memref<16x128x64xbf16, #tpu.memory_space<vmem>>, vector<1x128x64xbf16>
    %27 = vector.shape_cast %26 : vector<1x128x64xbf16> to vector<128x64xbf16>
    %cst_32 = arith.constant dense<0.000000e+00> : vector<49x64xf32>
    %28 = tpu.matmul %3, %27, %cst_32 {dimension_numbers = #tpu.dot_dimension_numbers<[1], [0], [0], [1], [0, 0, 1, 1], [], []>} : vector<49x128xbf16>, vector<128x64xbf16>, vector<49x64xf32> -> vector<49x64xf32>
    %29 = arith.addf %25, %28 : vector<49x64xf32>
    %c6 = arith.constant 6 : index
    %c0_33 = arith.constant 0 : index
    %c0_34 = arith.constant 0 : index
    %30 = vector.load %arg2[%c6, %c0_33, %c0_34] : memref<16x128x64xbf16, #tpu.memory_space<vmem>>, vector<1x128x64xbf16>
    %31 = vector.shape_cast %30 : vector<1x128x64xbf16> to vector<128x64xbf16>
    %cst_35 = arith.constant dense<0.000000e+00> : vector<49x64xf32>
    %32 = tpu.matmul %5, %31, %cst_35 {dimension_numbers = #tpu.dot_dimension_numbers<[1], [0], [0], [1], [0, 0, 1, 1], [], []>} : vector<49x128xbf16>, vector<128x64xbf16>, vector<49x64xf32> -> vector<49x64xf32>
    %33 = arith.addf %29, %32 : vector<49x64xf32>
    %c7 = arith.constant 7 : index
    %c0_36 = arith.constant 0 : index
    %c0_37 = arith.constant 0 : index
    %34 = vector.load %arg2[%c7, %c0_36, %c0_37] : memref<16x128x64xbf16, #tpu.memory_space<vmem>>, vector<1x128x64xbf16>
    %35 = vector.shape_cast %34 : vector<1x128x64xbf16> to vector<128x64xbf16>
    %cst_38 = arith.constant dense<0.000000e+00> : vector<49x64xf32>
    %36 = tpu.matmul %7, %35, %cst_38 {dimension_numbers = #tpu.dot_dimension_numbers<[1], [0], [0], [1], [0, 0, 1, 1], [], []>} : vector<49x128xbf16>, vector<128x64xbf16>, vector<49x64xf32> -> vector<49x64xf32>
    %37 = arith.addf %33, %36 : vector<49x64xf32>
    %38 = arith.maximumf %22, %37 : vector<49x64xf32>
    %c8 = arith.constant 8 : index
    %c0_39 = arith.constant 0 : index
    %c0_40 = arith.constant 0 : index
    %39 = vector.load %arg2[%c8, %c0_39, %c0_40] : memref<16x128x64xbf16, #tpu.memory_space<vmem>>, vector<1x128x64xbf16>
    %40 = vector.shape_cast %39 : vector<1x128x64xbf16> to vector<128x64xbf16>
    %cst_41 = arith.constant dense<0.000000e+00> : vector<49x64xf32>
    %41 = tpu.matmul %1, %40, %cst_41 {dimension_numbers = #tpu.dot_dimension_numbers<[1], [0], [0], [1], [0, 0, 1, 1], [], []>} : vector<49x128xbf16>, vector<128x64xbf16>, vector<49x64xf32> -> vector<49x64xf32>
    %c9 = arith.constant 9 : index
    %c0_42 = arith.constant 0 : index
    %c0_43 = arith.constant 0 : index
    %42 = vector.load %arg2[%c9, %c0_42, %c0_43] : memref<16x128x64xbf16, #tpu.memory_space<vmem>>, vector<1x128x64xbf16>
    %43 = vector.shape_cast %42 : vector<1x128x64xbf16> to vector<128x64xbf16>
    %cst_44 = arith.constant dense<0.000000e+00> : vector<49x64xf32>
    %44 = tpu.matmul %3, %43, %cst_44 {dimension_numbers = #tpu.dot_dimension_numbers<[1], [0], [0], [1], [0, 0, 1, 1], [], []>} : vector<49x128xbf16>, vector<128x64xbf16>, vector<49x64xf32> -> vector<49x64xf32>
    %45 = arith.addf %41, %44 : vector<49x64xf32>
    %c10 = arith.constant 10 : index
    %c0_45 = arith.constant 0 : index
    %c0_46 = arith.constant 0 : index
    %46 = vector.load %arg2[%c10, %c0_45, %c0_46] : memref<16x128x64xbf16, #tpu.memory_space<vmem>>, vector<1x128x64xbf16>
    %47 = vector.shape_cast %46 : vector<1x128x64xbf16> to vector<128x64xbf16>
    %cst_47 = arith.constant dense<0.000000e+00> : vector<49x64xf32>
    %48 = tpu.matmul %5, %47, %cst_47 {dimension_numbers = #tpu.dot_dimension_numbers<[1], [0], [0], [1], [0, 0, 1, 1], [], []>} : vector<49x128xbf16>, vector<128x64xbf16>, vector<49x64xf32> -> vector<49x64xf32>
    %49 = arith.addf %45, %48 : vector<49x64xf32>
    %c11 = arith.constant 11 : index
    %c0_48 = arith.constant 0 : index
    %c0_49 = arith.constant 0 : index
    %50 = vector.load %arg2[%c11, %c0_48, %c0_49] : memref<16x128x64xbf16, #tpu.memory_space<vmem>>, vector<1x128x64xbf16>
    %51 = vector.shape_cast %50 : vector<1x128x64xbf16> to vector<128x64xbf16>
    %cst_50 = arith.constant dense<0.000000e+00> : vector<49x64xf32>
    %52 = tpu.matmul %7, %51, %cst_50 {dimension_numbers = #tpu.dot_dimension_numbers<[1], [0], [0], [1], [0, 0, 1, 1], [], []>} : vector<49x128xbf16>, vector<128x64xbf16>, vector<49x64xf32> -> vector<49x64xf32>
    %53 = arith.addf %49, %52 : vector<49x64xf32>
    %54 = arith.maximumf %38, %53 : vector<49x64xf32>
    %c12 = arith.constant 12 : index
    %c0_51 = arith.constant 0 : index
    %c0_52 = arith.constant 0 : index
    %55 = vector.load %arg2[%c12, %c0_51, %c0_52] : memref<16x128x64xbf16, #tpu.memory_space<vmem>>, vector<1x128x64xbf16>
    %56 = vector.shape_cast %55 : vector<1x128x64xbf16> to vector<128x64xbf16>
    %cst_53 = arith.constant dense<0.000000e+00> : vector<49x64xf32>
    %57 = tpu.matmul %1, %56, %cst_53 {dimension_numbers = #tpu.dot_dimension_numbers<[1], [0], [0], [1], [0, 0, 1, 1], [], []>} : vector<49x128xbf16>, vector<128x64xbf16>, vector<49x64xf32> -> vector<49x64xf32>
    %c13 = arith.constant 13 : index
    %c0_54 = arith.constant 0 : index
    %c0_55 = arith.constant 0 : index
    %58 = vector.load %arg2[%c13, %c0_54, %c0_55] : memref<16x128x64xbf16, #tpu.memory_space<vmem>>, vector<1x128x64xbf16>
    %59 = vector.shape_cast %58 : vector<1x128x64xbf16> to vector<128x64xbf16>
    %cst_56 = arith.constant dense<0.000000e+00> : vector<49x64xf32>
    %60 = tpu.matmul %3, %59, %cst_56 {dimension_numbers = #tpu.dot_dimension_numbers<[1], [0], [0], [1], [0, 0, 1, 1], [], []>} : vector<49x128xbf16>, vector<128x64xbf16>, vector<49x64xf32> -> vector<49x64xf32>
    %61 = arith.addf %57, %60 : vector<49x64xf32>
    %c14 = arith.constant 14 : index
    %c0_57 = arith.constant 0 : index
    %c0_58 = arith.constant 0 : index
    %62 = vector.load %arg2[%c14, %c0_57, %c0_58] : memref<16x128x64xbf16, #tpu.memory_space<vmem>>, vector<1x128x64xbf16>
    %63 = vector.shape_cast %62 : vector<1x128x64xbf16> to vector<128x64xbf16>
    %cst_59 = arith.constant dense<0.000000e+00> : vector<49x64xf32>
    %64 = tpu.matmul %5, %63, %cst_59 {dimension_numbers = #tpu.dot_dimension_numbers<[1], [0], [0], [1], [0, 0, 1, 1], [], []>} : vector<49x128xbf16>, vector<128x64xbf16>, vector<49x64xf32> -> vector<49x64xf32>
    %65 = arith.addf %61, %64 : vector<49x64xf32>
    %c15 = arith.constant 15 : index
    %c0_60 = arith.constant 0 : index
    %c0_61 = arith.constant 0 : index
    %66 = vector.load %arg2[%c15, %c0_60, %c0_61] : memref<16x128x64xbf16, #tpu.memory_space<vmem>>, vector<1x128x64xbf16>
    %67 = vector.shape_cast %66 : vector<1x128x64xbf16> to vector<128x64xbf16>
    %cst_62 = arith.constant dense<0.000000e+00> : vector<49x64xf32>
    %68 = tpu.matmul %7, %67, %cst_62 {dimension_numbers = #tpu.dot_dimension_numbers<[1], [0], [0], [1], [0, 0, 1, 1], [], []>} : vector<49x128xbf16>, vector<128x64xbf16>, vector<49x64xf32> -> vector<49x64xf32>
    %69 = arith.addf %65, %68 : vector<49x64xf32>
    %70 = arith.maximumf %54, %69 : vector<49x64xf32>
    %c0_63 = arith.constant 0 : index
    %c0_64 = arith.constant 0 : index
    %71 = vector.load %arg3[%c0_63, %c0_64] : memref<1x64xf32, #tpu.memory_space<vmem>>, vector<1x64xf32>
    %72 = vector.broadcast %71 : vector<1x64xf32> to vector<49x64xf32>
    %73 = arith.addf %70, %72 : vector<49x64xf32>
    %cst_65 = arith.constant 0.000000e+00 : f32
    %74 = vector.broadcast %cst_65 : f32 to vector<49x64xf32>
    %75 = arith.maximumf %73, %74 : vector<49x64xf32>
    %76 = arith.truncf %75 : vector<49x64xf32> to vector<49x64xbf16>
    %c0_66 = arith.constant 0 : index
    %c0_67 = arith.constant 0 : index
    %c0_68 = arith.constant 0 : index
    %77 = vector.load %arg4[%c0_66, %c0_67, %c0_68] : memref<1x49x64xbf16, #tpu.memory_space<vmem>>, vector<1x49x64xbf16>
    %78 = vector.shape_cast %77 : vector<1x49x64xbf16> to vector<49x64xbf16>
    %79 = vector.shape_cast %76 : vector<49x64xbf16> to vector<1x49x64xbf16>
    tpu.vector_store %arg4[%c0_66, %c0_67, %c0_68], %79 {strides = array<i32>} : memref<1x49x64xbf16, #tpu.memory_space<vmem>>, vector<1x49x64xbf16>,
    return
  }
  func.func @transform_0(%arg0: i32) -> (i32, i32, i32, i32) {
    %c0_i32 = arith.constant 0 : i32
    %c0_i32_0 = arith.constant 0 : i32
    %c0_i32_1 = arith.constant 0 : i32
    %c0_i32_2 = arith.constant 0 : i32
    return %arg0, %c0_i32, %c0_i32_0, %c0_i32_1 : i32, i32, i32, i32
  }
  func.func @transform_1(%arg0: i32) -> (i32, i32, i32) {
    %c0_i32 = arith.constant 0 : i32
    %c0_i32_0 = arith.constant 0 : i32
    %c0_i32_1 = arith.constant 0 : i32
    %c0_i32_2 = arith.constant 0 : i32
    return %c0_i32, %c0_i32_0, %c0_i32_1 : i32, i32, i32
  }
  func.func @transform_2(%arg0: i32) -> (i32, i32) {
    %c0_i32 = arith.constant 0 : i32
    %c0_i32_0 = arith.constant 0 : i32
    %c0_i32_1 = arith.constant 0 : i32
    return %c0_i32, %c0_i32_0 : i32, i32
  }
  func.func @transform_3(%arg0: i32) -> (i32, i32, i32) {
    %c0_i32 = arith.constant 0 : i32
    %c0_i32_0 = arith.constant 0 : i32
    %c0_i32_1 = arith.constant 0 : i32
    return %arg0, %c0_i32, %c0_i32_0 : i32, i32, i32
  }
}

module attributes {stable_mosaic.version = 11 : i64} {
  func.func @_fc_stack_kernel(%arg0: i32, %arg1: memref<2x3136xbf16, #tpu.memory_space<vmem>>, %arg2: memref<3136x128xbf16, #tpu.memory_space<vmem>>, %arg3: memref<1x128xf32, #tpu.memory_space<vmem>>, %arg4: memref<128x64xbf16, #tpu.memory_space<vmem>>, %arg5: memref<1x64xf32, #tpu.memory_space<vmem>>, %arg6: memref<64x10xbf16, #tpu.memory_space<vmem>>, %arg7: memref<1x10xf32, #tpu.memory_space<vmem>>, %arg8: memref<2x10xf32, #tpu.memory_space<vmem>>) attributes {dimension_semantics = [#tpu.dimension_semantics<parallel>], iteration_bounds = array<i64: 1>, scalar_prefetch = 0 : i64, scratch_operands = 0 : i64, tpu.core_type = #tpu.core_type<tc>, window_params = [{transform_indices = @transform_0, window_bounds = array<i64: 2, 3136>}, {pipeline_mode = #tpu.pipeline_mode<synchronous>, transform_indices = @transform_1, window_bounds = array<i64: 3136, 128>}, {pipeline_mode = #tpu.pipeline_mode<synchronous>, transform_indices = @transform_2, window_bounds = array<i64: 1, 128>}, {pipeline_mode = #tpu.pipeline_mode<synchronous>, transform_indices = @transform_3, window_bounds = array<i64: 128, 64>}, {pipeline_mode = #tpu.pipeline_mode<synchronous>, transform_indices = @transform_4, window_bounds = array<i64: 1, 64>}, {pipeline_mode = #tpu.pipeline_mode<synchronous>, transform_indices = @transform_5, window_bounds = array<i64: 64, 10>}, {pipeline_mode = #tpu.pipeline_mode<synchronous>, transform_indices = @transform_6, window_bounds = array<i64: 1, 10>}, {transform_indices = @transform_7, window_bounds = array<i64: 2, 10>}]} {
    %c0 = arith.constant 0 : index
    %c0_0 = arith.constant 0 : index
    %0 = vector.load %arg1[%c0, %c0_0] : memref<2x3136xbf16, #tpu.memory_space<vmem>>, vector<2x3136xbf16>
    %c0_1 = arith.constant 0 : index
    %c0_2 = arith.constant 0 : index
    %1 = vector.load %arg2[%c0_1, %c0_2] : memref<3136x128xbf16, #tpu.memory_space<vmem>>, vector<3136x128xbf16>
    %cst = arith.constant dense<0.000000e+00> : vector<2x128xf32>
    %2 = tpu.matmul %0, %1, %cst {dimension_numbers = #tpu.dot_dimension_numbers<[1], [0], [0], [1], [0, 0, 1, 1], [], []>} : vector<2x3136xbf16>, vector<3136x128xbf16>, vector<2x128xf32> -> vector<2x128xf32>
    %c0_3 = arith.constant 0 : index
    %c0_4 = arith.constant 0 : index
    %3 = vector.load %arg3[%c0_3, %c0_4] : memref<1x128xf32, #tpu.memory_space<vmem>>, vector<1x128xf32>
    %4 = vector.broadcast %3 : vector<1x128xf32> to vector<2x128xf32>
    %5 = arith.addf %2, %4 : vector<2x128xf32>
    %cst_5 = arith.constant 0.000000e+00 : f32
    %6 = vector.broadcast %cst_5 : f32 to vector<2x128xf32>
    %7 = arith.maximumf %5, %6 : vector<2x128xf32>
    %8 = arith.truncf %7 : vector<2x128xf32> to vector<2x128xbf16>
    %c0_6 = arith.constant 0 : index
    %c0_7 = arith.constant 0 : index
    %9 = vector.load %arg4[%c0_6, %c0_7] : memref<128x64xbf16, #tpu.memory_space<vmem>>, vector<128x64xbf16>
    %cst_8 = arith.constant dense<0.000000e+00> : vector<2x64xf32>
    %10 = tpu.matmul %8, %9, %cst_8 {dimension_numbers = #tpu.dot_dimension_numbers<[1], [0], [0], [1], [0, 0, 1, 1], [], []>} : vector<2x128xbf16>, vector<128x64xbf16>, vector<2x64xf32> -> vector<2x64xf32>
    %c0_9 = arith.constant 0 : index
    %c0_10 = arith.constant 0 : index
    %11 = vector.load %arg5[%c0_9, %c0_10] : memref<1x64xf32, #tpu.memory_space<vmem>>, vector<1x64xf32>
    %12 = vector.broadcast %11 : vector<1x64xf32> to vector<2x64xf32>
    %13 = arith.addf %10, %12 : vector<2x64xf32>
    %cst_11 = arith.constant 0.000000e+00 : f32
    %14 = vector.broadcast %cst_11 : f32 to vector<2x64xf32>
    %15 = arith.maximumf %13, %14 : vector<2x64xf32>
    %16 = arith.truncf %15 : vector<2x64xf32> to vector<2x64xbf16>
    %c0_12 = arith.constant 0 : index
    %c0_13 = arith.constant 0 : index
    %17 = vector.load %arg6[%c0_12, %c0_13] : memref<64x10xbf16, #tpu.memory_space<vmem>>, vector<64x10xbf16>
    %cst_14 = arith.constant dense<0.000000e+00> : vector<2x10xf32>
    %18 = tpu.matmul %16, %17, %cst_14 {dimension_numbers = #tpu.dot_dimension_numbers<[1], [0], [0], [1], [0, 0, 1, 1], [], []>} : vector<2x64xbf16>, vector<64x10xbf16>, vector<2x10xf32> -> vector<2x10xf32>
    %c0_15 = arith.constant 0 : index
    %c0_16 = arith.constant 0 : index
    %19 = vector.load %arg7[%c0_15, %c0_16] : memref<1x10xf32, #tpu.memory_space<vmem>>, vector<1x10xf32>
    %20 = vector.broadcast %19 : vector<1x10xf32> to vector<2x10xf32>
    %21 = arith.addf %18, %20 : vector<2x10xf32>
    %cst_17 = arith.constant dense<0xFF800000> : vector<2xf32>
    %22 = vector.multi_reduction <maximumf>, %21, %cst_17 [1] : vector<2x10xf32> to vector<2xf32>
    %23 = vector.shape_cast %22 : vector<2xf32> to vector<2x1xf32>
    %24 = vector.broadcast %23 : vector<2x1xf32> to vector<2x10xf32>
    %25 = arith.subf %21, %24 : vector<2x10xf32>
    %26 = math.exp %25 : vector<2x10xf32>
    %cst_18 = arith.constant dense<0.000000e+00> : vector<2xf32>
    %27 = vector.multi_reduction <add>, %26, %cst_18 [1] : vector<2x10xf32> to vector<2xf32>
    %28 = vector.shape_cast %27 : vector<2xf32> to vector<2x1xf32>
    %29 = tpu.reciprocal %28 {approx = true} : vector<2x1xf32> -> vector<2x1xf32>
    %30 = vector.broadcast %29 : vector<2x1xf32> to vector<2x10xf32>
    %31 = arith.mulf %26, %30 : vector<2x10xf32>
    %c0_19 = arith.constant 0 : index
    %c0_20 = arith.constant 0 : index
    %32 = vector.load %arg8[%c0_19, %c0_20] : memref<2x10xf32, #tpu.memory_space<vmem>>, vector<2x10xf32>
    tpu.vector_store %arg8[%c0_19, %c0_20], %31 {strides = array<i32>} : memref<2x10xf32, #tpu.memory_space<vmem>>, vector<2x10xf32>,
    return
  }
  func.func @transform_0(%arg0: i32) -> (i32, i32) {
    %c0_i32 = arith.constant 0 : i32
    %c0_i32_0 = arith.constant 0 : i32
    return %arg0, %c0_i32 : i32, i32
  }
  func.func @transform_1(%arg0: i32) -> (i32, i32) {
    %c0_i32 = arith.constant 0 : i32
    %c0_i32_0 = arith.constant 0 : i32
    %c0_i32_1 = arith.constant 0 : i32
    return %c0_i32, %c0_i32_0 : i32, i32
  }
  func.func @transform_2(%arg0: i32) -> (i32, i32) {
    %c0_i32 = arith.constant 0 : i32
    %c0_i32_0 = arith.constant 0 : i32
    %c0_i32_1 = arith.constant 0 : i32
    return %c0_i32, %c0_i32_0 : i32, i32
  }
  func.func @transform_3(%arg0: i32) -> (i32, i32) {
    %c0_i32 = arith.constant 0 : i32
    %c0_i32_0 = arith.constant 0 : i32
    %c0_i32_1 = arith.constant 0 : i32
    return %c0_i32, %c0_i32_0 : i32, i32
  }
  func.func @transform_4(%arg0: i32) -> (i32, i32) {
    %c0_i32 = arith.constant 0 : i32
    %c0_i32_0 = arith.constant 0 : i32
    %c0_i32_1 = arith.constant 0 : i32
    return %c0_i32, %c0_i32_0 : i32, i32
  }
  func.func @transform_5(%arg0: i32) -> (i32, i32) {
    %c0_i32 = arith.constant 0 : i32
    %c0_i32_0 = arith.constant 0 : i32
    %c0_i32_1 = arith.constant 0 : i32
    return %c0_i32, %c0_i32_0 : i32, i32
  }
  func.func @transform_6(%arg0: i32) -> (i32, i32) {
    %c0_i32 = arith.constant 0 : i32
    %c0_i32_0 = arith.constant 0 : i32
    %c0_i32_1 = arith.constant 0 : i32
    return %c0_i32, %c0_i32_0 : i32, i32
  }
  func.func @transform_7(%arg0: i32) -> (i32, i32) {
    %c0_i32 = arith.constant 0 : i32
    %c0_i32_0 = arith.constant 0 : i32
    return %arg0, %c0_i32 : i32, i32
  }
}

</mosaic_0001>

<bundles_post_ra>
// kernel: forward.3
= control target key start
LH: loop header
LB: loop body
LE: loop exit
PB: predicated region body
PF: predicated region fallthrough
CT: control target
= control target key end

     0   :  { %s5671_s12 = smov 0   ;;  %s7068_s0 = inlined_call_operand.vmem [shape: bf16[2,4,196,4], index: 0, kind: input, shape index: {}]   ;;  %s7069_s1 = inlined_call_operand.vmem [shape: bf16[16,4,32], index: 1, kind: input, shape index: {}]   ;;  %s7070_s2 = inlined_call_operand.vmem [shape: f32[1,32], index: 2, kind: input, shape index: {}]   ;;  %s7071_s3 = inlined_call_operand.vmem [shape: bf16[2,196,32], index: 3, kind: output, shape index: {}]  }
   0x1 LB: > { %s3455_s13 = sadd.s32 4294967295, %s5647_s12   ;;  %p3459_p0 = scmp.ge.s32.totalorder %s5647_s12, 1  ;;  %s5647_s12 = sphi %s5671_s12, %s13_s12  }
   0x2   : > { %p137_p1 = scmp.lt.s32.totalorder %s5647_s12, 3 }
   0x4   : > { %p138_p2 = pnand %p3459_p0, %p137_p1 }
   0x6   : > { %141 = sbr.rel (%p138_p2) target bundleno = 1068 (0x42c), region = 32 }
   0xd   : > { %v3537_v0 = vld [vmem:[%s7069_s1 + $0x2] sm:$0x3]  ;;  %vm381_vm0 = vcmask 1041408   ;;  %v3645_v1 = vld [vmem:[%s7069_s1 + $0xa] sm:$0x3]  ;;  %v7092_v2 = vmov 0.0  }
   0xe   : > { %4089 = vmatprep.subr.bf16.mxu0 %v7092_v2  ;;  %v383_v3 = vsel %vm381_vm0, %v3537_v0, 0  ;;  %4305 = vmatprep.subr.bf16.mxu1 %v7092_v2  ;;  %v1303_v4 = vsel %vm381_vm0, %v3645_v1, 0  ;;  %p161_p3 = scmp.lt.s32.totalorder %s3455_s13, 1  ;;  %vm5650_vm1 = vmmov 0   ;;  %v275_v5 = vld [vmem:[%s7069_s1] sm:$0x3] }
   0xf   : > { %4090 = vmatpush3.bf16.msra.mxu0 %v383_v3  ;;  %4306 = vmatpush3.bf16.msra.mxu1 %v1303_v4  ;;  %v3644_v6 = vld [vmem:[%s7069_s1 + $0x8] sm:$0x3]  ;;  %vm341_vm2 = vcmask 31744   ;;  %v624_v7 = vsel %vm381_vm0, %v275_v5, 0  ;;  %v3590_v22 = vld [vmem:[%s7069_s1 + $0x4] sm:$0x3] }
  0x10   : > { %4091 = vmatprep.mubr.msk.bf16.mxu0 %vm5650_vm1, %v7092_v2  ;;  %4143 = vmatprep.subr.bf16.mxu0 %v7092_v2  ;;  %s7172_s13 = smov (!%p161_p3, %s3455_s13), 1  ;;  %v1442_v9 = vsel %vm381_vm0, %v3644_v6, 0  ;;  %v3672_v23 = vld [vmem:[%s7069_s1 + $0xc] sm:$0x3]  ;;  %v867_v25 = vsel %vm381_vm0, %v3590_v22, 0  ;;  %vm3373_vm3 = vcmask 257024  }
  0x11   : > { %4307 = vmatprep.mubr.msk.bf16.mxu1 %vm5650_vm1, %v7092_v2  ;;  %4359 = vmatprep.subr.bf16.mxu1 %v7092_v2  ;;  %s5577_s20 = smul.u32 400, %s7172_s13  ;;  %v1583_v26 = vsel %vm381_vm0, %v3672_v23, 0  ;;  %v3617_v39 = vld [vmem:[%s7069_s1 + $0x6] sm:$0x3]  ;;  %v3686_v40 = vld [vmem:[%s7069_s1 + $0xe] sm:$0x3] }
  0x12   : > { %v1135_v42 = vsel %vm381_vm0, %v3617_v39, 0  ;;  %v1749_v43 = vsel %vm381_vm0, %v3686_v40, 0  ;;  %v3701_v56 = vld [vmem:[%s7069_s1 + $0x12] sm:$0x3]  ;;  %v3757_v57 = vld [vmem:[%s7069_s1 + $0x1a] sm:$0x3] }
  0x13   : > { %s5707_s25 = scalar_lea.vmem %s7068_s0, %s5577_s20  ;;  %v1942_v59 = vsel %vm381_vm0, %v3701_v56, 0  ;;  %v2581_v60 = vsel %vm381_vm0, %v3757_v57, 0  ;;  %v3700_v23 = vld [vmem:[%s7069_s1 + $0x10] sm:$0x3]  ;;  %s5578_s27 = smul.u32 100, %s7172_s13  ;;  %vm3398_vm4 = vcmask 254976  }
  0x14   : > { %v5711_v8 = vld [vmem:[%s5707_s25 + $0x64] sm:$0xff]   ;;  %v5725_v10 = vld [vmem:[%s5707_s25 + $0x6c] sm:$0xff]   ;;  %v5736_v11 = vld [vmem:[%s5707_s25 + $0x74] sm:$0xff]  }
  0x15   : > { %4092 = vmatmul.mubr.msk.bf16.vlgmr.msra.gmra.mrb[0].mxu0 %vm341_vm2, %v5711_v8  ;;  %4308 = vmatmul.mubr.msk.bf16.vlgmr.msra.gmra.mrb[0].mxu1 %vm341_vm2, %v5711_v8  ;;  %v5747_v12 = vld [vmem:[%s5707_s25 + $0x7c] sm:$0xff]   ;;  %v5758_v13 = vld [vmem:[%s5707_s25 + $0x84] sm:$0xff]   ;;  %v5769_v14 = vld [vmem:[%s5707_s25 + $0x8c] sm:$0xff]   ;;  %s6922_s30 = scalar_lea.vmem %s7071_s3, %s5578_s27 }
  0x16   : > { %4144 = vmatpush3.bf16.msra.mxu0 %v624_v7  ;;  %4360 = vmatpush3.bf16.msra.mxu1 %v1442_v9  ;;  %v5780_v15 = vld [vmem:[%s5707_s25 + $0x94] sm:$0xff]   ;;  %v5791_v16 = vld [vmem:[%s5707_s25 + $0x9c] sm:$0xff]   ;;  %v5802_v17 = vld [vmem:[%s5707_s25 + $0xa4] sm:$0xff]  }
  0x17   : > { %4095 = vmatprep.mubr.msk.bf16.mxu0 %vm5650_vm1, %v7092_v2  ;;  %4311 = vmatprep.mubr.msk.bf16.mxu1 %vm5650_vm1, %v7092_v2  ;;  %v5813_v18 = vld [vmem:[%s5707_s25 + $0xac] sm:$0xff]   ;;  %v5824_v19 = vld [vmem:[%s5707_s25 + $0xb4] sm:$0xff]   ;;  %v5835_v20 = vld [vmem:[%s5707_s25 + $0xbc] sm:$0xff]  }
  0x18   : > { %4197 = vmatprep.subr.bf16.mxu0 %v7092_v2  ;;  %4413 = vmatprep.subr.bf16.mxu1 %v7092_v2  ;;  %v5846_v21 = vld [vmem:[%s5707_s25 + $0xc4] ss:$0 sps:$4 sm:$0x33]   ;;  %v5878_v27 = vld [vmem:[%s5707_s25 + $0x8] sm:$0xff]   ;;  %v5889_v28 = vld [vmem:[%s5707_s25 + $0x10] sm:$0xff]  }
  0x19   : > { %v5863_v24 = vld [vmem:[%s5707_s25] sm:$0xff]   ;;  %v5900_v29 = vld [vmem:[%s5707_s25 + $0x18] sm:$0xff]   ;;  %v5922_v31 = vld [vmem:[%s5707_s25 + $0x28] sm:$0xff]  }
  0x1a   : > { %v5911_v30 = vld [vmem:[%s5707_s25 + $0x20] sm:$0xff]   ;;  %v5933_v32 = vld [vmem:[%s5707_s25 + $0x30] sm:$0xff]   ;;  %v5944_v33 = vld [vmem:[%s5707_s25 + $0x38] sm:$0xff]  }
  0x1b   : > { %v5955_v34 = vld [vmem:[%s5707_s25 + $0x40] sm:$0xff]   ;;  %v5966_v35 = vld [vmem:[%s5707_s25 + $0x48] sm:$0xff]   ;;  %v5977_v36 = vld [vmem:[%s5707_s25 + $0x50] sm:$0xff]  }
  0x1c   : > { %v5988_v37 = vld [vmem:[%s5707_s25 + $0x58] sm:$0xff]   ;;  %v5999_v38 = vld [vmem:[%s5707_s25 + $0x60] ss:$0 sps:$4 sm:$0x33]   ;;  %v6016_v41 = vld [vmem:[%s5707_s25 + $0xc8] sm:$0xff]  }
  0x1d   : > { %4096 = vmatmul.mubr.msk.bf16.gmra.mrb[4].mxu0 %vm341_vm2, %v5725_v10  ;;  %4312 = vmatmul.mubr.msk.bf16.gmra.mrb[4].mxu1 %vm341_vm2, %v5725_v10  ;;  %v6031_v44 = vld [vmem:[%s5707_s25 + $0xd0] sm:$0xff]   ;;  %v6042_v45 = vld [vmem:[%s5707_s25 + $0xd8] sm:$0xff]   ;;  %v6053_v46 = vld [vmem:[%s5707_s25 + $0xe0] sm:$0xff]  }
  0x1e   : > { %4099 = vmatprep.mubr.msk.bf16.mxu0 %vm5650_vm1, %v7092_v2  ;;  %4315 = vmatprep.mubr.msk.bf16.mxu1 %vm5650_vm1, %v7092_v2  ;;  %v6064_v47 = vld [vmem:[%s5707_s25 + $0xe8] sm:$0xff]   ;;  %v6075_v48 = vld [vmem:[%s5707_s25 + $0xf0] sm:$0xff]   ;;  %v6086_v49 = vld [vmem:[%s5707_s25 + $0xf8] sm:$0xff]  }
  0x1f   : > { %v6097_v50 = vld [vmem:[%s5707_s25 + $0x100] sm:$0xff]   ;;  %v6108_v51 = vld [vmem:[%s5707_s25 + $0x108] sm:$0xff]   ;;  %v6119_v52 = vld [vmem:[%s5707_s25 + $0x110] sm:$0xff]  }
  0x20   : > { %v6130_v53 = vld [vmem:[%s5707_s25 + $0x118] sm:$0xff]   ;;  %v6141_v54 = vld [vmem:[%s5707_s25 + $0x120] sm:$0xff]   ;;  %v6152_v55 = vld [vmem:[%s5707_s25 + $0x128] ss:$0 sps:$4 sm:$0x33]  }
  0x21   : > { %v6169_v58 = vld [vmem:[%s5707_s25 + $0x12c] sm:$0xff]   ;;  %v6184_v61 = vld [vmem:[%s5707_s25 + $0x134] sm:$0xff]   ;;  %v6195_v62 = vld [vmem:[%s5707_s25 + $0x13c] sm:$0xff]  }
  0x22   : > { %v6206_v63 = vld [vmem:[%s5707_s25 + $0x144] sm:$0xff]   ;;  %v6217_v0 = vld [vmem:[%s5707_s25 + $0x14c] sm:$0xff]   ;;  %v6228_v1 = vld [vmem:[%s5707_s25 + $0x154] sm:$0xff]  }
  0x23   : > { %v6239_v3 = vld [vmem:[%s5707_s25 + $0x15c] sm:$0xff]   ;;  %v6250_v4 = vld [vmem:[%s5707_s25 + $0x164] sm:$0xff]   ;;  %v6261_v5 = vld [vmem:[%s5707_s25 + $0x16c] sm:$0xff]  }
  0x24   : > { %v6272_v6 = vld [vmem:[%s5707_s25 + $0x174] sm:$0xff]   ;;  %v6283_v7 = vld [vmem:[%s5707_s25 + $0x17c] sm:$0xff]   ;;  %v6294_v9 = vld [vmem:[%s5707_s25 + $0x184] sm:$0xff]  }
  0x25   : > { %4100 = vmatmul.mubr.msk.bf16.gmra.mrb[8].mxu0 %vm341_vm2, %v5736_v11  ;;  %4316 = vmatmul.mubr.msk.bf16.gmra.mrb[8].mxu1 %vm341_vm2, %v5736_v11  ;;  %v6305_v22 = vld [vmem:[%s5707_s25 + $0x18c] ss:$0 sps:$4 sm:$0x33]  }
  0x26   : > { %4103 = vmatprep.mubr.msk.bf16.mxu0 %vm5650_vm1, %v7092_v2  ;;  %4319 = vmatprep.mubr.msk.bf16.mxu1 %vm5650_vm1, %v7092_v2 }
  0x2d   : > { %4104 = vmatmul.mubr.msk.bf16.gmra.mrb[12].mxu0 %vm341_vm2, %v5747_v12  ;;  %4320 = vmatmul.mubr.msk.bf16.gmra.mrb[12].mxu1 %vm341_vm2, %v5747_v12 }
  0x2e   : > { %4107 = vmatprep.mubr.msk.bf16.mxu0 %vm5650_vm1, %v7092_v2  ;;  %4323 = vmatprep.mubr.msk.bf16.mxu1 %vm5650_vm1, %v7092_v2 }
  0x35   : > { %4108 = vmatmul.mubr.msk.bf16.gmra.mrb[16].mxu0 %vm341_vm2, %v5758_v13  ;;  %4324 = vmatmul.mubr.msk.bf16.gmra.mrb[16].mxu1 %vm341_vm2, %v5758_v13 }
  0x36   : > { %4111 = vmatprep.mubr.msk.bf16.mxu0 %vm5650_vm1, %v7092_v2  ;;  %4327 = vmatprep.mubr.msk.bf16.mxu1 %vm5650_vm1, %v7092_v2 }
  0x3d   : > { %4112 = vmatmul.mubr.msk.bf16.gmra.mrb[20].mxu0 %vm341_vm2, %v5769_v14  ;;  %4328 = vmatmul.mubr.msk.bf16.gmra.mrb[20].mxu1 %vm341_vm2, %v5769_v14 }
  0x3e   : > { %4115 = vmatprep.mubr.msk.bf16.mxu0 %vm5650_vm1, %v7092_v2  ;;  %4331 = vmatprep.mubr.msk.bf16.mxu1 %vm5650_vm1, %v7092_v2 }
  0x45   : > { %4116 = vmatmul.mubr.msk.bf16.gmra.mrb[24].mxu0 %vm341_vm2, %v5780_v15  ;;  %4332 = vmatmul.mubr.msk.bf16.gmra.mrb[24].mxu1 %vm341_vm2, %v5780_v15 }
  0x46   : > { %4119 = vmatprep.mubr.msk.bf16.mxu0 %vm5650_vm1, %v7092_v2  ;;  %4335 = vmatprep.mubr.msk.bf16.mxu1 %vm5650_vm1, %v7092_v2 }
  0x4d   : > { %4120 = vmatmul.mubr.msk.bf16.gmra.mrb[28].mxu0 %vm341_vm2, %v5791_v16  ;;  %4336 = vmatmul.mubr.msk.bf16.gmra.mrb[28].mxu1 %vm341_vm2, %v5791_v16 }
  0x4e   : > { %4123 = vmatprep.mubr.msk.bf16.mxu0 %vm5650_vm1, %v7092_v2  ;;  %4339 = vmatprep.mubr.msk.bf16.mxu1 %vm5650_vm1, %v7092_v2 }
  0x55   : > { %4124 = vmatmul.mubr.msk.bf16.gmra.mrb[32].mxu0 %vm341_vm2, %v5802_v17  ;;  %4340 = vmatmul.mubr.msk.bf16.gmra.mrb[32].mxu1 %vm341_vm2, %v5802_v17 }
  0x56   : > { %4127 = vmatprep.mubr.msk.bf16.mxu0 %vm5650_vm1, %v7092_v2  ;;  %4343 = vmatprep.mubr.msk.bf16.mxu1 %vm5650_vm1, %v7092_v2 }
  0x5d   : > { %4128 = vmatmul.mubr.msk.bf16.gmra.mrb[36].mxu0 %vm341_vm2, %v5813_v18  ;;  %4344 = vmatmul.mubr.msk.bf16.gmra.mrb[36].mxu1 %vm341_vm2, %v5813_v18 }
  0x5e   : > { %4131 = vmatprep.mubr.msk.bf16.mxu0 %vm5650_vm1, %v7092_v2  ;;  %4347 = vmatprep.mubr.msk.bf16.mxu1 %vm5650_vm1, %v7092_v2 }
  0x65   : > { %4132 = vmatmul.mubr.msk.bf16.gmra.mrb[40].mxu0 %vm341_vm2, %v5824_v19  ;;  %4348 = vmatmul.mubr.msk.bf16.gmra.mrb[40].mxu1 %vm341_vm2, %v5824_v19 }
  0x66   : > { %4135 = vmatprep.mubr.msk.bf16.mxu0 %vm5650_vm1, %v7092_v2  ;;  %4351 = vmatprep.mubr.msk.bf16.mxu1 %vm5650_vm1, %v7092_v2 }
  0x6d   : > { %4136 = vmatmul.mubr.msk.bf16.gmra.mrb[44].mxu0 %vm341_vm2, %v5835_v20  ;;  %4352 = vmatmul.mubr.msk.bf16.gmra.mrb[44].mxu1 %vm341_vm2, %v5835_v20 }
  0x6e   : > { %4139 = vmatprep.mubr.msk.bf16.mxu0 %vm5650_vm1, %v7092_v2  ;;  %4355 = vmatprep.mubr.msk.bf16.mxu1 %vm5650_vm1, %v7092_v2 }
  0x75   : > { %4140 = vmatmul.mubr.msk.bf16.gmra.mrb[48].mxu0 %vm341_vm2, %v5846_v21  ;;  %4356 = vmatmul.mubr.msk.bf16.gmra.mrb[48].mxu1 %vm341_vm2, %v5846_v21 }
  0x76   : > { %4145 = vmatprep.mubr.msk.bf16.mxu0 %vm5650_vm1, %v7092_v2  ;;  %4361 = vmatprep.mubr.msk.bf16.mxu1 %vm5650_vm1, %v7092_v2 }
  0x7d   : > { %4146 = vmatmul.mubr.msk.bf16.vlgmr.msra.gmra.mrb[0].mxu0 %vm341_vm2, %v5863_v24  ;;  %4362 = vmatmul.mubr.msk.bf16.vlgmr.msra.gmra.mrb[0].mxu1 %vm341_vm2, %v5863_v24 }
  0x7e   : > { %4198 = vmatpush3.bf16.msra.mxu0 %v867_v25  ;;  %4414 = vmatpush3.bf16.msra.mxu1 %v1583_v26  ;;  %v3756_v25 = vld [vmem:[%s7069_s1 + $0x18] sm:$0x3]  ;;  %v2081_v26 = vsel %vm381_vm0, %v3700_v23, 0 }
  0x7f   : > { %4149 = vmatprep.mubr.msk.bf16.mxu0 %vm5650_vm1, %v7092_v2  ;;  %4365 = vmatprep.mubr.msk.bf16.mxu1 %vm5650_vm1, %v7092_v2  ;;  %v2720_v39 = vsel %vm381_vm0, %v3756_v25, 0 }
  0x80   : > { %4251 = vmatprep.subr.bf16.mxu0 %v7092_v2  ;;  %4467 = vmatprep.subr.bf16.mxu1 %v7092_v2 }
  0x85   : > { %4150 = vmatmul.mubr.msk.bf16.gmra.mrb[4].mxu0 %vm341_vm2, %v5878_v27  ;;  %4366 = vmatmul.mubr.msk.bf16.gmra.mrb[4].mxu1 %vm341_vm2, %v5878_v27 }
  0x86   : > { %4153 = vmatprep.mubr.msk.bf16.mxu0 %vm5650_vm1, %v7092_v2  ;;  %4369 = vmatprep.mubr.msk.bf16.mxu1 %vm5650_vm1, %v7092_v2 }
  0x8d   : > { %4154 = vmatmul.mubr.msk.bf16.gmra.mrb[8].mxu0 %vm341_vm2, %v5889_v28  ;;  %4370 = vmatmul.mubr.msk.bf16.gmra.mrb[8].mxu1 %vm341_vm2, %v5889_v28 }
  0x8e   : > { %4157 = vmatprep.mubr.msk.bf16.mxu0 %vm5650_vm1, %v7092_v2  ;;  %4373 = vmatprep.mubr.msk.bf16.mxu1 %vm5650_vm1, %v7092_v2 }
  0x95   : > { %4158 = vmatmul.mubr.msk.bf16.gmra.mrb[12].mxu0 %vm341_vm2, %v5900_v29  ;;  %4374 = vmatmul.mubr.msk.bf16.gmra.mrb[12].mxu1 %vm341_vm2, %v5900_v29 }
  0x96   : > { %4161 = vmatprep.mubr.msk.bf16.mxu0 %vm5650_vm1, %v7092_v2  ;;  %4377 = vmatprep.mubr.msk.bf16.mxu1 %vm5650_vm1, %v7092_v2 }
  0x9d   : > { %4162 = vmatmul.mubr.msk.bf16.gmra.mrb[16].mxu0 %vm341_vm2, %v5911_v30  ;;  %4378 = vmatmul.mubr.msk.bf16.gmra.mrb[16].mxu1 %vm341_vm2, %v5911_v30 }
  0x9e   : > { %4165 = vmatprep.mubr.msk.bf16.mxu0 %vm5650_vm1, %v7092_v2  ;;  %4381 = vmatprep.mubr.msk.bf16.mxu1 %vm5650_vm1, %v7092_v2 }
  0xa5   : > { %4166 = vmatmul.mubr.msk.bf16.gmra.mrb[20].mxu0 %vm341_vm2, %v5922_v31  ;;  %4382 = vmatmul.mubr.msk.bf16.gmra.mrb[20].mxu1 %vm341_vm2, %v5922_v31 }
  0xa6   : > { %4169 = vmatprep.mubr.msk.bf16.mxu0 %vm5650_vm1, %v7092_v2  ;;  %4385 = vmatprep.mubr.msk.bf16.mxu1 %vm5650_vm1, %v7092_v2 }
  0xad   : > { %4170 = vmatmul.mubr.msk.bf16.gmra.mrb[24].mxu0 %vm341_vm2, %v5933_v32  ;;  %4386 = vmatmul.mubr.msk.bf16.gmra.mrb[24].mxu1 %vm341_vm2, %v5933_v32 }
  0xae   : > { %4173 = vmatprep.mubr.msk.bf16.mxu0 %vm5650_vm1, %v7092_v2  ;;  %4389 = vmatprep.mubr.msk.bf16.mxu1 %vm5650_vm1, %v7092_v2 }
  0xb5   : > { %4174 = vmatmul.mubr.msk.bf16.gmra.mrb[28].mxu0 %vm341_vm2, %v5944_v33  ;;  %4390 = vmatmul.mubr.msk.bf16.gmra.mrb[28].mxu1 %vm341_vm2, %v5944_v33 }
  0xb6   : > { %4177 = vmatprep.mubr.msk.bf16.mxu0 %vm5650_vm1, %v7092_v2  ;;  %4393 = vmatprep.mubr.msk.bf16.mxu1 %vm5650_vm1, %v7092_v2 }
  0xbd   : > { %4178 = vmatmul.mubr.msk.bf16.gmra.mrb[32].mxu0 %vm341_vm2, %v5955_v34  ;;  %4394 = vmatmul.mubr.msk.bf16.gmra.mrb[32].mxu1 %vm341_vm2, %v5955_v34 }
  0xbe   : > { %4181 = vmatprep.mubr.msk.bf16.mxu0 %vm5650_vm1, %v7092_v2  ;;  %4397 = vmatprep.mubr.msk.bf16.mxu1 %vm5650_vm1, %v7092_v2 }
  0xc5   : > { %4182 = vmatmul.mubr.msk.bf16.gmra.mrb[36].mxu0 %vm341_vm2, %v5966_v35  ;;  %4398 = vmatmul.mubr.msk.bf16.gmra.mrb[36].mxu1 %vm341_vm2, %v5966_v35 }
  0xc6   : > { %4185 = vmatprep.mubr.msk.bf16.mxu0 %vm5650_vm1, %v7092_v2  ;;  %4401 = vmatprep.mubr.msk.bf16.mxu1 %vm5650_vm1, %v7092_v2 }
  0xcd   : > { %4186 = vmatmul.mubr.msk.bf16.gmra.mrb[40].mxu0 %vm341_vm2, %v5977_v36  ;;  %4402 = vmatmul.mubr.msk.bf16.gmra.mrb[40].mxu1 %vm341_vm2, %v5977_v36 }
  0xce   : > { %4189 = vmatprep.mubr.msk.bf16.mxu0 %vm5650_vm1, %v7092_v2  ;;  %4405 = vmatprep.mubr.msk.bf16.mxu1 %vm5650_vm1, %v7092_v2 }
  0xd5   : > { %4190 = vmatmul.mubr.msk.bf16.gmra.mrb[44].mxu0 %vm341_vm2, %v5988_v37  ;;  %4406 = vmatmul.mubr.msk.bf16.gmra.mrb[44].mxu1 %vm341_vm2, %v5988_v37 }
  0xd6   : > { %4193 = vmatprep.mubr.msk.bf16.mxu0 %vm5650_vm1, %v7092_v2  ;;  %4409 = vmatprep.mubr.msk.bf16.mxu1 %vm5650_vm1, %v7092_v2 }
  0xdd   : > { %4194 = vmatmul.mubr.msk.bf16.gmra.mrb[48].mxu0 %vm341_vm2, %v5999_v38  ;;  %4410 = vmatmul.mubr.msk.bf16.gmra.mrb[48].mxu1 %vm341_vm2, %v5999_v38 }
  0xde   : > { %4199 = vmatprep.mubr.msk.bf16.mxu0 %vm5650_vm1, %v7092_v2  ;;  %4415 = vmatprep.mubr.msk.bf16.mxu1 %vm5650_vm1, %v7092_v2 }
  0xe5   : > { %4200 = vmatmul.mubr.msk.bf16.vlgmr.msra.gmra.mrb[0].mxu0 %vm341_vm2, %v6016_v41  ;;  %4416 = vmatmul.mubr.msk.bf16.vlgmr.msra.gmra.mrb[0].mxu1 %vm341_vm2, %v6016_v41 }
  0xe6   : > { %4252 = vmatpush3.bf16.msra.mxu0 %v1135_v42  ;;  %4468 = vmatpush3.bf16.msra.mxu1 %v1749_v43 }
  0xe7   : > { %4203 = vmatprep.mubr.msk.bf16.mxu0 %vm5650_vm1, %v7092_v2  ;;  %4419 = vmatprep.mubr.msk.bf16.mxu1 %vm5650_vm1, %v7092_v2 }
  0xe8   : > { %4521 = vmatprep.subr.bf16.mxu0 %v7092_v2  ;;  %4737 = vmatprep.subr.bf16.mxu1 %v7092_v2 }
  0xed   : > { %4204 = vmatmul.mubr.msk.bf16.gmra.mrb[4].mxu0 %vm341_vm2, %v6031_v44  ;;  %4420 = vmatmul.mubr.msk.bf16.gmra.mrb[4].mxu1 %vm341_vm2, %v6031_v44 }
  0xee   : > { %4207 = vmatprep.mubr.msk.bf16.mxu0 %vm5650_vm1, %v7092_v2  ;;  %4423 = vmatprep.mubr.msk.bf16.mxu1 %vm5650_vm1, %v7092_v2 }
  0xf5   : > { %4208 = vmatmul.mubr.msk.bf16.gmra.mrb[8].mxu0 %vm341_vm2, %v6042_v45  ;;  %4424 = vmatmul.mubr.msk.bf16.gmra.mrb[8].mxu1 %vm341_vm2, %v6042_v45 }
  0xf6   : > { %4211 = vmatprep.mubr.msk.bf16.mxu0 %vm5650_vm1, %v7092_v2  ;;  %4427 = vmatprep.mubr.msk.bf16.mxu1 %vm5650_vm1, %v7092_v2 }
  0xfd   : > { %4212 = vmatmul.mubr.msk.bf16.gmra.mrb[12].mxu0 %vm341_vm2, %v6053_v46  ;;  %4428 = vmatmul.mubr.msk.bf16.gmra.mrb[12].mxu1 %vm341_vm2, %v6053_v46 }
  0xfe   : > { %4215 = vmatprep.mubr.msk.bf16.mxu0 %vm5650_vm1, %v7092_v2  ;;  %4431 = vmatprep.mubr.msk.bf16.mxu1 %vm5650_vm1, %v7092_v2 }
 0x105   : > { %4216 = vmatmul.mubr.msk.bf16.gmra.mrb[16].mxu0 %vm341_vm2, %v6064_v47  ;;  %4432 = vmatmul.mubr.msk.bf16.gmra.mrb[16].mxu1 %vm341_vm2, %v6064_v47 }
 0x106   : > { %4219 = vmatprep.mubr.msk.bf16.mxu0 %vm5650_vm1, %v7092_v2  ;;  %4435 = vmatprep.mubr.msk.bf16.mxu1 %vm5650_vm1, %v7092_v2 }
 0x10d   : > { %4220 = vmatmul.mubr.msk.bf16.gmra.mrb[20].mxu0 %vm341_vm2, %v6075_v48  ;;  %4436 = vmatmul.mubr.msk.bf16.gmra.mrb[20].mxu1 %vm341_vm2, %v6075_v48 }
 0x10e   : > { %4223 = vmatprep.mubr.msk.bf16.mxu0 %vm5650_vm1, %v7092_v2  ;;  %4439 = vmatprep.mubr.msk.bf16.mxu1 %vm5650_vm1, %v7092_v2 }
 0x115   : > { %4224 = vmatmul.mubr.msk.bf16.gmra.mrb[24].mxu0 %vm341_vm2, %v6086_v49  ;;  %4440 = vmatmul.mubr.msk.bf16.gmra.mrb[24].mxu1 %vm341_vm2, %v6086_v49 }
 0x116   : > { %4227 = vmatprep.mubr.msk.bf16.mxu0 %vm5650_vm1, %v7092_v2  ;;  %4443 = vmatprep.mubr.msk.bf16.mxu1 %vm5650_vm1, %v7092_v2 }
 0x11d   : > { %4228 = vmatmul.mubr.msk.bf16.gmra.mrb[28].mxu0 %vm341_vm2, %v6097_v50  ;;  %4444 = vmatmul.mubr.msk.bf16.gmra.mrb[28].mxu1 %vm341_vm2, %v6097_v50 }
 0x11e   : > { %4231 = vmatprep.mubr.msk.bf16.mxu0 %vm5650_vm1, %v7092_v2  ;;  %4447 = vmatprep.mubr.msk.bf16.mxu1 %vm5650_vm1, %v7092_v2 }
 0x125   : > { %4232 = vmatmul.mubr.msk.bf16.gmra.mrb[32].mxu0 %vm341_vm2, %v6108_v51  ;;  %4448 = vmatmul.mubr.msk.bf16.gmra.mrb[32].mxu1 %vm341_vm2, %v6108_v51 }
 0x126   : > { %4235 = vmatprep.mubr.msk.bf16.mxu0 %vm5650_vm1, %v7092_v2  ;;  %4451 = vmatprep.mubr.msk.bf16.mxu1 %vm5650_vm1, %v7092_v2 }
 0x12d   : > { %4236 = vmatmul.mubr.msk.bf16.gmra.mrb[36].mxu0 %vm341_vm2, %v6119_v52  ;;  %4452 = vmatmul.mubr.msk.bf16.gmra.mrb[36].mxu1 %vm341_vm2, %v6119_v52 }
 0x12e   : > { %4239 = vmatprep.mubr.msk.bf16.mxu0 %vm5650_vm1, %v7092_v2  ;;  %4455 = vmatprep.mubr.msk.bf16.mxu1 %vm5650_vm1, %v7092_v2 }
 0x135   : > { %4240 = vmatmul.mubr.msk.bf16.gmra.mrb[40].mxu0 %vm341_vm2, %v6130_v53  ;;  %4456 = vmatmul.mubr.msk.bf16.gmra.mrb[40].mxu1 %vm341_vm2, %v6130_v53 }
 0x136   : > { %4243 = vmatprep.mubr.msk.bf16.mxu0 %vm5650_vm1, %v7092_v2  ;;  %4459 = vmatprep.mubr.msk.bf16.mxu1 %vm5650_vm1, %v7092_v2 }
 0x13d   : > { %4244 = vmatmul.mubr.msk.bf16.gmra.mrb[44].mxu0 %vm341_vm2, %v6141_v54  ;;  %4460 = vmatmul.mubr.msk.bf16.gmra.mrb[44].mxu1 %vm341_vm2, %v6141_v54 }
 0x13e   : > { %4247 = vmatprep.mubr.msk.bf16.mxu0 %vm5650_vm1, %v7092_v2  ;;  %4463 = vmatprep.mubr.msk.bf16.mxu1 %vm5650_vm1, %v7092_v2 }
 0x145   : > { %4248 = vmatmul.mubr.msk.bf16.gmra.mrb[48].mxu0 %vm341_vm2, %v6152_v55  ;;  %4464 = vmatmul.mubr.msk.bf16.gmra.mrb[48].mxu1 %vm341_vm2, %v6152_v55 }
 0x146   : > { %4253 = vmatprep.mubr.msk.bf16.mxu0 %vm5650_vm1, %v7092_v2  ;;  %4469 = vmatprep.mubr.msk.bf16.mxu1 %vm5650_vm1, %v7092_v2 }
 0x14d   : > { %4254 = vmatmul.mubr.msk.bf16.vlgmr.msra.gmra.mrb[0].mxu0 %vm341_vm2, %v6169_v58  ;;  %4470 = vmatmul.mubr.msk.bf16.vlgmr.msra.gmra.mrb[0].mxu1 %vm341_vm2, %v6169_v58 }
 0x14e   : > { %4522 = vmatpush3.bf16.msra.mxu0 %v1942_v59  ;;  %4738 = vmatpush3.bf16.msra.mxu1 %v2581_v60 }
 0x14f   : > { %4257 = vmatprep.mubr.msk.bf16.mxu0 %vm5650_vm1, %v7092_v2  ;;  %4473 = vmatprep.mubr.msk.bf16.mxu1 %vm5650_vm1, %v7092_v2 }
 0x150   : > { %4575 = vmatprep.subr.bf16.mxu0 %v7092_v2  ;;  %4791 = vmatprep.subr.bf16.mxu1 %v7092_v2 }
 0x155   : > { %4258 = vmatmul.mubr.msk.bf16.gmra.mrb[4].mxu0 %vm341_vm2, %v6184_v61  ;;  %4474 = vmatmul.mubr.msk.bf16.gmra.mrb[4].mxu1 %vm341_vm2, %v6184_v61 }
 0x156   : > { %4261 = vmatprep.mubr.msk.bf16.mxu0 %vm5650_vm1, %v7092_v2  ;;  %4477 = vmatprep.mubr.msk.bf16.mxu1 %vm5650_vm1, %v7092_v2 }
 0x15d   : > { %4262 = vmatmul.mubr.msk.bf16.gmra.mrb[8].mxu0 %vm341_vm2, %v6195_v62  ;;  %4478 = vmatmul.mubr.msk.bf16.gmra.mrb[8].mxu1 %vm341_vm2, %v6195_v62 }
 0x15e   : > { %4265 = vmatprep.mubr.msk.bf16.mxu0 %vm5650_vm1, %v7092_v2  ;;  %4481 = vmatprep.mubr.msk.bf16.mxu1 %vm5650_vm1, %v7092_v2 }
 0x165   : > { %4266 = vmatmul.mubr.msk.bf16.gmra.mrb[12].mxu0 %vm341_vm2, %v6206_v63  ;;  %4482 = vmatmul.mubr.msk.bf16.gmra.mrb[12].mxu1 %vm341_vm2, %v6206_v63 }
 0x166   : > { %4269 = vmatprep.mubr.msk.bf16.mxu0 %vm5650_vm1, %v7092_v2  ;;  %4485 = vmatprep.mubr.msk.bf16.mxu1 %vm5650_vm1, %v7092_v2 }
 0x16d   : > { %4270 = vmatmul.mubr.msk.bf16.gmra.mrb[16].mxu0 %vm341_vm2, %v6217_v0  ;;  %4486 = vmatmul.mubr.msk.bf16.gmra.mrb[16].mxu1 %vm341_vm2, %v6217_v0 }
 0x16e   : > { %4273 = vmatprep.mubr.msk.bf16.mxu0 %vm5650_vm1, %v7092_v2  ;;  %4489 = vmatprep.mubr.msk.bf16.mxu1 %vm5650_vm1, %v7092_v2 }
 0x175   : > { %4274 = vmatmul.mubr.msk.bf16.gmra.mrb[20].mxu0 %vm341_vm2, %v6228_v1  ;;  %4490 = vmatmul.mubr.msk.bf16.gmra.mrb[20].mxu1 %vm341_vm2, %v6228_v1 }
 0x176   : > { %4277 = vmatprep.mubr.msk.bf16.mxu0 %vm5650_vm1, %v7092_v2  ;;  %4493 = vmatprep.mubr.msk.bf16.mxu1 %vm5650_vm1, %v7092_v2 }
 0x17d   : > { %4278 = vmatmul.mubr.msk.bf16.gmra.mrb[24].mxu0 %vm341_vm2, %v6239_v3  ;;  %4494 = vmatmul.mubr.msk.bf16.gmra.mrb[24].mxu1 %vm341_vm2, %v6239_v3 }
 0x17e   : > { %4281 = vmatprep.mubr.msk.bf16.mxu0 %vm5650_vm1, %v7092_v2  ;;  %4497 = vmatprep.mubr.msk.bf16.mxu1 %vm5650_vm1, %v7092_v2 }
 0x185   : > { %4282 = vmatmul.mubr.msk.bf16.gmra.mrb[28].mxu0 %vm341_vm2, %v6250_v4  ;;  %4498 = vmatmul.mubr.msk.bf16.gmra.mrb[28].mxu1 %vm341_vm2, %v6250_v4 }
 0x186   : > { %4285 = vmatprep.mubr.msk.bf16.mxu0 %vm5650_vm1, %v7092_v2  ;;  %4501 = vmatprep.mubr.msk.bf16.mxu1 %vm5650_vm1, %v7092_v2 }
 0x18d   : > { %4286 = vmatmul.mubr.msk.bf16.gmra.mrb[32].mxu0 %vm341_vm2, %v6261_v5  ;;  %4502 = vmatmul.mubr.msk.bf16.gmra.mrb[32].mxu1 %vm341_vm2, %v6261_v5 }
 0x18e   : > { %4289 = vmatprep.mubr.msk.bf16.mxu0 %vm5650_vm1, %v7092_v2  ;;  %4505 = vmatprep.mubr.msk.bf16.mxu1 %vm5650_vm1, %v7092_v2 }
 0x195   : > { %4290 = vmatmul.mubr.msk.bf16.gmra.mrb[36].mxu0 %vm341_vm2, %v6272_v6  ;;  %4506 = vmatmul.mubr.msk.bf16.gmra.mrb[36].mxu1 %vm341_vm2, %v6272_v6 }
 0x196   : > { %4293 = vmatprep.mubr.msk.bf16.mxu0 %vm5650_vm1, %v7092_v2  ;;  %4509 = vmatprep.mubr.msk.bf16.mxu1 %vm5650_vm1, %v7092_v2 }
 0x19d   : > { %4294 = vmatmul.mubr.msk.bf16.gmra.mrb[40].mxu0 %vm341_vm2, %v6283_v7  ;;  %4510 = vmatmul.mubr.msk.bf16.gmra.mrb[40].mxu1 %vm341_vm2, %v6283_v7 }
 0x19e   : > { %4297 = vmatprep.mubr.msk.bf16.mxu0 %vm5650_vm1, %v7092_v2  ;;  %4513 = vmatprep.mubr.msk.bf16.mxu1 %vm5650_vm1, %v7092_v2 }
 0x1a5   : > { %4298 = vmatmul.mubr.msk.bf16.gmra.mrb[44].mxu0 %vm341_vm2, %v6294_v9  ;;  %4514 = vmatmul.mubr.msk.bf16.gmra.mrb[44].mxu1 %vm341_vm2, %v6294_v9 }
 0x1a6   : > { %4301 = vmatprep.mubr.msk.bf16.mxu0 %vm5650_vm1, %v7092_v2  ;;  %4517 = vmatprep.mubr.msk.bf16.mxu1 %vm5650_vm1, %v7092_v2 }
 0x1ad   : > { %4302 = vmatmul.mubr.msk.bf16.gmra.mrb[48].mxu0 %vm341_vm2, %v6305_v22  ;;  %4518 = vmatmul.mubr.msk.bf16.gmra.mrb[48].mxu1 %vm341_vm2, %v6305_v22 }
 0x1ae   : > { %4523 = vmatprep.mubr.msk.bf16.mxu0 %vm5650_vm1, %v7092_v2  ;;  %4739 = vmatprep.mubr.msk.bf16.mxu1 %vm5650_vm1, %v7092_v2 }
 0x1b5   : > { %4524 = vmatmul.mubr.msk.bf16.vlgmr.msra.gmra.mrb[52].mxu0 %vm341_vm2, %v5711_v8  ;;  %4740 = vmatmul.mubr.msk.bf16.vlgmr.msra.gmra.mrb[52].mxu1 %vm341_vm2, %v5711_v8  ;;  %v3728_v8 = vld [vmem:[%s7069_s1 + $0x14] sm:$0x3] }
 0x1b6   : > { %4576 = vmatpush3.bf16.msra.mxu0 %v2081_v26  ;;  %4792 = vmatpush3.bf16.msra.mxu1 %v2720_v39 }
 0x1b7   : > { %4527 = vmatprep.mubr.msk.bf16.mxu0 %vm5650_vm1, %v7092_v2  ;;  %4743 = vmatprep.mubr.msk.bf16.mxu1 %vm5650_vm1, %v7092_v2 }
 0x1b8   : > { %4629 = vmatprep.subr.bf16.mxu0 %v7092_v2  ;;  %4845 = vmatprep.subr.bf16.mxu1 %v7092_v2 }
 0x1bd   : > { %4528 = vmatmul.mubr.msk.bf16.gmra.mrb[56].mxu0 %vm341_vm2, %v5725_v10  ;;  %4744 = vmatmul.mubr.msk.bf16.gmra.mrb[56].mxu1 %vm341_vm2, %v5725_v10  ;;  %v3784_v10 = vld [vmem:[%s7069_s1 + $0x1c] sm:$0x3] }
 0x1be   : > { %4531 = vmatprep.mubr.msk.bf16.mxu0 %vm5650_vm1, %v7092_v2  ;;  %4747 = vmatprep.mubr.msk.bf16.mxu1 %vm5650_vm1, %v7092_v2 }
 0x1c5   : > { %4532 = vmatmul.mubr.msk.bf16.gmra.mrb[60].mxu0 %vm341_vm2, %v5736_v11  ;;  %4748 = vmatmul.mubr.msk.bf16.gmra.mrb[60].mxu1 %vm341_vm2, %v5736_v11  ;;  %v2222_v11 = vsel %vm381_vm0, %v3728_v8, 0 }
 0x1c6   : > { %4535 = vmatprep.mubr.msk.bf16.mxu0 %vm5650_vm1, %v7092_v2  ;;  %4751 = vmatprep.mubr.msk.bf16.mxu1 %vm5650_vm1, %v7092_v2 }
 0x1cd   : > { %4536 = vmatmul.mubr.msk.bf16.gmra.mrb[64].mxu0 %vm341_vm2, %v5747_v12  ;;  %4752 = vmatmul.mubr.msk.bf16.gmra.mrb[64].mxu1 %vm341_vm2, %v5747_v12  ;;  %v2861_v12 = vsel %vm381_vm0, %v3784_v10, 0 }
 0x1ce   : > { %4539 = vmatprep.mubr.msk.bf16.mxu0 %vm5650_vm1, %v7092_v2  ;;  %4755 = vmatprep.mubr.msk.bf16.mxu1 %vm5650_vm1, %v7092_v2 }
 0x1d5   : > { %4540 = vmatmul.mubr.msk.bf16.gmra.mrb[68].mxu0 %vm341_vm2, %v5758_v13  ;;  %4756 = vmatmul.mubr.msk.bf16.gmra.mrb[68].mxu1 %vm341_vm2, %v5758_v13 }
 0x1d6   : > { %4543 = vmatprep.mubr.msk.bf16.mxu0 %vm5650_vm1, %v7092_v2  ;;  %4759 = vmatprep.mubr.msk.bf16.mxu1 %vm5650_vm1, %v7092_v2 }
 0x1dd   : > { %4544 = vmatmul.mubr.msk.bf16.gmra.mrb[72].mxu0 %vm341_vm2, %v5769_v14  ;;  %4760 = vmatmul.mubr.msk.bf16.gmra.mrb[72].mxu1 %vm341_vm2, %v5769_v14 }
 0x1de   : > { %4547 = vmatprep.mubr.msk.bf16.mxu0 %vm5650_vm1, %v7092_v2  ;;  %4763 = vmatprep.mubr.msk.bf16.mxu1 %vm5650_vm1, %v7092_v2 }
 0x1e5   : > { %4548 = vmatmul.mubr.msk.bf16.gmra.mrb[76].mxu0 %vm341_vm2, %v5780_v15  ;;  %4764 = vmatmul.mubr.msk.bf16.gmra.mrb[76].mxu1 %vm341_vm2, %v5780_v15 }
 0x1e6   : > { %4551 = vmatprep.mubr.msk.bf16.mxu0 %vm5650_vm1, %v7092_v2  ;;  %4767 = vmatprep.mubr.msk.bf16.mxu1 %vm5650_vm1, %v7092_v2 }
 0x1ed   : > { %4552 = vmatmul.mubr.msk.bf16.gmra.mrb[80].mxu0 %vm341_vm2, %v5791_v16  ;;  %4768 = vmatmul.mubr.msk.bf16.gmra.mrb[80].mxu1 %vm341_vm2, %v5791_v16 }
 0x1ee   : > { %4555 = vmatprep.mubr.msk.bf16.mxu0 %vm5650_vm1, %v7092_v2  ;;  %4771 = vmatprep.mubr.msk.bf16.mxu1 %vm5650_vm1, %v7092_v2 }
 0x1f5   : > { %4556 = vmatmul.mubr.msk.bf16.gmra.mrb[84].mxu0 %vm341_vm2, %v5802_v17  ;;  %4772 = vmatmul.mubr.msk.bf16.gmra.mrb[84].mxu1 %vm341_vm2, %v5802_v17 }
 0x1f6   : > { %4559 = vmatprep.mubr.msk.bf16.mxu0 %vm5650_vm1, %v7092_v2  ;;  %4775 = vmatprep.mubr.msk.bf16.mxu1 %vm5650_vm1, %v7092_v2 }
 0x1fd   : > { %4560 = vmatmul.mubr.msk.bf16.gmra.mrb[88].mxu0 %vm341_vm2, %v5813_v18  ;;  %4776 = vmatmul.mubr.msk.bf16.gmra.mrb[88].mxu1 %vm341_vm2, %v5813_v18 }
 0x1fe   : > { %4563 = vmatprep.mubr.msk.bf16.mxu0 %vm5650_vm1, %v7092_v2  ;;  %4779 = vmatprep.mubr.msk.bf16.mxu1 %vm5650_vm1, %v7092_v2 }
 0x205   : > { %4564 = vmatmul.mubr.msk.bf16.gmra.mrb[92].mxu0 %vm341_vm2, %v5824_v19  ;;  %4780 = vmatmul.mubr.msk.bf16.gmra.mrb[92].mxu1 %vm341_vm2, %v5824_v19 }
 0x206   : > { %4567 = vmatprep.mubr.msk.bf16.mxu0 %vm5650_vm1, %v7092_v2  ;;  %4783 = vmatprep.mubr.msk.bf16.mxu1 %vm5650_vm1, %v7092_v2 }
 0x20d   : > { %4568 = vmatmul.mubr.msk.bf16.gmra.mrb[96].mxu0 %vm341_vm2, %v5835_v20  ;;  %4784 = vmatmul.mubr.msk.bf16.gmra.mrb[96].mxu1 %vm341_vm2, %v5835_v20 }
 0x20e   : > { %4571 = vmatprep.mubr.msk.bf16.mxu0 %vm5650_vm1, %v7092_v2  ;;  %4787 = vmatprep.mubr.msk.bf16.mxu1 %vm5650_vm1, %v7092_v2 }
 0x215   : > { %4572 = vmatmul.mubr.msk.bf16.gmra.mrb[100].mxu0 %vm341_vm2, %v5846_v21  ;;  %4788 = vmatmul.mubr.msk.bf16.gmra.mrb[100].mxu1 %vm341_vm2, %v5846_v21 }
 0x216   : > { %4577 = vmatprep.mubr.msk.bf16.mxu0 %vm5650_vm1, %v7092_v2  ;;  %4793 = vmatprep.mubr.msk.bf16.mxu1 %vm5650_vm1, %v7092_v2 }
 0x21d   : > { %4578 = vmatmul.mubr.msk.bf16.vlgmr.msra.gmra.mrb[52].mxu0 %vm341_vm2, %v5863_v24  ;;  %4794 = vmatmul.mubr.msk.bf16.vlgmr.msra.gmra.mrb[52].mxu1 %vm341_vm2, %v5863_v24 }
 0x21e   : > { %4630 = vmatpush3.bf16.msra.mxu0 %v2222_v11  ;;  %4846 = vmatpush3.bf16.msra.mxu1 %v2861_v12 }
 0x21f   : > { %4581 = vmatprep.mubr.msk.bf16.mxu0 %vm5650_vm1, %v7092_v2  ;;  %4797 = vmatprep.mubr.msk.bf16.mxu1 %vm5650_vm1, %v7092_v2 }
 0x220   : > { %v6445_v13 = vpop.f32.mrb[0].mxu0  ;;  %v6447_v14 = vpop.f32.mrb[0].mxu1  ;;  %4683 = vmatprep.subr.bf16.mxu0 %v7092_v2  ;;  %4899 = vmatprep.subr.bf16.mxu1 %v7092_v2 }
 0x221   : > { %v4255_v16 = vpop.f32.mrb[1].mxu0  ;;  %v4471_v17 = vpop.f32.mrb[1].mxu1 }
 0x222   : > { %v6453_v18 = vpop.f32.mrb[2].mxu0  ;;  %v6455_v19 = vpop.f32.mrb[2].mxu1 }
 0x223   : > { %v4256_v21 = vpop.f32.mrb[3].mxu0  ;;  %v4472_v24 = vpop.f32.mrb[3].mxu1 }
 0x225   : > { %4582 = vmatmul.mubr.msk.bf16.gmra.mrb[56].mxu0 %vm341_vm2, %v5878_v27  ;;  %4798 = vmatmul.mubr.msk.bf16.gmra.mrb[56].mxu1 %vm341_vm2, %v5878_v27 }
 0x226   : > { %4585 = vmatprep.mubr.msk.bf16.mxu0 %vm5650_vm1, %v7092_v2  ;;  %4801 = vmatprep.mubr.msk.bf16.mxu1 %vm5650_vm1, %v7092_v2 }
 0x228   : > { %v6467_v40 = vpop.f32.mrb[4].mxu0  ;;  %v6469_v42 = vpop.f32.mrb[4].mxu1 }
 0x229   : > { %v4259_v56 = vpop.f32.mrb[5].mxu0  ;;  %v4475_v57 = vpop.f32.mrb[5].mxu1 }
 0x22a   : > { %v6473_v59 = vpop.f32.mrb[6].mxu0  ;;  %v6475_v60 = vpop.f32.mrb[6].mxu1 }
 0x22b   : > { %v4260_v23 = vpop.f32.mrb[7].mxu0  ;;  %v4476_v25 = vpop.f32.mrb[7].mxu1 }
 0x22d   : > { %4586 = vmatmul.mubr.msk.bf16.gmra.mrb[60].mxu0 %vm341_vm2, %v5889_v28  ;;  %4802 = vmatmul.mubr.msk.bf16.gmra.mrb[60].mxu1 %vm341_vm2, %v5889_v28 }
 0x22e   : > { %4589 = vmatprep.mubr.msk.bf16.mxu0 %vm5650_vm1, %v7092_v2  ;;  %4805 = vmatprep.mubr.msk.bf16.mxu1 %vm5650_vm1, %v7092_v2 }
 0x230   : > { %v6487_v26 = vpop.f32.mrb[8].mxu0  ;;  %v6489_v39 = vpop.f32.mrb[8].mxu1 }
 0x231   : > { %v4263_v10 = vpop.f32.mrb[9].mxu0  ;;  %v4479_v11 = vpop.f32.mrb[9].mxu1 }
 0x232   : > { %v6493_v12 = vpop.f32.mrb[10].mxu0  ;;  %v6495_v16 = vpop.f32.mrb[10].mxu1 }
 0x233   : > { %v4264_v17 = vpop.f32.mrb[11].mxu0  ;;  %v4480_v21 = vpop.f32.mrb[11].mxu1 }
 0x235   : > { %4590 = vmatmul.mubr.msk.bf16.gmra.mrb[64].mxu0 %vm341_vm2, %v5900_v29  ;;  %4806 = vmatmul.mubr.msk.bf16.gmra.mrb[64].mxu1 %vm341_vm2, %v5900_v29 }
 0x236   : > { %4593 = vmatprep.mubr.msk.bf16.mxu0 %vm5650_vm1, %v7092_v2  ;;  %4809 = vmatprep.mubr.msk.bf16.mxu1 %vm5650_vm1, %v7092_v2 }
 0x238   : > { %v6507_v24 = vpop.f32.mrb[12].mxu0  ;;  %v6509_v56 = vpop.f32.mrb[12].mxu1 }
 0x239   : > { %v4267_v23 = vpop.f32.mrb[13].mxu0  ;;  %v4483_v25 = vpop.f32.mrb[13].mxu1 }
 0x23a   : > { %v6513_v10 = vpop.f32.mrb[14].mxu0  ;;  %v6515_v11 = vpop.f32.mrb[14].mxu1 }
 0x23b   : > { %v4268_v17 = vpop.f32.mrb[15].mxu0  ;;  %v4484_v21 = vpop.f32.mrb[15].mxu1 }
 0x23d   : > { %4594 = vmatmul.mubr.msk.bf16.gmra.mrb[68].mxu0 %vm341_vm2, %v5911_v30  ;;  %4810 = vmatmul.mubr.msk.bf16.gmra.mrb[68].mxu1 %vm341_vm2, %v5911_v30 }
 0x23e   : > { %4597 = vmatprep.mubr.msk.bf16.mxu0 %vm5650_vm1, %v7092_v2  ;;  %4813 = vmatprep.mubr.msk.bf16.mxu1 %vm5650_vm1, %v7092_v2 }
 0x240   : > { %v6527_v23 = vpop.f32.mrb[16].mxu0  ;;  %v6529_v25 = vpop.f32.mrb[16].mxu1 }
 0x241   : > { %v4271_v21 = vpop.f32.mrb[17].mxu0  ;;  %v4487_v29 = vpop.f32.mrb[17].mxu1 }
 0x242   : > { %v6533_v57 = vpop.f32.mrb[18].mxu0  ;;  %v6535_v28 = vpop.f32.mrb[18].mxu1 }
 0x243   : > { %v4272_v8 = vpop.f32.mrb[19].mxu0  ;;  %v4488_v27 = vpop.f32.mrb[19].mxu1 }
 0x245   : > { %4598 = vmatmul.mubr.msk.bf16.gmra.mrb[72].mxu0 %vm341_vm2, %v5922_v31  ;;  %4814 = vmatmul.mubr.msk.bf16.gmra.mrb[72].mxu1 %vm341_vm2, %v5922_v31 }
 0x246   : > { %4601 = vmatprep.mubr.msk.bf16.mxu0 %vm5650_vm1, %v7092_v2  ;;  %4817 = vmatprep.mubr.msk.bf16.mxu1 %vm5650_vm1, %v7092_v2 }
 0x248   : > { %v6547_v29 = vpop.f32.mrb[20].mxu0  ;;  %v6549_v21 = vpop.f32.mrb[20].mxu1 }
 0x249   : > { %7098 = vst [vmem:[#allocation2_spill] sm:$0xff] %v6549_v21  ;;  %v4275_v27 = vpop.f32.mrb[21].mxu0  ;;  %v4491_v30 = vpop.f32.mrb[21].mxu1 }
 0x24a   : > { %v6553_v17 = vpop.f32.mrb[22].mxu0  ;;  %v6555_v43 = vpop.f32.mrb[22].mxu1 }
 0x24b   : > { %7099 = vst [vmem:[#allocation3_spill] sm:$0xff] %v6553_v17  ;;  %7100 = vst [vmem:[#allocation4_spill] sm:$0xff] %v6555_v43  ;;  %v4276_v20 = vpop.f32.mrb[23].mxu0  ;;  %v4492_v15 = vpop.f32.mrb[23].mxu1 }
 0x24d   : > { %4602 = vmatmul.mubr.msk.bf16.gmra.mrb[76].mxu0 %vm341_vm2, %v5933_v32  ;;  %4818 = vmatmul.mubr.msk.bf16.gmra.mrb[76].mxu1 %vm341_vm2, %v5933_v32 }
 0x24e   : > { %4605 = vmatprep.mubr.msk.bf16.mxu0 %vm5650_vm1, %v7092_v2  ;;  %4821 = vmatprep.mubr.msk.bf16.mxu1 %vm5650_vm1, %v7092_v2 }
 0x250   : > { %v6567_v30 = vpop.f32.mrb[24].mxu0  ;;  %v6569_v27 = vpop.f32.mrb[24].mxu1 }
 0x251   : > { %7101 = vst [vmem:[#allocation5_spill] sm:$0xff] %v6569_v27  ;;  %v4279_v15 = vpop.f32.mrb[25].mxu0  ;;  %v4495_v31 = vpop.f32.mrb[25].mxu1 }
 0x252   : > { %v6573_v8 = vpop.f32.mrb[26].mxu0  ;;  %v6575_v43 = vpop.f32.mrb[26].mxu1 }
 0x253   : > { %7102 = vst [vmem:[#allocation6_spill] sm:$0xff] %v6573_v8  ;;  %7103 = vst [vmem:[#allocation7_spill] sm:$0xff] %v6575_v43  ;;  %v4280_v17 = vpop.f32.mrb[27].mxu0  ;;  %v4496_v21 = vpop.f32.mrb[27].mxu1 }
 0x255   : > { %4606 = vmatmul.mubr.msk.bf16.gmra.mrb[80].mxu0 %vm341_vm2, %v5944_v33  ;;  %4822 = vmatmul.mubr.msk.bf16.gmra.mrb[80].mxu1 %vm341_vm2, %v5944_v33 }
 0x256   : > { %4609 = vmatprep.mubr.msk.bf16.mxu0 %vm5650_vm1, %v7092_v2  ;;  %4825 = vmatprep.mubr.msk.bf16.mxu1 %vm5650_vm1, %v7092_v2 }
 0x258   : > { %v6587_v31 = vpop.f32.mrb[28].mxu0  ;;  %v6589_v15 = vpop.f32.mrb[28].mxu1 }
 0x259   : > { %7104 = vst [vmem:[#allocation8_spill] sm:$0xff] %v6589_v15  ;;  %v4283_v21 = vpop.f32.mrb[29].mxu0  ;;  %v4499_v32 = vpop.f32.mrb[29].mxu1 }
 0x25a   : > { %v6593_v20 = vpop.f32.mrb[30].mxu0  ;;  %v6595_v43 = vpop.f32.mrb[30].mxu1 }
 0x25b   : > { %7105 = vst [vmem:[#allocation9_spill] sm:$0xff] %v6593_v20  ;;  %7106 = vst [vmem:[#allocation10_spill] sm:$0xff] %v6595_v43  ;;  %v4284_v8 = vpop.f32.mrb[31].mxu0  ;;  %v4500_v27 = vpop.f32.mrb[31].mxu1 }
 0x25d   : > { %4610 = vmatmul.mubr.msk.bf16.gmra.mrb[84].mxu0 %vm341_vm2, %v5955_v34  ;;  %4826 = vmatmul.mubr.msk.bf16.gmra.mrb[84].mxu1 %vm341_vm2, %v5955_v34 }
 0x25e   : > { %4613 = vmatprep.mubr.msk.bf16.mxu0 %vm5650_vm1, %v7092_v2  ;;  %4829 = vmatprep.mubr.msk.bf16.mxu1 %vm5650_vm1, %v7092_v2 }
 0x260   : > { %v6607_v32 = vpop.f32.mrb[32].mxu0  ;;  %v6609_v21 = vpop.f32.mrb[32].mxu1 }
 0x261   : > { %7107 = vst [vmem:[#allocation11_spill] sm:$0xff] %v6609_v21  ;;  %v4287_v27 = vpop.f32.mrb[33].mxu0  ;;  %v4503_v33 = vpop.f32.mrb[33].mxu1 }
 0x262   : > { %v6613_v17 = vpop.f32.mrb[34].mxu0  ;;  %v6615_v43 = vpop.f32.mrb[34].mxu1 }
 0x263   : > { %7108 = vst [vmem:[#allocation12_spill] sm:$0xff] %v6613_v17  ;;  %7109 = vst [vmem:[#allocation13_spill] sm:$0xff] %v6615_v43  ;;  %v4288_v20 = vpop.f32.mrb[35].mxu0  ;;  %v4504_v15 = vpop.f32.mrb[35].mxu1 }
 0x265   : > { %4614 = vmatmul.mubr.msk.bf16.gmra.mrb[88].mxu0 %vm341_vm2, %v5966_v35  ;;  %4830 = vmatmul.mubr.msk.bf16.gmra.mrb[88].mxu1 %vm341_vm2, %v5966_v35 }
 0x266   : > { %4617 = vmatprep.mubr.msk.bf16.mxu0 %vm5650_vm1, %v7092_v2  ;;  %4833 = vmatprep.mubr.msk.bf16.mxu1 %vm5650_vm1, %v7092_v2 }
 0x268   : > { %v6627_v33 = vpop.f32.mrb[36].mxu0  ;;  %v6629_v27 = vpop.f32.mrb[36].mxu1 }
 0x269   : > { %7110 = vst [vmem:[#allocation14_spill] sm:$0xff] %v6627_v33  ;;  %7111 = vst [vmem:[#allocation15_spill] sm:$0xff] %v6629_v27  ;;  %v4291_v15 = vpop.f32.mrb[37].mxu0  ;;  %v4507_v34 = vpop.f32.mrb[37].mxu1  ;;  %v7122_v33 = vmov 0.0  }
 0x26a   : > { %v6633_v8 = vpop.f32.mrb[38].mxu0  ;;  %v6635_v43 = vpop.f32.mrb[38].mxu1 }
 0x26b   : > { %7112 = vst [vmem:[#allocation16_spill] sm:$0xff] %v6633_v8  ;;  %7113 = vst [vmem:[#allocation17_spill] sm:$0xff] %v6635_v43  ;;  %v4292_v17 = vpop.f32.mrb[39].mxu0  ;;  %v4508_v21 = vpop.f32.mrb[39].mxu1 }
 0x26d   : > { %4618 = vmatmul.mubr.msk.bf16.gmra.mrb[92].mxu0 %vm341_vm2, %v5977_v36  ;;  %4834 = vmatmul.mubr.msk.bf16.gmra.mrb[92].mxu1 %vm341_vm2, %v5977_v36 }
 0x26e   : > { %4621 = vmatprep.mubr.msk.bf16.mxu0 %vm5650_vm1, %v7092_v2  ;;  %4837 = vmatprep.mubr.msk.bf16.mxu1 %vm5650_vm1, %v7092_v2 }
 0x270   : > { %v6647_v34 = vpop.f32.mrb[40].mxu0  ;;  %v6649_v15 = vpop.f32.mrb[40].mxu1 }
 0x271   : > { %7114 = vst [vmem:[#allocation18_spill] sm:$0xff] %v6647_v34  ;;  %7115 = vst [vmem:[#allocation19_spill] sm:$0xff] %v6649_v15  ;;  %v4295_v21 = vpop.f32.mrb[41].mxu0  ;;  %v4511_v35 = vpop.f32.mrb[41].mxu1 }
 0x272   : > { %v6653_v20 = vpop.f32.mrb[42].mxu0  ;;  %v6655_v43 = vpop.f32.mrb[42].mxu1 }
 0x273   : > { %7116 = vst [vmem:[#allocation20_spill] sm:$0xff] %v6653_v20  ;;  %7117 = vst [vmem:[#allocation21_spill] sm:$0xff] %v6655_v43  ;;  %v4296_v8 = vpop.f32.mrb[43].mxu0  ;;  %v4512_v27 = vpop.f32.mrb[43].mxu1 }
 0x275   : > { %4622 = vmatmul.mubr.msk.bf16.gmra.mrb[96].mxu0 %vm341_vm2, %v5988_v37  ;;  %4838 = vmatmul.mubr.msk.bf16.gmra.mrb[96].mxu1 %vm341_vm2, %v5988_v37 }
 0x276   : > { %4625 = vmatprep.mubr.msk.bf16.mxu0 %vm5650_vm1, %v7092_v2  ;;  %4841 = vmatprep.mubr.msk.bf16.mxu1 %vm5650_vm1, %v7092_v2 }
 0x278   : > { %v6667_v35 = vpop.f32.mrb[44].mxu0  ;;  %v6669_v21 = vpop.f32.mrb[44].mxu1 }
 0x279   : > { %7118 = vst [vmem:[#allocation22_spill] sm:$0xff] %v6667_v35  ;;  %7119 = vst [vmem:[#allocation23_spill] sm:$0xff] %v6669_v21  ;;  %v4299_v27 = vpop.f32.mrb[45].mxu0  ;;  %v4515_v36 = vpop.f32.mrb[45].mxu1 }
 0x27a   : > { %v6673_v17 = vpop.f32.mrb[46].mxu0  ;;  %v6675_v43 = vpop.f32.mrb[46].mxu1 }
 0x27b   : > { %7120 = vst [vmem:[#allocation24_spill] sm:$0xff] %v6673_v17  ;;  %7121 = vst [vmem:[#allocation25_spill] sm:$0xff] %v6675_v43  ;;  %v4300_v20 = vpop.f32.mrb[47].mxu0  ;;  %v4516_v15 = vpop.f32.mrb[47].mxu1 }
 0x27c   : > { %v3742_v20 = vld [vmem:[%s7069_s1 + $0x16] sm:$0x3]  ;;  %v3798_v15 = vld [vmem:[%s7069_s1 + $0x1e] sm:$0x3] }
 0x27d   : > { %4626 = vmatmul.mubr.msk.bf16.gmra.mrb[100].mxu0 %vm341_vm2, %v5999_v38  ;;  %4842 = vmatmul.mubr.msk.bf16.gmra.mrb[100].mxu1 %vm341_vm2, %v5999_v38  ;;  %v2388_v35 = vsel %vm381_vm0, %v3742_v20, 0  ;;  %v3027_v34 = vsel %vm381_vm0, %v3798_v15, 0 }
 0x27e   : > { %4631 = vmatprep.mubr.msk.bf16.mxu0 %vm5650_vm1, %v7092_v2  ;;  %4847 = vmatprep.mubr.msk.bf16.mxu1 %vm5650_vm1, %v7092_v2 }
 0x280   : > { %v6687_v36 = vpop.f32.mrb[48].mxu0  ;;  %v6689_v27 = vpop.f32.mrb[48].mxu1 }
 0x281   : > { %v1936_v38 = vmax.f32 %v6687_v36, %v6689_v27  ;;  %v4303_v37 = vpop.f32.mrb[49].mxu0  ;;  %v4519_v8 = vpop.f32.mrb[49].mxu1 }
 0x282   : > { %v1270_v43 = vpop.f32.mrb[50].mxu0  ;;  %v1884_v17 = vpop.f32.mrb[50].mxu1 }
 0x283   : > { %v4304_v2 = vpop.f32.mrb[51].mxu0  ;;  %v4520_v21 = vpop.f32.mrb[51].mxu1 }
 0x285   : > { %4632 = vmatmul.mubr.msk.bf16.vlgmr.msra.gmra.mrb[52].mxu0 %vm341_vm2, %v6016_v41  ;;  %4848 = vmatmul.mubr.msk.bf16.vlgmr.msra.gmra.mrb[52].mxu1 %vm341_vm2, %v6016_v41 }
 0x286   : > { %4684 = vmatpush3.bf16.msra.mxu0 %v2388_v35  ;;  %4900 = vmatpush3.bf16.msra.mxu1 %v3027_v34 }
 0x287   : > { %4635 = vmatprep.mubr.msk.bf16.mxu0 %vm5650_vm1, %v7122_v33  ;;  %4851 = vmatprep.mubr.msk.bf16.mxu1 %vm5650_vm1, %v7122_v33 }
 0x28d   : > { %4636 = vmatmul.mubr.msk.bf16.gmra.mrb[56].mxu0 %vm341_vm2, %v6031_v44  ;;  %4852 = vmatmul.mubr.msk.bf16.gmra.mrb[56].mxu1 %vm341_vm2, %v6031_v44  ;;  %v7123_v44 = vmax.f32 %v6445_v13, %v6447_v14 }
 0x28e   : > { %4639 = vmatprep.mubr.msk.bf16.mxu0 %vm5650_vm1, %v7122_v33  ;;  %4855 = vmatprep.mubr.msk.bf16.mxu1 %vm5650_vm1, %v7122_v33 }
 0x295   : > { %4640 = vmatmul.mubr.msk.bf16.gmra.mrb[60].mxu0 %vm341_vm2, %v6042_v45  ;;  %4856 = vmatmul.mubr.msk.bf16.gmra.mrb[60].mxu1 %vm341_vm2, %v6042_v45 }
 0x296   : > { %4643 = vmatprep.mubr.msk.bf16.mxu0 %vm5650_vm1, %v7122_v33  ;;  %4859 = vmatprep.mubr.msk.bf16.mxu1 %vm5650_vm1, %v7122_v33 }
 0x29d   : > { %4644 = vmatmul.mubr.msk.bf16.gmra.mrb[64].mxu0 %vm341_vm2, %v6053_v46  ;;  %4860 = vmatmul.mubr.msk.bf16.gmra.mrb[64].mxu1 %vm341_vm2, %v6053_v46 }
 0x29e   : > { %4647 = vmatprep.mubr.msk.bf16.mxu0 %vm5650_vm1, %v7122_v33  ;;  %4863 = vmatprep.mubr.msk.bf16.mxu1 %vm5650_vm1, %v7122_v33 }
 0x2a5   : > { %4648 = vmatmul.mubr.msk.bf16.gmra.mrb[68].mxu0 %vm341_vm2, %v6064_v47  ;;  %4864 = vmatmul.mubr.msk.bf16.gmra.mrb[68].mxu1 %vm341_vm2, %v6064_v47 }
 0x2a6   : > { %4651 = vmatprep.mubr.msk.bf16.mxu0 %vm5650_vm1, %v7122_v33  ;;  %4867 = vmatprep.mubr.msk.bf16.mxu1 %vm5650_vm1, %v7122_v33 }
 0x2ad   : > { %4652 = vmatmul.mubr.msk.bf16.gmra.mrb[72].mxu0 %vm341_vm2, %v6075_v48  ;;  %4868 = vmatmul.mubr.msk.bf16.gmra.mrb[72].mxu1 %vm341_vm2, %v6075_v48  ;;  %v6911_v48 = vld [vmem:[%s7070_s2] ss:$0 sm:$0xff] }
 0x2ae   : > { %4655 = vmatprep.mubr.msk.bf16.mxu0 %vm5650_vm1, %v7122_v33  ;;  %4871 = vmatprep.mubr.msk.bf16.mxu1 %vm5650_vm1, %v7122_v33 }
 0x2b5   : > { %4656 = vmatmul.mubr.msk.bf16.gmra.mrb[76].mxu0 %vm341_vm2, %v6086_v49  ;;  %4872 = vmatmul.mubr.msk.bf16.gmra.mrb[76].mxu1 %vm341_vm2, %v6086_v49 }
 0x2b6   : > { %4659 = vmatprep.mubr.msk.bf16.mxu0 %vm5650_vm1, %v7122_v33  ;;  %4875 = vmatprep.mubr.msk.bf16.mxu1 %vm5650_vm1, %v7122_v33 }
 0x2bd   : > { %4660 = vmatmul.mubr.msk.bf16.gmra.mrb[80].mxu0 %vm341_vm2, %v6097_v50  ;;  %4876 = vmatmul.mubr.msk.bf16.gmra.mrb[80].mxu1 %vm341_vm2, %v6097_v50 }
 0x2be   : > { %4663 = vmatprep.mubr.msk.bf16.mxu0 %vm5650_vm1, %v7122_v33  ;;  %4879 = vmatprep.mubr.msk.bf16.mxu1 %vm5650_vm1, %v7122_v33 }
 0x2c5   : > { %4664 = vmatmul.mubr.msk.bf16.gmra.mrb[84].mxu0 %vm341_vm2, %v6108_v51  ;;  %4880 = vmatmul.mubr.msk.bf16.gmra.mrb[84].mxu1 %vm341_vm2, %v6108_v51 }
 0x2c6   : > { %4667 = vmatprep.mubr.msk.bf16.mxu0 %vm5650_vm1, %v7122_v33  ;;  %4883 = vmatprep.mubr.msk.bf16.mxu1 %vm5650_vm1, %v7122_v33 }
 0x2cd   : > { %4668 = vmatmul.mubr.msk.bf16.gmra.mrb[88].mxu0 %vm341_vm2, %v6119_v52  ;;  %4884 = vmatmul.mubr.msk.bf16.gmra.mrb[88].mxu1 %vm341_vm2, %v6119_v52  ;;  %v7124_v52 = vmax.f32 %v6453_v18, %v6455_v19  ;;  %v7126_v19 = vmax.f32 %v6473_v59, %v6475_v60  ;;  %v7127_v59 = vmax.f32 %v6487_v26, %v6489_v39 }
 0x2ce   : > { %4671 = vmatprep.mubr.msk.bf16.mxu0 %vm5650_vm1, %v7122_v33  ;;  %4887 = vmatprep.mubr.msk.bf16.mxu1 %vm5650_vm1, %v7122_v33 }
 0x2d5   : > { %4672 = vmatmul.mubr.msk.bf16.gmra.mrb[92].mxu0 %vm341_vm2, %v6130_v53  ;;  %4888 = vmatmul.mubr.msk.bf16.gmra.mrb[92].mxu1 %vm341_vm2, %v6130_v53 }
 0x2d6   : > { %4675 = vmatprep.mubr.msk.bf16.mxu0 %vm5650_vm1, %v7122_v33  ;;  %4891 = vmatprep.mubr.msk.bf16.mxu1 %vm5650_vm1, %v7122_v33 }
 0x2dd   : > { %4676 = vmatmul.mubr.msk.bf16.gmra.mrb[96].mxu0 %vm341_vm2, %v6141_v54  ;;  %4892 = vmatmul.mubr.msk.bf16.gmra.mrb[96].mxu1 %vm341_vm2, %v6141_v54 }
 0x2de   : > { %4679 = vmatprep.mubr.msk.bf16.mxu0 %vm5650_vm1, %v7122_v33  ;;  %4895 = vmatprep.mubr.msk.bf16.mxu1 %vm5650_vm1, %v7122_v33 }
 0x2e5   : > { %4680 = vmatmul.mubr.msk.bf16.gmra.mrb[100].mxu0 %vm341_vm2, %v6152_v55  ;;  %4896 = vmatmul.mubr.msk.bf16.gmra.mrb[100].mxu1 %vm341_vm2, %v6152_v55 }
 0x2e6   : > { %4685 = vmatprep.mubr.msk.bf16.mxu0 %vm5650_vm1, %v7122_v33  ;;  %4901 = vmatprep.mubr.msk.bf16.mxu1 %vm5650_vm1, %v7122_v33 }
 0x2ed   : > { %4686 = vmatmul.mubr.msk.bf16.vlgmr.msra.gmra.mrb[52].mxu0 %vm341_vm2, %v6169_v58  ;;  %4902 = vmatmul.mubr.msk.bf16.vlgmr.msra.gmra.mrb[52].mxu1 %vm341_vm2, %v6169_v58 }
 0x2ee   : > { %4689 = vmatprep.mubr.msk.bf16.mxu0 %vm5650_vm1, %v7122_v33  ;;  %4905 = vmatprep.mubr.msk.bf16.mxu1 %vm5650_vm1, %v7122_v33 }
 0x2f5   : > { %4690 = vmatmul.mubr.msk.bf16.gmra.mrb[56].mxu0 %vm341_vm2, %v6184_v61  ;;  %4906 = vmatmul.mubr.msk.bf16.gmra.mrb[56].mxu1 %vm341_vm2, %v6184_v61 }
 0x2f6   : > { %4693 = vmatprep.mubr.msk.bf16.mxu0 %vm5650_vm1, %v7122_v33  ;;  %4909 = vmatprep.mubr.msk.bf16.mxu1 %vm5650_vm1, %v7122_v33 }
 0x2fd   : > { %4694 = vmatmul.mubr.msk.bf16.gmra.mrb[60].mxu0 %vm341_vm2, %v6195_v62  ;;  %4910 = vmatmul.mubr.msk.bf16.gmra.mrb[60].mxu1 %vm341_vm2, %v6195_v62 }
 0x2fe   : > { %4697 = vmatprep.mubr.msk.bf16.mxu0 %vm5650_vm1, %v7122_v33  ;;  %4913 = vmatprep.mubr.msk.bf16.mxu1 %vm5650_vm1, %v7122_v33 }
 0x305   : > { %4698 = vmatmul.mubr.msk.bf16.gmra.mrb[64].mxu0 %vm341_vm2, %v6206_v63  ;;  %4914 = vmatmul.mubr.msk.bf16.gmra.mrb[64].mxu1 %vm341_vm2, %v6206_v63 }
 0x306   : > { %4701 = vmatprep.mubr.msk.bf16.mxu0 %vm5650_vm1, %v7122_v33  ;;  %4917 = vmatprep.mubr.msk.bf16.mxu1 %vm5650_vm1, %v7122_v33 }
 0x30d   : > { %4702 = vmatmul.mubr.msk.bf16.gmra.mrb[68].mxu0 %vm341_vm2, %v6217_v0  ;;  %4918 = vmatmul.mubr.msk.bf16.gmra.mrb[68].mxu1 %vm341_vm2, %v6217_v0 }
 0x30e   : > { %4705 = vmatprep.mubr.msk.bf16.mxu0 %vm5650_vm1, %v7122_v33  ;;  %4921 = vmatprep.mubr.msk.bf16.mxu1 %vm5650_vm1, %v7122_v33 }
 0x315   : > { %4706 = vmatmul.mubr.msk.bf16.gmra.mrb[72].mxu0 %vm341_vm2, %v6228_v1  ;;  %4922 = vmatmul.mubr.msk.bf16.gmra.mrb[72].mxu1 %vm341_vm2, %v6228_v1 }
 0x316   : > { %4709 = vmatprep.mubr.msk.bf16.mxu0 %vm5650_vm1, %v7122_v33  ;;  %4925 = vmatprep.mubr.msk.bf16.mxu1 %vm5650_vm1, %v7122_v33 }
 0x31d   : > { %4710 = vmatmul.mubr.msk.bf16.gmra.mrb[76].mxu0 %vm341_vm2, %v6239_v3  ;;  %4926 = vmatmul.mubr.msk.bf16.gmra.mrb[76].mxu1 %vm341_vm2, %v6239_v3 }
 0x31e   : > { %4713 = vmatprep.mubr.msk.bf16.mxu0 %vm5650_vm1, %v7122_v33  ;;  %4929 = vmatprep.mubr.msk.bf16.mxu1 %vm5650_vm1, %v7122_v33 }
 0x325   : > { %4714 = vmatmul.mubr.msk.bf16.gmra.mrb[80].mxu0 %vm341_vm2, %v6250_v4  ;;  %4930 = vmatmul.mubr.msk.bf16.gmra.mrb[80].mxu1 %vm341_vm2, %v6250_v4 }
 0x326   : > { %4717 = vmatprep.mubr.msk.bf16.mxu0 %vm5650_vm1, %v7122_v33  ;;  %4933 = vmatprep.mubr.msk.bf16.mxu1 %vm5650_vm1, %v7122_v33 }
 0x32d   : > { %4718 = vmatmul.mubr.msk.bf16.gmra.mrb[84].mxu0 %vm341_vm2, %v6261_v5  ;;  %4934 = vmatmul.mubr.msk.bf16.gmra.mrb[84].mxu1 %vm341_vm2, %v6261_v5  ;;  %v7125_v5 = vmax.f32 %v6467_v40, %v6469_v42 }
 0x32e   : > { %4721 = vmatprep.mubr.msk.bf16.mxu0 %vm5650_vm1, %v7122_v33  ;;  %4937 = vmatprep.mubr.msk.bf16.mxu1 %vm5650_vm1, %v7122_v33 }
 0x335   : > { %4722 = vmatmul.mubr.msk.bf16.gmra.mrb[88].mxu0 %vm341_vm2, %v6272_v6  ;;  %4938 = vmatmul.mubr.msk.bf16.gmra.mrb[88].mxu1 %vm341_vm2, %v6272_v6 }
 0x336   : > { %4725 = vmatprep.mubr.msk.bf16.mxu0 %vm5650_vm1, %v7122_v33  ;;  %4941 = vmatprep.mubr.msk.bf16.mxu1 %vm5650_vm1, %v7122_v33 }
 0x33d   : > { %4726 = vmatmul.mubr.msk.bf16.gmra.mrb[92].mxu0 %vm341_vm2, %v6283_v7  ;;  %4942 = vmatmul.mubr.msk.bf16.gmra.mrb[92].mxu1 %vm341_vm2, %v6283_v7 }
 0x33e   : > { %4729 = vmatprep.mubr.msk.bf16.mxu0 %vm5650_vm1, %v7122_v33  ;;  %4945 = vmatprep.mubr.msk.bf16.mxu1 %vm5650_vm1, %v7122_v33 }
 0x345   : > { %4730 = vmatmul.mubr.msk.bf16.gmra.mrb[96].mxu0 %vm341_vm2, %v6294_v9  ;;  %4946 = vmatmul.mubr.msk.bf16.gmra.mrb[96].mxu1 %vm341_vm2, %v6294_v9 }
 0x346   : > { %4733 = vmatprep.mubr.msk.bf16.mxu0 %vm5650_vm1, %v7122_v33  ;;  %4949 = vmatprep.mubr.msk.bf16.mxu1 %vm5650_vm1, %v7122_v33 }
 0x34d   : > { %4734 = vmatmul.mubr.msk.bf16.gmra.mrb[100].mxu0 %vm341_vm2, %v6305_v22  ;;  %4950 = vmatmul.mubr.msk.bf16.gmra.mrb[100].mxu1 %vm341_vm2, %v6305_v22 }
 0x3c0   : > { %v2424_v2 = vpop.f32.mrb[52].mxu0  ;;  %v3063_v41 = vpop.f32.mrb[52].mxu1 }
 0x3c1   : > { %v2551_v45 = vmax.f32 %v7123_v44, %v2424_v2  ;;  %v4687_v46 = vpop.f32.mrb[53].mxu0  ;;  %v4903_v47 = vpop.f32.mrb[53].mxu1 }
 0x3c2   : > { %v2427_v49 = vpop.f32.mrb[54].mxu0  ;;  %v3066_v50 = vpop.f32.mrb[54].mxu1  ;;  %v7128_v47 = vmax.f32 %v6493_v12, %v6495_v16  ;;  %v7129_v12 = vmax.f32 %v6507_v24, %v6509_v56 }
 0x3c3   : > { %v3190_v51 = vmax.f32 %v2551_v45, %v3063_v41  ;;  %v2552_v53 = vmax.f32 %v7124_v52, %v2427_v49  ;;  %v4688_v54 = vpop.f32.mrb[55].mxu0  ;;  %v4904_v55 = vpop.f32.mrb[55].mxu1 }
 0x3c5   : > { %v3222_v58 = vadd.f32 %v6911_v48, %v3190_v51  ;;  %v3191_v61 = vmax.f32 %v2552_v53, %v3066_v50 }
 0x3c7   : > { %v3247_v62 = vmax.f32 %v3222_v58, 0.0  ;;  %v3223_v63 = vadd.f32 %v6911_v48, %v3191_v61 }
 0x3c8   : > { %v2432_v0 = vpop.f32.mrb[56].mxu0  ;;  %v3071_v1 = vpop.f32.mrb[56].mxu1 }
 0x3c9   : > { %v3840_v3 = vpack.c.bf16 %v3247_v62, %v3247_v62  ;;  %v3248_v4 = vmax.f32 %v3223_v63, 0.0  ;;  %v2553_v6 = vmax.f32 %v7125_v5, %v2432_v0  ;;  %v4691_v7 = vpop.f32.mrb[57].mxu0  ;;  %v4907_v9 = vpop.f32.mrb[57].mxu1  ;;  %v7130_v5 = vmax.f32 %v6513_v10, %v6515_v11 }
 0x3ca   : > { %v2435_v22 = vpop.f32.mrb[58].mxu0  ;;  %v3074_v13 = vpop.f32.mrb[58].mxu1  ;;  %v7131_v10 = vmax.f32 %v6527_v23, %v6529_v25 }
 0x3cb   : > { %3374 = vst.msk [vmem:[%s6922_s30] sm:$0xf] %vm3373_vm3, %v3840_v3  ;;  %v3841_v14 = vpack.c.bf16 %v3248_v4, %v3248_v4  ;;  %v3192_v18 = vmax.f32 %v2553_v6, %v3071_v1  ;;  %v2554_v43 = vmax.f32 %v7126_v19, %v2435_v22  ;;  %v4692_v33 = vpop.f32.mrb[59].mxu0  ;;  %v4908_v34 = vpop.f32.mrb[59].mxu1 }
 0x3cd   : > { %3375 = vst.msk [vmem:[%s6922_s30 + $0x4] sm:$0xf] %vm3373_vm3, %v3841_v14  ;;  %v3224_v40 = vadd.f32 %v6911_v48, %v3192_v18  ;;  %v3193_v42 = vmax.f32 %v2554_v43, %v3074_v13 }
 0x3cf   : > { %v3249_v17 = vmax.f32 %v3224_v40, 0.0  ;;  %v3225_v35 = vadd.f32 %v6911_v48, %v3193_v42 }
 0x3d0   : > { %v2440_v21 = vpop.f32.mrb[60].mxu0  ;;  %v3079_v8 = vpop.f32.mrb[60].mxu1 }
 0x3d1   : > { %v3842_v37 = vpack.c.bf16 %v3249_v17, %v3249_v17  ;;  %v3250_v20 = vmax.f32 %v3225_v35, 0.0  ;;  %v2555_v60 = vmax.f32 %v7127_v59, %v2440_v21  ;;  %v4695_v15 = vpop.f32.mrb[61].mxu0  ;;  %v4911_v2 = vpop.f32.mrb[61].mxu1  ;;  %v7132_v21 = vmax.f32 %v6533_v57, %v6535_v28 }
 0x3d2   : > { %v2443_v41 = vpop.f32.mrb[62].mxu0  ;;  %v3082_v44 = vpop.f32.mrb[62].mxu1 }
 0x3d3   : > { %3376 = vst.msk [vmem:[%s6922_s30 + $0x8] sm:$0xf] %vm3373_vm3, %v3842_v37  ;;  %v3843_v45 = vpack.c.bf16 %v3250_v20, %v3250_v20  ;;  %v3194_v46 = vmax.f32 %v2555_v60, %v3079_v8  ;;  %v2556_v49 = vmax.f32 %v7128_v47, %v2443_v41  ;;  %v4696_v50 = vpop.f32.mrb[63].mxu0  ;;  %v4912_v51 = vpop.f32.mrb[63].mxu1 }
 0x3d5   : > { %3377 = vst.msk [vmem:[%s6922_s30 + $0xc] sm:$0xf] %vm3373_vm3, %v3843_v45  ;;  %v3226_v26 = vadd.f32 %v6911_v48, %v3194_v46  ;;  %v3195_v39 = vmax.f32 %v2556_v49, %v3082_v44  ;;  %v7133_v45 = vld [vmem:[#allocation2_spill] sm:$0xff] }
 0x3d6   : > { %v7134_v28 = vmax.f32 %v6547_v29, %v7133_v45 }
 0x3d7   : > { %v3251_v52 = vmax.f32 %v3226_v26, 0.0  ;;  %v3227_v53 = vadd.f32 %v6911_v48, %v3195_v39  ;;  %v7135_v39 = vld [vmem:[#allocation3_spill] sm:$0xff] }
 0x3d8   : > { %v2448_v54 = vpop.f32.mrb[64].mxu0  ;;  %v3087_v55 = vpop.f32.mrb[64].mxu1 }
 0x3d9   : > { %v3844_v58 = vpack.c.bf16 %v3251_v52, %v3251_v52  ;;  %v3252_v61 = vmax.f32 %v3227_v53, 0.0  ;;  %v2557_v16 = vmax.f32 %v7129_v12, %v2448_v54  ;;  %v4699_v62 = vpop.f32.mrb[65].mxu0  ;;  %v4915_v63 = vpop.f32.mrb[65].mxu1  ;;  %v7136_v52 = vld [vmem:[#allocation4_spill] sm:$0xff] }
 0x3da   : > { %v2451_v0 = vpop.f32.mrb[66].mxu0  ;;  %v3090_v1 = vpop.f32.mrb[66].mxu1  ;;  %v7137_v53 = vmax.f32 %v7135_v39, %v7136_v52  ;;  %v7148_v52 = vld [vmem:[#allocation11_spill] sm:$0xff] }
 0x3db   : > { %3378 = vst.msk [vmem:[%s6922_s30 + $0x10] sm:$0xf] %vm3373_vm3, %v3844_v58  ;;  %v3845_v3 = vpack.c.bf16 %v3252_v61, %v3252_v61  ;;  %v3196_v4 = vmax.f32 %v2557_v16, %v3087_v55  ;;  %v2558_v6 = vmax.f32 %v7130_v5, %v2451_v0  ;;  %v4700_v7 = vpop.f32.mrb[67].mxu0  ;;  %v4916_v9 = vpop.f32.mrb[67].mxu1 }
 0x3dd   : > { %3379 = vst.msk [vmem:[%s6922_s30 + $0x14] sm:$0xf] %vm3373_vm3, %v3845_v3  ;;  %v3228_v24 = vadd.f32 %v6911_v48, %v3196_v4  ;;  %v3197_v56 = vmax.f32 %v2558_v6, %v3090_v1  ;;  %v7138_v3 = vld [vmem:[#allocation5_spill] sm:$0xff] }
 0x3de   : > { %v7139_v4 = vmax.f32 %v6567_v30, %v7138_v3 }
 0x3df   : > { %v3253_v22 = vmax.f32 %v3228_v24, 0.0  ;;  %v3229_v13 = vadd.f32 %v6911_v48, %v3197_v56 }
 0x3e0   : > { %v2456_v14 = vpop.f32.mrb[68].mxu0  ;;  %v3095_v18 = vpop.f32.mrb[68].mxu1 }
 0x3e1   : > { %v3846_v19 = vpack.c.bf16 %v3253_v22, %v3253_v22  ;;  %v3254_v43 = vmax.f32 %v3229_v13, 0.0  ;;  %v2559_v11 = vmax.f32 %v7131_v10, %v2456_v14  ;;  %v4703_v33 = vpop.f32.mrb[69].mxu0  ;;  %v4919_v34 = vpop.f32.mrb[69].mxu1  ;;  %v7140_v13 = vld [vmem:[#allocation6_spill] sm:$0xff]  ;;  %v7141_v14 = vld [vmem:[#allocation7_spill] sm:$0xff] }
 0x3e2   : > { %v2459_v40 = vpop.f32.mrb[70].mxu0  ;;  %v3098_v42 = vpop.f32.mrb[70].mxu1 }
 0x3e3   : > { %3380 = vst.msk [vmem:[%s6922_s30 + $0x18] sm:$0xf] %vm3373_vm3, %v3846_v19  ;;  %v3847_v17 = vpack.c.bf16 %v3254_v43, %v3254_v43  ;;  %v3198_v35 = vmax.f32 %v2559_v11, %v3095_v18  ;;  %v2560_v8 = vmax.f32 %v7132_v21, %v2459_v40  ;;  %v4704_v37 = vpop.f32.mrb[71].mxu0  ;;  %v4920_v20 = vpop.f32.mrb[71].mxu1  ;;  %v7142_v18 = vmax.f32 %v7140_v13, %v7141_v14  ;;  %v7143_v21 = vld [vmem:[#allocation8_spill] sm:$0xff]  ;;  %v7153_v13 = vld [vmem:[#allocation14_spill] sm:$0xff] }
 0x3e4   : > { %v7154_v14 = vld [vmem:[#allocation15_spill] sm:$0xff] }
 0x3e5   : > { %3381 = vst.msk [vmem:[%s6922_s30 + $0x1c] sm:$0xf] %vm3373_vm3, %v3847_v17  ;;  %v3230_v23 = vadd.f32 %v6911_v48, %v3198_v35  ;;  %v3199_v25 = vmax.f32 %v2560_v8, %v3098_v42  ;;  %v7144_v8 = vmax.f32 %v6587_v31, %v7143_v21 }
 0x3e7   : > { %v3255_v59 = vmax.f32 %v3230_v23, 0.0  ;;  %v3231_v60 = vadd.f32 %v6911_v48, %v3199_v25 }
 0x3e8   : > { %v2464_v15 = vpop.f32.mrb[72].mxu0  ;;  %v3103_v2 = vpop.f32.mrb[72].mxu1 }
 0x3e9   : > { %v3848_v41 = vpack.c.bf16 %v3255_v59, %v3255_v59  ;;  %v3256_v44 = vmax.f32 %v3231_v60, 0.0  ;;  %v2561_v57 = vmax.f32 %v7134_v28, %v2464_v15  ;;  %v4707_v46 = vpop.f32.mrb[73].mxu0  ;;  %v4923_v47 = vpop.f32.mrb[73].mxu1 }
 0x3ea   : > { %v2467_v49 = vpop.f32.mrb[74].mxu0  ;;  %v3106_v50 = vpop.f32.mrb[74].mxu1 }
 0x3eb   : > { %3382 = vst.msk [vmem:[%s6922_s30 + $0x20] sm:$0xf] %vm3373_vm3, %v3848_v41  ;;  %v3849_v51 = vpack.c.bf16 %v3256_v44, %v3256_v44  ;;  %v3200_v26 = vmax.f32 %v2561_v57, %v3103_v2  ;;  %v2562_v54 = vmax.f32 %v7137_v53, %v2467_v49  ;;  %v4708_v55 = vpop.f32.mrb[75].mxu0  ;;  %v4924_v58 = vpop.f32.mrb[75].mxu1  ;;  %v7145_v2 = vld [vmem:[#allocation9_spill] sm:$0xff]  ;;  %v7146_v41 = vld [vmem:[#allocation10_spill] sm:$0xff]  ;;  %v7149_v53 = vmax.f32 %v6607_v32, %v7148_v52 }
 0x3ec   : > { %v7147_v44 = vmax.f32 %v7145_v2, %v7146_v41  ;;  %v7159_v41 = vld [vmem:[#allocation18_spill] sm:$0xff] }
 0x3ed   : > { %3383 = vst.msk [vmem:[%s6922_s30 + $0x24] sm:$0xf] %vm3373_vm3, %v3849_v51  ;;  %v3232_v29 = vadd.f32 %v6911_v48, %v3200_v26  ;;  %v3201_v61 = vmax.f32 %v2562_v54, %v3106_v50 }
 0x3ef   : > { %v3257_v12 = vmax.f32 %v3232_v29, 0.0  ;;  %v3233_v16 = vadd.f32 %v6911_v48, %v3201_v61 }
 0x3f0   : > { %v2472_v62 = vpop.f32.mrb[76].mxu0  ;;  %v3111_v63 = vpop.f32.mrb[76].mxu1 }
 0x3f1   : > { %v3850_v0 = vpack.c.bf16 %v3257_v12, %v3257_v12  ;;  %v3258_v1 = vmax.f32 %v3233_v16, 0.0  ;;  %v2563_v5 = vmax.f32 %v7139_v4, %v2472_v62  ;;  %v4711_v6 = vpop.f32.mrb[77].mxu0  ;;  %v4927_v7 = vpop.f32.mrb[77].mxu1  ;;  %v7150_v62 = vld [vmem:[#allocation12_spill] sm:$0xff] }
 0x3f2   : > { %v2475_v9 = vpop.f32.mrb[78].mxu0  ;;  %v3114_v24 = vpop.f32.mrb[78].mxu1 }
 0x3f3   : > { %3384 = vst.msk [vmem:[%s6922_s30 + $0x28] sm:$0xf] %vm3373_vm3, %v3850_v0  ;;  %v3851_v56 = vpack.c.bf16 %v3258_v1, %v3258_v1  ;;  %v3202_v22 = vmax.f32 %v2563_v5, %v3111_v63  ;;  %v2564_v19 = vmax.f32 %v7142_v18, %v2475_v9  ;;  %v4712_v43 = vpop.f32.mrb[79].mxu0  ;;  %v4928_v10 = vpop.f32.mrb[79].mxu1  ;;  %v7151_v63 = vld [vmem:[#allocation13_spill] sm:$0xff]  ;;  %v7155_v18 = vmax.f32 %v7153_v13, %v7154_v14 }
 0x3f4   : > { %v7152_v0 = vmax.f32 %v7150_v62, %v7151_v63 }
 0x3f5   : > { %3385 = vst.msk [vmem:[%s6922_s30 + $0x2c] sm:$0xf] %vm3373_vm3, %v3851_v56  ;;  %v3234_v30 = vadd.f32 %v6911_v48, %v3202_v22  ;;  %v3203_v11 = vmax.f32 %v2564_v19, %v3114_v24 }
 0x3f7   : > { %v3259_v33 = vmax.f32 %v3234_v30, 0.0  ;;  %v3235_v34 = vadd.f32 %v6911_v48, %v3203_v11 }
 0x3f8   : > { %v2480_v40 = vpop.f32.mrb[80].mxu0  ;;  %v3119_v42 = vpop.f32.mrb[80].mxu1 }
 0x3f9   : > { %v3852_v17 = vpack.c.bf16 %v3259_v33, %v3259_v33  ;;  %v3260_v35 = vmax.f32 %v3235_v34, 0.0  ;;  %v2565_v37 = vmax.f32 %v7144_v8, %v2480_v40  ;;  %v4715_v20 = vpop.f32.mrb[81].mxu0  ;;  %v4931_v23 = vpop.f32.mrb[81].mxu1  ;;  %v7156_v40 = vld [vmem:[#allocation16_spill] sm:$0xff] }
 0x3fa   : > { %v2483_v25 = vpop.f32.mrb[82].mxu0  ;;  %v3122_v59 = vpop.f32.mrb[82].mxu1 }
 0x3fb   : > { %3386 = vst.msk [vmem:[%s6922_s30 + $0x30] sm:$0xf] %vm3373_vm3, %v3852_v17  ;;  %v3853_v60 = vpack.c.bf16 %v3260_v35, %v3260_v35  ;;  %v3204_v15 = vmax.f32 %v2565_v37, %v3119_v42  ;;  %v2566_v45 = vmax.f32 %v7147_v44, %v2483_v25  ;;  %v4716_v28 = vpop.f32.mrb[83].mxu0  ;;  %v4932_v57 = vpop.f32.mrb[83].mxu1  ;;  %v7157_v42 = vld [vmem:[#allocation17_spill] sm:$0xff]  ;;  %v7160_v44 = vld [vmem:[#allocation19_spill] sm:$0xff] }
 0x3fc   : > { %v7158_v17 = vmax.f32 %v7156_v40, %v7157_v42 }
 0x3fd   : > { %3387 = vst.msk [vmem:[%s6922_s30 + $0x34] sm:$0xf] %vm3373_vm3, %v3853_v60  ;;  %v3236_v31 = vadd.f32 %v6911_v48, %v3204_v15  ;;  %v3205_v46 = vmax.f32 %v2566_v45, %v3122_v59  ;;  %v7161_v45 = vmax.f32 %v7159_v41, %v7160_v44 }
 0x3ff   : > { %v3261_v47 = vmax.f32 %v3236_v31, 0.0  ;;  %v3237_v49 = vadd.f32 %v6911_v48, %v3205_v46 }
 0x400   : > { %v2488_v50 = vpop.f32.mrb[84].mxu0  ;;  %v3127_v51 = vpop.f32.mrb[84].mxu1 }
 0x401   : > { %v3854_v26 = vpack.c.bf16 %v3261_v47, %v3261_v47  ;;  %v3262_v39 = vmax.f32 %v3237_v49, 0.0  ;;  %v2567_v54 = vmax.f32 %v7149_v53, %v2488_v50  ;;  %v4719_v55 = vpop.f32.mrb[85].mxu0  ;;  %v4935_v58 = vpop.f32.mrb[85].mxu1 }
 0x402   : > { %v2491_v29 = vpop.f32.mrb[86].mxu0  ;;  %v3130_v61 = vpop.f32.mrb[86].mxu1 }
 0x403   : > { %3388 = vst.msk [vmem:[%s6922_s30 + $0x38] sm:$0xf] %vm3373_vm3, %v3854_v26  ;;  %v3855_v12 = vpack.c.bf16 %v3262_v39, %v3262_v39  ;;  %v3206_v16 = vmax.f32 %v2567_v54, %v3127_v51  ;;  %v2568_v1 = vmax.f32 %v7152_v0, %v2491_v29  ;;  %v4720_v3 = vpop.f32.mrb[87].mxu0  ;;  %v4936_v4 = vpop.f32.mrb[87].mxu1  ;;  %v7162_v51 = vld [vmem:[#allocation20_spill] sm:$0xff]  ;;  %v7163_v26 = vld [vmem:[#allocation21_spill] sm:$0xff] }
 0x404   : > { %v7164_v39 = vmax.f32 %v7162_v51, %v7163_v26  ;;  %v7165_v0 = vld [vmem:[#allocation22_spill] sm:$0xff] }
 0x405   : > { %3389 = vst.msk [vmem:[%s6922_s30 + $0x3c] sm:$0xf] %vm3373_vm3, %v3855_v12  ;;  %v3238_v32 = vadd.f32 %v6911_v48, %v3206_v16  ;;  %v3207_v5 = vmax.f32 %v2568_v1, %v3130_v61  ;;  %v7166_v1 = vld [vmem:[#allocation23_spill] sm:$0xff] }
 0x406   : > { %v7167_v3 = vmax.f32 %v7165_v0, %v7166_v1 }
 0x407   : > { %v3263_v6 = vmax.f32 %v3238_v32, 0.0  ;;  %v3239_v7 = vadd.f32 %v6911_v48, %v3207_v5 }
 0x408   : > { %v2496_v9 = vpop.f32.mrb[88].mxu0  ;;  %v3135_v24 = vpop.f32.mrb[88].mxu1 }
 0x409   : > { %v3856_v56 = vpack.c.bf16 %v3263_v6, %v3263_v6  ;;  %v3264_v22 = vmax.f32 %v3239_v7, 0.0  ;;  %v2569_v19 = vmax.f32 %v7155_v18, %v2496_v9  ;;  %v4723_v43 = vpop.f32.mrb[89].mxu0  ;;  %v4939_v10 = vpop.f32.mrb[89].mxu1 }
 0x40a   : > { %v2499_v30 = vpop.f32.mrb[90].mxu0  ;;  %v3138_v11 = vpop.f32.mrb[90].mxu1 }
 0x40b   : > { %3390 = vst.msk [vmem:[%s6922_s30 + $0x40] sm:$0xf] %vm3373_vm3, %v3856_v56  ;;  %v3857_v33 = vpack.c.bf16 %v3264_v22, %v3264_v22  ;;  %v3208_v34 = vmax.f32 %v2569_v19, %v3135_v24  ;;  %v2570_v35 = vmax.f32 %v7158_v17, %v2499_v30  ;;  %v4724_v21 = vpop.f32.mrb[91].mxu0  ;;  %v4940_v8 = vpop.f32.mrb[91].mxu1  ;;  %v7168_v56 = vld [vmem:[#allocation24_spill] sm:$0xff]  ;;  %v7169_v22 = vld [vmem:[#allocation25_spill] sm:$0xff] }
 0x40c   : > { %v7170_v13 = vmax.f32 %v7168_v56, %v7169_v22 }
 0x40d   : > { %3391 = vst.msk [vmem:[%s6922_s30 + $0x44] sm:$0xf] %vm3373_vm3, %v3857_v33  ;;  %v3240_v37 = vadd.f32 %v6911_v48, %v3208_v34  ;;  %v3209_v20 = vmax.f32 %v2570_v35, %v3138_v11 }
 0x40f   : > { %v3265_v23 = vmax.f32 %v3240_v37, 0.0  ;;  %v3241_v25 = vadd.f32 %v6911_v48, %v3209_v20 }
 0x410   : > { %v2504_v59 = vpop.f32.mrb[92].mxu0  ;;  %v3143_v60 = vpop.f32.mrb[92].mxu1 }
 0x411   : > { %v3858_v15 = vpack.c.bf16 %v3265_v23, %v3265_v23  ;;  %v3266_v2 = vmax.f32 %v3241_v25, 0.0  ;;  %v2571_v28 = vmax.f32 %v7161_v45, %v2504_v59  ;;  %v4727_v57 = vpop.f32.mrb[93].mxu0  ;;  %v4943_v31 = vpop.f32.mrb[93].mxu1 }
 0x412   : > { %v2507_v46 = vpop.f32.mrb[94].mxu0  ;;  %v3146_v47 = vpop.f32.mrb[94].mxu1 }
 0x413   : > { %3392 = vst.msk [vmem:[%s6922_s30 + $0x48] sm:$0xf] %vm3373_vm3, %v3858_v15  ;;  %v3859_v49 = vpack.c.bf16 %v3266_v2, %v3266_v2  ;;  %v3210_v50 = vmax.f32 %v2571_v28, %v3143_v60  ;;  %v2572_v52 = vmax.f32 %v7164_v39, %v2507_v46  ;;  %v4728_v53 = vpop.f32.mrb[95].mxu0  ;;  %v4944_v54 = vpop.f32.mrb[95].mxu1 }
 0x415   : > { %3393 = vst.msk [vmem:[%s6922_s30 + $0x4c] sm:$0xf] %vm3373_vm3, %v3859_v49  ;;  %v3242_v55 = vadd.f32 %v6911_v48, %v3210_v50  ;;  %v3211_v58 = vmax.f32 %v2572_v52, %v3146_v47 }
 0x417   : > { %v3267_v29 = vmax.f32 %v3242_v55, 0.0  ;;  %v3243_v61 = vadd.f32 %v6911_v48, %v3211_v58 }
 0x418   : > { %v2512_v12 = vpop.f32.mrb[96].mxu0  ;;  %v3151_v16 = vpop.f32.mrb[96].mxu1 }
 0x419   : > { %v3860_v62 = vpack.c.bf16 %v3267_v29, %v3267_v29  ;;  %v3268_v63 = vmax.f32 %v3243_v61, 0.0  ;;  %v2573_v4 = vmax.f32 %v7167_v3, %v2512_v12  ;;  %v4731_v32 = vpop.f32.mrb[97].mxu0  ;;  %v4947_v5 = vpop.f32.mrb[97].mxu1 }
 0x41a   : > { %v2515_v6 = vpop.f32.mrb[98].mxu0  ;;  %v3154_v7 = vpop.f32.mrb[98].mxu1 }
 0x41b   : > { %3394 = vst.msk [vmem:[%s6922_s30 + $0x50] sm:$0xf] %vm3373_vm3, %v3860_v62  ;;  %v3861_v9 = vpack.c.bf16 %v3268_v63, %v3268_v63  ;;  %v3212_v24 = vmax.f32 %v2573_v4, %v3151_v16  ;;  %v2574_v14 = vmax.f32 %v7170_v13, %v2515_v6  ;;  %v4732_v18 = vpop.f32.mrb[99].mxu0  ;;  %v4948_v19 = vpop.f32.mrb[99].mxu1 }
 0x41d   : > { %3395 = vst.msk [vmem:[%s6922_s30 + $0x54] sm:$0xf] %vm3373_vm3, %v3861_v9  ;;  %v3244_v43 = vadd.f32 %v6911_v48, %v3212_v24  ;;  %v3213_v10 = vmax.f32 %v2574_v14, %v3154_v7 }
 0x41f   : > { %v3269_v30 = vmax.f32 %v3244_v43, 0.0  ;;  %v3245_v11 = vadd.f32 %v6911_v48, %v3213_v10 }
 0x420   : > { %v2520_v33 = vpop.f32.mrb[100].mxu0  ;;  %v3159_v34 = vpop.f32.mrb[100].mxu1 }
 0x421   : > { %v3862_v40 = vpack.c.bf16 %v3269_v30, %v3269_v30  ;;  %v3270_v42 = vmax.f32 %v3245_v11, 0.0  ;;  %v2575_v17 = vmax.f32 %v1936_v38, %v2520_v33  ;;  %v4735_v35 = vpop.f32.mrb[101].mxu0  ;;  %v4951_v21 = vpop.f32.mrb[101].mxu1 }
 0x422   : > { %v2523_v8 = vpop.f32.mrb[102].mxu0  ;;  %v3162_v37 = vpop.f32.mrb[102].mxu1 }
 0x423   : > { %3396 = vst.msk [vmem:[%s6922_s30 + $0x58] sm:$0xf] %vm3373_vm3, %v3862_v40  ;;  %v3863_v20 = vpack.c.bf16 %v3270_v42, %v3270_v42  ;;  %v3214_v23 = vmax.f32 %v2575_v17, %v3159_v34  ;;  %v4736_v25 = vpop.f32.mrb[103].mxu0  ;;  %v4952_v59 = vpop.f32.mrb[103].mxu1 }
 0x425   : > { %3397 = vst.msk [vmem:[%s6922_s30 + $0x5c] sm:$0xf] %vm3373_vm3, %v3863_v20  ;;  %v3246_v60 = vadd.f32 %v6911_v48, %v3214_v23 }
 0x427   : > { %v3271_v15 = vmax.f32 %v3246_v60, 0.0 }
 0x429   : > { %v3864_v2 = vpack.c.bf16 %v3271_v15, %v3271_v15 }
 0x42b   : > { %3399 = vst.msk [vmem:[%s6922_s30 + $0x60] sm:$0x3] %vm3398_vm4, %v3864_v2 }
 0x42c PF: > { %s13_s12 = sadd.s32 1, %s5647_s12  }
 0x42d   : > { %p10_p4 = scmp.ge.s32.totalorder %s13_s12, 4  }
 0x42f   :  { %12 = sbr.rel (!%p10_p4) target bundleno = 1 (0x1), region = 80 }

// kernel: forward.4
= control target key start
LH: loop header
LB: loop body
LE: loop exit
PB: predicated region body
PF: predicated region fallthrough
CT: control target
= control target key end

     0   :  { %s3832_s12 = smov 0   ;;  %s4370_s0 = inlined_call_operand.vmem [shape: bf16[2,4,49,128], index: 0, kind: input, shape index: {}]   ;;  %s4371_s1 = inlined_call_operand.vmem [shape: bf16[16,128,64], index: 1, kind: input, shape index: {}]   ;;  %s4372_s2 = inlined_call_operand.vmem [shape: f32[1,64], index: 2, kind: input, shape index: {}]   ;;  %s4373_s3 = inlined_call_operand.vmem [shape: bf16[2,49,64], index: 3, kind: output, shape index: {}]  }
   0x1 LB: > { %s2549_s13 = sadd.s32 4294967295, %s3810_s12   ;;  %p2553_p0 = scmp.ge.s32.totalorder %s3810_s12, 1  ;;  %s3810_s12 = sphi %s3832_s12, %s13_s12  }
   0x2   : > { %p137_p1 = scmp.lt.s32.totalorder %s3810_s12, 3 }
   0x4   : > { %p138_p2 = pnand %p2553_p0, %p137_p1 }
   0x5   : > { %v3660_v0 = vld [vmem:[%s4371_s1 + $0x40] sm:$0xff] (!%p138_p2)   ;;  %p161_p3 = scmp.lt.s32.totalorder (!%p138_p2), %s2549_s13, 1  ;;  %v3662_v2 = vld [vmem:[%s4371_s1 + $0x48] sm:$0xff] (!%p138_p2)   ;;  %v3664_v4 = vld [vmem:[%s4371_s1 + $0x50] sm:$0xff] (!%p138_p2)   ;;  %vm2481_vm0 = vcmask (!%p138_p2), 519168   ;;  %vm2488_vm1 = vcmask (!%p138_p2), 516096  }
   0x6   : > { %141 = sbr.rel (%p138_p2) target bundleno = 496 (0x1f0), region = 32  ;;  %v3661_v1 = vld [vmem:[%s4371_s1 + $0x140] sm:$0xff] (!%p138_p2)   ;;  %3170 = vmatprep.subr.bf16.mxu0 (!%p138_p2), %v3660_v0  ;;  %v3663_v3 = vld [vmem:[%s4371_s1 + $0x148] sm:$0xff] (!%p138_p2)   ;;  %v3665_v5 = vld [vmem:[%s4371_s1 + $0x150] sm:$0xff] (!%p138_p2)   ;;  %vm2489_vm2 = vsmask.f32 (!%p138_p2), 256 }
   0x7   : > { %3266 = vmatprep.subr.bf16.mxu1 (!%p138_p2), %v3661_v1  ;;  %3171 = vmatpush3.bf16.msra.mxu0 (!%p138_p2), %v3660_v0  ;;  %v3666_v6 = vld [vmem:[%s4371_s1 + $0x58] sm:$0xff] (!%p138_p2)   ;;  %v3668_v8 = vld [vmem:[%s4371_s1 + $0x60] sm:$0xff] (!%p138_p2)   ;;  %v3670_v10 = vld [vmem:[%s4371_s1 + $0x68] sm:$0xff] (!%p138_p2)  }
   0x8   : > { %3267 = vmatpush3.bf16.msra.mxu1 (!%p138_p2), %v3661_v1  ;;  %3172 = vmatprep.subr.bf16.mxu0 (!%p138_p2), %v3662_v2  ;;  %v3667_v7 = vld [vmem:[%s4371_s1 + $0x158] sm:$0xff] (!%p138_p2)   ;;  %v3669_v9 = vld [vmem:[%s4371_s1 + $0x160] sm:$0xff] (!%p138_p2)   ;;  %v3671_v12 = vld [vmem:[%s4371_s1 + $0x168] sm:$0xff] (!%p138_p2)  }
   0x9   : > { %3268 = vmatprep.subr.bf16.mxu1 (!%p138_p2), %v3663_v3  ;;  %v3672_v13 = vld [vmem:[%s4371_s1 + $0x70] sm:$0xff] (!%p138_p2)   ;;  %v3674_v15 = vld [vmem:[%s4371_s1 + $0x78] sm:$0xff] (!%p138_p2)   ;;  %v3677_v17 = vld [vmem:[%s4371_s1] sm:$0xff] (!%p138_p2)  }
   0xa   : > { %v3673_v14 = vld [vmem:[%s4371_s1 + $0x170] sm:$0xff] (!%p138_p2)   ;;  %v3675_v16 = vld [vmem:[%s4371_s1 + $0x178] sm:$0xff] (!%p138_p2)   ;;  %v3678_v18 = vld [vmem:[%s4371_s1 + $0x100] sm:$0xff] (!%p138_p2)  }
   0xb   : > { %3173 = vmatpush3.bf16.msra.mxu0 (!%p138_p2), %v3662_v2  ;;  %v3680_v20 = vld [vmem:[%s4371_s1 + $0x8] sm:$0xff] (!%p138_p2)   ;;  %v3682_v23 = vld [vmem:[%s4371_s1 + $0x10] sm:$0xff] (!%p138_p2)   ;;  %v3684_v26 = vld [vmem:[%s4371_s1 + $0x18] sm:$0xff] (!%p138_p2)  }
   0xc   : > { %3269 = vmatpush3.bf16.msra.mxu1 (!%p138_p2), %v3663_v3  ;;  %3174 = vmatprep.subr.bf16.mxu0 (!%p138_p2), %v3664_v4  ;;  %v3681_v21 = vld [vmem:[%s4371_s1 + $0x108] sm:$0xff] (!%p138_p2)   ;;  %v3683_v25 = vld [vmem:[%s4371_s1 + $0x110] sm:$0xff] (!%p138_p2)   ;;  %v3685_v27 = vld [vmem:[%s4371_s1 + $0x118] sm:$0xff] (!%p138_p2)  }
   0xd   : > { %s4375_s13 = smov (!%p161_p3, %s2549_s13), 1  ;;  %3270 = vmatprep.subr.bf16.mxu1 %v3665_v5  ;;  %v3686_v29 = vld [vmem:[%s4371_s1 + $0x20] sm:$0xff]   ;;  %v3688_v31 = vld [vmem:[%s4371_s1 + $0x28] sm:$0xff]   ;;  %v3691_v33 = vld [vmem:[%s4371_s1 + $0x30] sm:$0xff]  }
   0xe   : > { %s3650_s30 = smul.u32 112, %s4375_s13  ;;  %v3687_v30 = vld [vmem:[%s4371_s1 + $0x120] sm:$0xff]   ;;  %v3689_v32 = vld [vmem:[%s4371_s1 + $0x128] sm:$0xff]   ;;  %v3692_v34 = vld [vmem:[%s4371_s1 + $0x130] sm:$0xff]  }
   0xf   : > { %3175 = vmatpush3.bf16.msra.mxu0 %v3664_v4  ;;  %v3694_v35 = vld [vmem:[%s4371_s1 + $0x38] sm:$0xff]   ;;  %v3697_v37 = vld [vmem:[%s4371_s1 + $0x80] sm:$0xff]   ;;  %v3700_v40 = vld [vmem:[%s4371_s1 + $0x88] sm:$0xff]  }
  0x10   : > { %3271 = vmatpush3.bf16.msra.mxu1 %v3665_v5  ;;  %3176 = vmatprep.subr.bf16.mxu0 %v3666_v6  ;;  %s3876_s10 = scalar_lea.vmem %s4370_s0, %s3650_s30  ;;  %v3695_v36 = vld [vmem:[%s4371_s1 + $0x138] sm:$0xff]   ;;  %v3698_v38 = vld [vmem:[%s4371_s1 + $0x180] sm:$0xff]   ;;  %v3701_v41 = vld [vmem:[%s4371_s1 + $0x188] sm:$0xff]   ;;  %s3651_s30 = smul.u32 28, %s4375_s13 }
  0x11   : > { %3272 = vmatprep.subr.bf16.mxu1 %v3667_v7  ;;  %v3882_v11 = vld [vmem:[%s3876_s10 + $0x1c] sm:$0xff]   ;;  %v3908_v19 = vld [vmem:[%s3876_s10 + $0x24] sm:$0xff]   ;;  %v3917_v22 = vld [vmem:[%s3876_s10 + $0x2c] sm:$0xff]  }
  0x12   : > { %3186 = vmatprep.mubr.bf16.mxu0 %v3882_v11  ;;  %3282 = vmatprep.mubr.bf16.mxu1 %v3882_v11  ;;  %v3925_v24 = vld [vmem:[%s3876_s10 + $0x34] ss:$0 sps:$4 sm:$0x11]   ;;  %v3939_v28 = vld [vmem:[%s3876_s10] sm:$0xff]   ;;  %v3976_v39 = vld [vmem:[%s3876_s10 + $0x8] sm:$0xff]   ;;  %s4351_s6 = scalar_lea.vmem %s4373_s3, %s3651_s30 }
  0x13   : > { %3177 = vmatpush3.bf16.msra.mxu0 %v3666_v6  ;;  %v3985_v42 = vld [vmem:[%s3876_s10 + $0x10] sm:$0xff]   ;;  %v3998_v45 = vld [vmem:[%s3876_s10 + $0x18] ss:$0 sps:$4 sm:$0x11]   ;;  %v3706_v49 = vld [vmem:[%s4371_s1 + $0xa0] sm:$0xff]  }
  0x14   : > { %3273 = vmatpush3.bf16.msra.mxu1 %v3667_v7  ;;  %3178 = vmatprep.subr.bf16.mxu0 %v3668_v8  ;;  %v3702_v43 = vld [vmem:[%s4371_s1 + $0x90] sm:$0xff]   ;;  %v3704_v46 = vld [vmem:[%s4371_s1 + $0x98] sm:$0xff]   ;;  %v3707_v50 = vld [vmem:[%s4371_s1 + $0x1a0] sm:$0xff]  }
  0x15   : > { %3274 = vmatprep.subr.bf16.mxu1 %v3669_v9  ;;  %v3703_v44 = vld [vmem:[%s4371_s1 + $0x190] sm:$0xff]   ;;  %v3705_v47 = vld [vmem:[%s4371_s1 + $0x198] sm:$0xff]   ;;  %v3708_v51 = vld [vmem:[%s4371_s1 + $0xa8] sm:$0xff]  }
  0x16   : > { %v4007_v48 = vld [vmem:[%s3876_s10 + $0x38] sm:$0xff]   ;;  %v3709_v52 = vld [vmem:[%s4371_s1 + $0x1a8] sm:$0xff]   ;;  %v3711_v53 = vld [vmem:[%s4371_s1 + $0xb0] sm:$0xff]  }
  0x17   : > { %3179 = vmatpush3.bf16.msra.mxu0 %v3668_v8  ;;  %v3712_v54 = vld [vmem:[%s4371_s1 + $0x1b0] sm:$0xff]   ;;  %v3714_v55 = vld [vmem:[%s4371_s1 + $0xb8] sm:$0xff]   ;;  %v3717_v57 = vld [vmem:[%s4371_s1 + $0xc0] sm:$0xff]  }
  0x18   : > { %3275 = vmatpush3.bf16.msra.mxu1 %v3669_v9  ;;  %3180 = vmatprep.subr.bf16.mxu0 %v3670_v10  ;;  %v3715_v56 = vld [vmem:[%s4371_s1 + $0x1b8] sm:$0xff]   ;;  %v3718_v58 = vld [vmem:[%s4371_s1 + $0x1c0] sm:$0xff]   ;;  %v3720_v60 = vld [vmem:[%s4371_s1 + $0xc8] sm:$0xff]  }
  0x19   : > { %3276 = vmatprep.subr.bf16.mxu1 %v3671_v12  ;;  %v4044_v59 = vld [vmem:[%s3876_s10 + $0x40] sm:$0xff]   ;;  %v3721_v61 = vld [vmem:[%s4371_s1 + $0x1c8] sm:$0xff]   ;;  %v3722_v63 = vld [vmem:[%s4371_s1 + $0xd0] sm:$0xff]  }
  0x1a   : > { %v4053_v62 = vld [vmem:[%s3876_s10 + $0x48] sm:$0xff]   ;;  %v4061_v0 = vld [vmem:[%s3876_s10 + $0x50] ss:$0 sps:$4 sm:$0x11]   ;;  %v3724_v2 = vld [vmem:[%s4371_s1 + $0xd8] sm:$0xff]  }
  0x1b   : > { %3181 = vmatpush3.bf16.msra.mxu0 %v3670_v10  ;;  %v3723_v1 = vld [vmem:[%s4371_s1 + $0x1d0] sm:$0xff]   ;;  %v3725_v3 = vld [vmem:[%s4371_s1 + $0x1d8] sm:$0xff]   ;;  %v3726_v5 = vld [vmem:[%s4371_s1 + $0xe0] sm:$0xff]  }
  0x1c   : > { %3277 = vmatpush3.bf16.msra.mxu1 %v3671_v12  ;;  %3182 = vmatprep.subr.bf16.mxu0 %v3672_v13  ;;  %v4075_v4 = vld [vmem:[%s3876_s10 + $0x54] sm:$0xff]   ;;  %v3727_v6 = vld [vmem:[%s4371_s1 + $0x1e0] sm:$0xff]   ;;  %v3728_v7 = vld [vmem:[%s4371_s1 + $0xe8] sm:$0xff]  }
  0x1d   : > { %3278 = vmatprep.subr.bf16.mxu1 %v3673_v14  ;;  %v3729_v8 = vld [vmem:[%s4371_s1 + $0x1e8] sm:$0xff]   ;;  %v3732_v9 = vld [vmem:[%s4371_s1 + $0xf0] sm:$0xff]   ;;  %v3734_v12 = vld [vmem:[%s4371_s1 + $0xf8] sm:$0xff]  }
  0x1e   : > { %v3733_v10 = vld [vmem:[%s4371_s1 + $0x1f0] sm:$0xff]   ;;  %vm2490_vm3 = vmand %vm2488_vm1, %vm2489_vm2 }
  0x1f   : > { %3183 = vmatpush3.bf16.msra.mxu0 %v3672_v13  ;;  %v3735_v13 = vld [vmem:[%s4371_s1 + $0x1f8] sm:$0xff]  }
  0x20   : > { %3279 = vmatpush3.bf16.msra.mxu1 %v3673_v14  ;;  %3184 = vmatprep.subr.bf16.mxu0 %v3674_v15  ;;  %v3738_v14 = vld [vmem:[%s4371_s1 + $0x240] sm:$0xff]  }
  0x21   : > { %3280 = vmatprep.subr.bf16.mxu1 %v3675_v16 }
  0x23   : > { %3185 = vmatpush3.bf16.msra.mxu0 %v3674_v15  ;;  %v3739_v15 = vld [vmem:[%s4371_s1 + $0x340] sm:$0xff]  }
  0x24   : > { %3281 = vmatpush3.bf16.msra.mxu1 %v3675_v16  ;;  %3194 = vmatprep.subr.bf16.mxu0 %v3677_v17  ;;  %v4112_v16 = vld [vmem:[%s3876_s10 + $0x5c] sm:$0xff]  }
  0x25   : > { %3290 = vmatprep.subr.bf16.mxu1 %v3678_v18 }
  0x26   : > { %3187 = vmatmul.mubr.bf16.vlgmr.msra.gmra.mrb[0].mxu0 %v3908_v19 }
  0x27   : > { %3195 = vmatpush3.bf16.msra.mxu0 %v3677_v17  ;;  %3283 = vmatmul.mubr.bf16.vlgmr.msra.gmra.mrb[0].mxu1 %v3908_v19  ;;  %v3740_v17 = vld [vmem:[%s4371_s1 + $0x248] sm:$0xff]  }
  0x28   : > { %3291 = vmatpush3.bf16.msra.mxu1 %v3678_v18  ;;  %3196 = vmatprep.subr.bf16.mxu0 %v3680_v20  ;;  %v3741_v18 = vld [vmem:[%s4371_s1 + $0x348] sm:$0xff]  }
  0x29   : > { %3292 = vmatprep.subr.bf16.mxu1 %v3681_v21  ;;  %3190 = vmatprep.mubr.bf16.mxu0 %v3917_v22 }
  0x2a   : > { %3286 = vmatprep.mubr.bf16.mxu1 %v3917_v22 }
  0x2b   : > { %3197 = vmatpush3.bf16.msra.mxu0 %v3680_v20  ;;  %v4121_v20 = vld [vmem:[%s3876_s10 + $0x64] sm:$0xff]  }
  0x2c   : > { %3293 = vmatpush3.bf16.msra.mxu1 %v3681_v21  ;;  %3198 = vmatprep.subr.bf16.mxu0 %v3682_v23  ;;  %v4126_v21 = vld [vmem:[%s3876_s10 + $0x6c] ss:$0 sps:$4 sm:$0x11]  }
  0x2d   : > { %3294 = vmatprep.subr.bf16.mxu1 %v3683_v25 }
  0x2e   : > { %3191 = vmatmul.mubr.bf16.gmra.mrb[4].mxu0 %v3925_v24 }
  0x2f   : > { %3199 = vmatpush3.bf16.msra.mxu0 %v3682_v23  ;;  %3287 = vmatmul.mubr.bf16.gmra.mrb[4].mxu1 %v3925_v24  ;;  %v3744_v23 = vld [vmem:[%s4371_s1 + $0x250] sm:$0xff]  }
  0x30   : > { %3295 = vmatpush3.bf16.msra.mxu1 %v3683_v25  ;;  %3200 = vmatprep.subr.bf16.mxu0 %v3684_v26  ;;  %v3745_v25 = vld [vmem:[%s4371_s1 + $0x350] sm:$0xff]  }
  0x31   : > { %3296 = vmatprep.subr.bf16.mxu1 %v3685_v27  ;;  %3210 = vmatprep.mubr.bf16.mxu0 %v3939_v28 }
  0x32   : > { %3306 = vmatprep.mubr.bf16.mxu1 %v3939_v28 }
  0x33   : > { %3201 = vmatpush3.bf16.msra.mxu0 %v3684_v26  ;;  %v3746_v26 = vld [vmem:[%s4371_s1 + $0x258] sm:$0xff]  }
  0x34   : > { %3297 = vmatpush3.bf16.msra.mxu1 %v3685_v27  ;;  %3202 = vmatprep.subr.bf16.mxu0 %v3686_v29  ;;  %v3747_v27 = vld [vmem:[%s4371_s1 + $0x358] sm:$0xff]  }
  0x35   : > { %3298 = vmatprep.subr.bf16.mxu1 %v3687_v30 }
  0x37   : > { %3203 = vmatpush3.bf16.msra.mxu0 %v3686_v29  ;;  %v3748_v29 = vld [vmem:[%s4371_s1 + $0x260] sm:$0xff]  }
  0x38   : > { %3299 = vmatpush3.bf16.msra.mxu1 %v3687_v30  ;;  %3204 = vmatprep.subr.bf16.mxu0 %v3688_v31  ;;  %v3749_v30 = vld [vmem:[%s4371_s1 + $0x360] sm:$0xff]  }
  0x39   : > { %3300 = vmatprep.subr.bf16.mxu1 %v3689_v32 }
  0x3b   : > { %3205 = vmatpush3.bf16.msra.mxu0 %v3688_v31  ;;  %v3750_v31 = vld [vmem:[%s4371_s1 + $0x268] sm:$0xff]  }
  0x3c   : > { %3301 = vmatpush3.bf16.msra.mxu1 %v3689_v32  ;;  %3206 = vmatprep.subr.bf16.mxu0 %v3691_v33  ;;  %v3751_v32 = vld [vmem:[%s4371_s1 + $0x368] sm:$0xff]  }
  0x3d   : > { %3302 = vmatprep.subr.bf16.mxu1 %v3692_v34 }
  0x3f   : > { %3207 = vmatpush3.bf16.msra.mxu0 %v3691_v33  ;;  %v3752_v33 = vld [vmem:[%s4371_s1 + $0x270] sm:$0xff]  }
  0x40   : > { %3303 = vmatpush3.bf16.msra.mxu1 %v3692_v34  ;;  %3208 = vmatprep.subr.bf16.mxu0 %v3694_v35  ;;  %v3754_v34 = vld [vmem:[%s4371_s1 + $0x278] sm:$0xff]  }
  0x41   : > { %3304 = vmatprep.subr.bf16.mxu1 %v3695_v36 }
  0x43   : > { %3209 = vmatpush3.bf16.msra.mxu0 %v3694_v35  ;;  %v3755_v35 = vld [vmem:[%s4371_s1 + $0x378] sm:$0xff]  }
  0x44   : > { %3305 = vmatpush3.bf16.msra.mxu1 %v3695_v36  ;;  %3218 = vmatprep.subr.bf16.mxu0 %v3697_v37  ;;  %v3756_v36 = vld [vmem:[%s4371_s1 + $0x200] sm:$0xff]  }
  0x45   : > { %3314 = vmatprep.subr.bf16.mxu1 %v3698_v38 }
  0x46   : > { %3211 = vmatmul.mubr.bf16.vlgmr.msra.gmra.mrb[0].mxu0 %v3976_v39 }
  0x47   : > { %3219 = vmatpush3.bf16.msra.mxu0 %v3697_v37  ;;  %3307 = vmatmul.mubr.bf16.vlgmr.msra.gmra.mrb[0].mxu1 %v3976_v39  ;;  %v3757_v37 = vld [vmem:[%s4371_s1 + $0x300] sm:$0xff]  }
  0x48   : > { %3315 = vmatpush3.bf16.msra.mxu1 %v3698_v38  ;;  %3220 = vmatprep.subr.bf16.mxu0 %v3700_v40  ;;  %v3758_v38 = vld [vmem:[%s4371_s1 + $0x208] sm:$0xff]  }
  0x49   : > { %3316 = vmatprep.subr.bf16.mxu1 %v3701_v41  ;;  %3214 = vmatprep.mubr.bf16.mxu0 %v3985_v42 }
  0x4a   : > { %3310 = vmatprep.mubr.bf16.mxu1 %v3985_v42 }
  0x4b   : > { %3221 = vmatpush3.bf16.msra.mxu0 %v3700_v40  ;;  %v3759_v40 = vld [vmem:[%s4371_s1 + $0x308] sm:$0xff]  }
  0x4c   : > { %3317 = vmatpush3.bf16.msra.mxu1 %v3701_v41  ;;  %3222 = vmatprep.subr.bf16.mxu0 %v3702_v43  ;;  %v3760_v41 = vld [vmem:[%s4371_s1 + $0x210] sm:$0xff]  }
  0x4d   : > { %3318 = vmatprep.subr.bf16.mxu1 %v3703_v44 }
  0x4e   : > { %3215 = vmatmul.mubr.bf16.gmra.mrb[4].mxu0 %v3998_v45 }
  0x4f   : > { %3223 = vmatpush3.bf16.msra.mxu0 %v3702_v43  ;;  %3311 = vmatmul.mubr.bf16.gmra.mrb[4].mxu1 %v3998_v45  ;;  %v3761_v43 = vld [vmem:[%s4371_s1 + $0x310] sm:$0xff]  }
  0x50   : > { %3319 = vmatpush3.bf16.msra.mxu1 %v3703_v44  ;;  %3224 = vmatprep.subr.bf16.mxu0 %v3704_v46  ;;  %v3763_v44 = vld [vmem:[%s4371_s1 + $0x318] sm:$0xff]  }
  0x51   : > { %3320 = vmatprep.subr.bf16.mxu1 %v3705_v47  ;;  %3234 = vmatprep.mubr.bf16.mxu0 %v4007_v48 }
  0x52   : > { %3330 = vmatprep.mubr.bf16.mxu1 %v4007_v48 }
  0x53   : > { %3225 = vmatpush3.bf16.msra.mxu0 %v3704_v46  ;;  %v3765_v46 = vld [vmem:[%s4371_s1 + $0x320] sm:$0xff]  }
  0x54   : > { %3321 = vmatpush3.bf16.msra.mxu1 %v3705_v47  ;;  %3226 = vmatprep.subr.bf16.mxu0 %v3706_v49  ;;  %v3767_v47 = vld [vmem:[%s4371_s1 + $0x328] sm:$0xff]  }
  0x55   : > { %3322 = vmatprep.subr.bf16.mxu1 %v3707_v50 }
  0x57   : > { %3227 = vmatpush3.bf16.msra.mxu0 %v3706_v49  ;;  %v3768_v49 = vld [vmem:[%s4371_s1 + $0x230] sm:$0xff]  }
  0x58   : > { %3323 = vmatpush3.bf16.msra.mxu1 %v3707_v50  ;;  %3228 = vmatprep.subr.bf16.mxu0 %v3708_v51  ;;  %v3770_v50 = vld [vmem:[%s4371_s1 + $0x238] sm:$0xff]  }
  0x59   : > { %3324 = vmatprep.subr.bf16.mxu1 %v3709_v52 }
  0x5b   : > { %3229 = vmatpush3.bf16.msra.mxu0 %v3708_v51  ;;  %v3771_v51 = vld [vmem:[%s4371_s1 + $0x338] sm:$0xff]  }
  0x5c   : > { %3325 = vmatpush3.bf16.msra.mxu1 %v3709_v52  ;;  %3230 = vmatprep.subr.bf16.mxu0 %v3711_v53  ;;  %v3772_v52 = vld [vmem:[%s4371_s1 + $0x280] sm:$0xff]  }
  0x5d   : > { %3326 = vmatprep.subr.bf16.mxu1 %v3712_v54 }
  0x5f   : > { %3231 = vmatpush3.bf16.msra.mxu0 %v3711_v53  ;;  %v3773_v53 = vld [vmem:[%s4371_s1 + $0x380] sm:$0xff]  }
  0x60   : > { %3327 = vmatpush3.bf16.msra.mxu1 %v3712_v54  ;;  %3232 = vmatprep.subr.bf16.mxu0 %v3714_v55  ;;  %v3774_v54 = vld [vmem:[%s4371_s1 + $0x288] sm:$0xff]  }
  0x61   : > { %3328 = vmatprep.subr.bf16.mxu1 %v3715_v56 }
  0x63   : > { %3233 = vmatpush3.bf16.msra.mxu0 %v3714_v55  ;;  %v3775_v55 = vld [vmem:[%s4371_s1 + $0x388] sm:$0xff]  }
  0x64   : > { %3329 = vmatpush3.bf16.msra.mxu1 %v3715_v56  ;;  %3242 = vmatprep.subr.bf16.mxu0 %v3717_v57  ;;  %v3776_v56 = vld [vmem:[%s4371_s1 + $0x290] sm:$0xff]  }
  0x65   : > { %3338 = vmatprep.subr.bf16.mxu1 %v3718_v58 }
  0x66   : > { %3235 = vmatmul.mubr.bf16.vlgmr.msra.gmra.mrb[0].mxu0 %v4044_v59 }
  0x67   : > { %3243 = vmatpush3.bf16.msra.mxu0 %v3717_v57  ;;  %3331 = vmatmul.mubr.bf16.vlgmr.msra.gmra.mrb[0].mxu1 %v4044_v59  ;;  %v3777_v57 = vld [vmem:[%s4371_s1 + $0x390] sm:$0xff]  }
  0x68   : > { %3339 = vmatpush3.bf16.msra.mxu1 %v3718_v58  ;;  %3244 = vmatprep.subr.bf16.mxu0 %v3720_v60  ;;  %v3779_v58 = vld [vmem:[%s4371_s1 + $0x398] sm:$0xff]  }
  0x69   : > { %3340 = vmatprep.subr.bf16.mxu1 %v3721_v61  ;;  %3238 = vmatprep.mubr.bf16.mxu0 %v4053_v62 }
  0x6a   : > { %3334 = vmatprep.mubr.bf16.mxu1 %v4053_v62 }
  0x6b   : > { %3245 = vmatpush3.bf16.msra.mxu0 %v3720_v60  ;;  %v3781_v60 = vld [vmem:[%s4371_s1 + $0x3a0] sm:$0xff]  }
  0x6c   : > { %3341 = vmatpush3.bf16.msra.mxu1 %v3721_v61  ;;  %3246 = vmatprep.subr.bf16.mxu0 %v3722_v63  ;;  %v3783_v61 = vld [vmem:[%s4371_s1 + $0x3a8] sm:$0xff]  }
  0x6d   : > { %3342 = vmatprep.subr.bf16.mxu1 %v3723_v1 }
  0x6e   : > { %3239 = vmatmul.mubr.bf16.gmra.mrb[4].mxu0 %v4061_v0 }
  0x6f   : > { %3247 = vmatpush3.bf16.msra.mxu0 %v3722_v63  ;;  %3335 = vmatmul.mubr.bf16.gmra.mrb[4].mxu1 %v4061_v0  ;;  %v3784_v63 = vld [vmem:[%s4371_s1 + $0x2b0] sm:$0xff]  }
  0x70   : > { %3343 = vmatpush3.bf16.msra.mxu1 %v3723_v1  ;;  %3248 = vmatprep.subr.bf16.mxu0 %v3724_v2  ;;  %v3786_v1 = vld [vmem:[%s4371_s1 + $0x2b8] sm:$0xff]  }
  0x71   : > { %3344 = vmatprep.subr.bf16.mxu1 %v3725_v3  ;;  %3258 = vmatprep.mubr.bf16.mxu0 %v4075_v4 }
  0x72   : > { %3354 = vmatprep.mubr.bf16.mxu1 %v4075_v4 }
  0x73   : > { %3249 = vmatpush3.bf16.msra.mxu0 %v3724_v2  ;;  %v3787_v2 = vld [vmem:[%s4371_s1 + $0x3b8] sm:$0xff]  }
  0x74   : > { %3345 = vmatpush3.bf16.msra.mxu1 %v3725_v3  ;;  %3250 = vmatprep.subr.bf16.mxu0 %v3726_v5  ;;  %v3788_v3 = vld [vmem:[%s4371_s1 + $0x2c0] sm:$0xff]  }
  0x75   : > { %3346 = vmatprep.subr.bf16.mxu1 %v3727_v6 }
  0x77   : > { %3251 = vmatpush3.bf16.msra.mxu0 %v3726_v5  ;;  %v3789_v5 = vld [vmem:[%s4371_s1 + $0x3c0] sm:$0xff]  }
  0x78   : > { %3347 = vmatpush3.bf16.msra.mxu1 %v3727_v6  ;;  %3252 = vmatprep.subr.bf16.mxu0 %v3728_v7  ;;  %v3790_v6 = vld [vmem:[%s4371_s1 + $0x2c8] sm:$0xff]  }
  0x79   : > { %3348 = vmatprep.subr.bf16.mxu1 %v3729_v8 }
  0x7b   : > { %3253 = vmatpush3.bf16.msra.mxu0 %v3728_v7  ;;  %v3791_v7 = vld [vmem:[%s4371_s1 + $0x3c8] sm:$0xff]  }
  0x7c   : > { %3349 = vmatpush3.bf16.msra.mxu1 %v3729_v8  ;;  %3254 = vmatprep.subr.bf16.mxu0 %v3732_v9  ;;  %v3792_v8 = vld [vmem:[%s4371_s1 + $0x2d0] sm:$0xff]  }
  0x7d   : > { %3350 = vmatprep.subr.bf16.mxu1 %v3733_v10 }
  0x7f   : > { %3255 = vmatpush3.bf16.msra.mxu0 %v3732_v9  ;;  %v3793_v9 = vld [vmem:[%s4371_s1 + $0x3d0] sm:$0xff]  }
  0x80   : > { %3351 = vmatpush3.bf16.msra.mxu1 %v3733_v10  ;;  %3256 = vmatprep.subr.bf16.mxu0 %v3734_v12  ;;  %v3795_v10 = vld [vmem:[%s4371_s1 + $0x3d8] sm:$0xff]  }
  0x81   : > { %3352 = vmatprep.subr.bf16.mxu1 %v3735_v13 }
  0x83   : > { %3257 = vmatpush3.bf16.msra.mxu0 %v3734_v12  ;;  %v3797_v12 = vld [vmem:[%s4371_s1 + $0x3e0] sm:$0xff]  }
  0x84   : > { %3353 = vmatpush3.bf16.msra.mxu1 %v3735_v13  ;;  %3362 = vmatprep.subr.bf16.mxu0 %v3738_v14  ;;  %v3799_v13 = vld [vmem:[%s4371_s1 + $0x3e8] sm:$0xff]  }
  0x85   : > { %3458 = vmatprep.subr.bf16.mxu1 %v3739_v15 }
  0x86   : > { %3259 = vmatmul.mubr.bf16.vlgmr.msra.gmra.mrb[0].mxu0 %v4112_v16 }
  0x87   : > { %3355 = vmatmul.mubr.bf16.vlgmr.msra.gmra.mrb[0].mxu1 %v4112_v16  ;;  %3363 = vmatpush3.bf16.msra.mxu0 %v3738_v14  ;;  %v3800_v14 = vld [vmem:[%s4371_s1 + $0x2f0] sm:$0xff]  }
  0x88   : > { %3459 = vmatpush3.bf16.msra.mxu1 %v3739_v15  ;;  %3364 = vmatprep.subr.bf16.mxu0 %v3740_v17  ;;  %v3802_v15 = vld [vmem:[%s4371_s1 + $0x2f8] sm:$0xff]  }
  0x89   : > { %3460 = vmatprep.subr.bf16.mxu1 %v3741_v18  ;;  %3262 = vmatprep.mubr.bf16.mxu0 %v4121_v20 }
  0x8a   : > { %3358 = vmatprep.mubr.bf16.mxu1 %v4121_v20 }
  0x8b   : > { %3365 = vmatpush3.bf16.msra.mxu0 %v3740_v17  ;;  %v3803_v17 = vld [vmem:[%s4371_s1 + $0x3f8] sm:$0xff]  }
  0x8c   : > { %3461 = vmatpush3.bf16.msra.mxu1 %v3741_v18  ;;  %3366 = vmatprep.subr.bf16.mxu0 %v3744_v23 }
  0x8d   : > { %3462 = vmatprep.subr.bf16.mxu1 %v3745_v25 }
  0x8e   : > { %3263 = vmatmul.mubr.bf16.gmra.mrb[4].mxu0 %v4126_v21 }
  0x8f   : > { %3359 = vmatmul.mubr.bf16.gmra.mrb[4].mxu1 %v4126_v21  ;;  %3367 = vmatpush3.bf16.msra.mxu0 %v3744_v23 }
  0x90   : > { %3463 = vmatpush3.bf16.msra.mxu1 %v3745_v25  ;;  %3368 = vmatprep.subr.bf16.mxu0 %v3746_v26 }
  0x91   : > { %3464 = vmatprep.subr.bf16.mxu1 %v3747_v27  ;;  %3378 = vmatprep.mubr.bf16.mxu0 %v3882_v11 }
  0x92   : > { %3474 = vmatprep.mubr.bf16.mxu1 %v3882_v11  ;;  %v3753_v11 = vld [vmem:[%s4371_s1 + $0x370] sm:$0xff]  }
  0x93   : > { %3369 = vmatpush3.bf16.msra.mxu0 %v3746_v26 }
  0x94   : > { %3465 = vmatpush3.bf16.msra.mxu1 %v3747_v27  ;;  %3370 = vmatprep.subr.bf16.mxu0 %v3748_v29 }
  0x95   : > { %3466 = vmatprep.subr.bf16.mxu1 %v3749_v30 }
  0x97   : > { %3371 = vmatpush3.bf16.msra.mxu0 %v3748_v29 }
  0x98   : > { %3467 = vmatpush3.bf16.msra.mxu1 %v3749_v30  ;;  %3372 = vmatprep.subr.bf16.mxu0 %v3750_v31 }
  0x99   : > { %3468 = vmatprep.subr.bf16.mxu1 %v3751_v32 }
  0x9b   : > { %3373 = vmatpush3.bf16.msra.mxu0 %v3750_v31 }
  0x9c   : > { %3469 = vmatpush3.bf16.msra.mxu1 %v3751_v32  ;;  %3374 = vmatprep.subr.bf16.mxu0 %v3752_v33 }
  0x9d   : > { %3470 = vmatprep.subr.bf16.mxu1 %v3753_v11 }
  0x9f   : > { %3375 = vmatpush3.bf16.msra.mxu0 %v3752_v33 }
  0xa0   : > { %3471 = vmatpush3.bf16.msra.mxu1 %v3753_v11  ;;  %3376 = vmatprep.subr.bf16.mxu0 %v3754_v34 }
  0xa1   : > { %3472 = vmatprep.subr.bf16.mxu1 %v3755_v35 }
  0xa3   : > { %3377 = vmatpush3.bf16.msra.mxu0 %v3754_v34 }
  0xa4   : > { %3473 = vmatpush3.bf16.msra.mxu1 %v3755_v35  ;;  %3386 = vmatprep.subr.bf16.mxu0 %v3756_v36 }
  0xa5   : > { %3482 = vmatprep.subr.bf16.mxu1 %v3757_v37 }
  0xa6   : > { %3379 = vmatmul.mubr.bf16.vlgmr.msra.gmra.mrb[8].mxu0 %v3908_v19 }
  0xa7   : > { %3387 = vmatpush3.bf16.msra.mxu0 %v3756_v36  ;;  %3475 = vmatmul.mubr.bf16.vlgmr.msra.gmra.mrb[8].mxu1 %v3908_v19  ;;  %v3762_v19 = vld [vmem:[%s4371_s1 + $0x218] sm:$0xff]  }
  0xa8   : > { %3483 = vmatpush3.bf16.msra.mxu1 %v3757_v37  ;;  %3388 = vmatprep.subr.bf16.mxu0 %v3758_v38 }
  0xa9   : > { %3484 = vmatprep.subr.bf16.mxu1 %v3759_v40  ;;  %3382 = vmatprep.mubr.bf16.mxu0 %v3917_v22 }
  0xaa   : > { %3478 = vmatprep.mubr.bf16.mxu1 %v3917_v22  ;;  %v3764_v22 = vld [vmem:[%s4371_s1 + $0x220] sm:$0xff]  }
  0xab   : > { %3389 = vmatpush3.bf16.msra.mxu0 %v3758_v38 }
  0xac   : > { %3485 = vmatpush3.bf16.msra.mxu1 %v3759_v40  ;;  %3390 = vmatprep.subr.bf16.mxu0 %v3760_v41 }
  0xad   : > { %3486 = vmatprep.subr.bf16.mxu1 %v3761_v43 }
  0xae   : > { %3383 = vmatmul.mubr.bf16.gmra.mrb[12].mxu0 %v3925_v24 }
  0xaf   : > { %3391 = vmatpush3.bf16.msra.mxu0 %v3760_v41  ;;  %3479 = vmatmul.mubr.bf16.gmra.mrb[12].mxu1 %v3925_v24  ;;  %v3766_v24 = vld [vmem:[%s4371_s1 + $0x228] sm:$0xff]  }
  0xb0   : > { %3487 = vmatpush3.bf16.msra.mxu1 %v3761_v43  ;;  %3392 = vmatprep.subr.bf16.mxu0 %v3762_v19 }
  0xb1   : > { %3488 = vmatprep.subr.bf16.mxu1 %v3763_v44  ;;  %3402 = vmatprep.mubr.bf16.mxu0 %v3939_v28 }
  0xb2   : > { %3498 = vmatprep.mubr.bf16.mxu1 %v3939_v28  ;;  %v3769_v28 = vld [vmem:[%s4371_s1 + $0x330] sm:$0xff]  }
  0xb3   : > { %3393 = vmatpush3.bf16.msra.mxu0 %v3762_v19 }
  0xb4   : > { %3489 = vmatpush3.bf16.msra.mxu1 %v3763_v44  ;;  %3394 = vmatprep.subr.bf16.mxu0 %v3764_v22 }
  0xb5   : > { %3490 = vmatprep.subr.bf16.mxu1 %v3765_v46 }
  0xb7   : > { %3395 = vmatpush3.bf16.msra.mxu0 %v3764_v22 }
  0xb8   : > { %3491 = vmatpush3.bf16.msra.mxu1 %v3765_v46  ;;  %3396 = vmatprep.subr.bf16.mxu0 %v3766_v24 }
  0xb9   : > { %3492 = vmatprep.subr.bf16.mxu1 %v3767_v47 }
  0xbb   : > { %3397 = vmatpush3.bf16.msra.mxu0 %v3766_v24 }
  0xbc   : > { %3493 = vmatpush3.bf16.msra.mxu1 %v3767_v47  ;;  %3398 = vmatprep.subr.bf16.mxu0 %v3768_v49  ;;  %v2961_v47 = vld [vmem:[%s4372_s2] ss:$0 sm:$0xff] }
  0xbd   : > { %3494 = vmatprep.subr.bf16.mxu1 %v3769_v28 }
  0xbf   : > { %3399 = vmatpush3.bf16.msra.mxu0 %v3768_v49 }
  0xc0   : > { %3495 = vmatpush3.bf16.msra.mxu1 %v3769_v28  ;;  %3400 = vmatprep.subr.bf16.mxu0 %v3770_v50 }
  0xc1   : > { %3496 = vmatprep.subr.bf16.mxu1 %v3771_v51 }
  0xc3   : > { %3401 = vmatpush3.bf16.msra.mxu0 %v3770_v50 }
  0xc4   : > { %3497 = vmatpush3.bf16.msra.mxu1 %v3771_v51  ;;  %3410 = vmatprep.subr.bf16.mxu0 %v3772_v52 }
  0xc5   : > { %3506 = vmatprep.subr.bf16.mxu1 %v3773_v53 }
  0xc6   : > { %3403 = vmatmul.mubr.bf16.vlgmr.msra.gmra.mrb[8].mxu0 %v3976_v39 }
  0xc7   : > { %3411 = vmatpush3.bf16.msra.mxu0 %v3772_v52  ;;  %3499 = vmatmul.mubr.bf16.vlgmr.msra.gmra.mrb[8].mxu1 %v3976_v39  ;;  %v3778_v39 = vld [vmem:[%s4371_s1 + $0x298] sm:$0xff]  }
  0xc8   : > { %3507 = vmatpush3.bf16.msra.mxu1 %v3773_v53  ;;  %3412 = vmatprep.subr.bf16.mxu0 %v3774_v54 }
  0xc9   : > { %3508 = vmatprep.subr.bf16.mxu1 %v3775_v55  ;;  %3406 = vmatprep.mubr.bf16.mxu0 %v3985_v42 }
  0xca   : > { %3502 = vmatprep.mubr.bf16.mxu1 %v3985_v42  ;;  %v3780_v42 = vld [vmem:[%s4371_s1 + $0x2a0] sm:$0xff]  }
  0xcb   : > { %3413 = vmatpush3.bf16.msra.mxu0 %v3774_v54 }
  0xcc   : > { %3509 = vmatpush3.bf16.msra.mxu1 %v3775_v55  ;;  %3414 = vmatprep.subr.bf16.mxu0 %v3776_v56 }
  0xcd   : > { %3510 = vmatprep.subr.bf16.mxu1 %v3777_v57 }
  0xce   : > { %3407 = vmatmul.mubr.bf16.gmra.mrb[12].mxu0 %v3998_v45 }
  0xcf   : > { %3415 = vmatpush3.bf16.msra.mxu0 %v3776_v56  ;;  %3503 = vmatmul.mubr.bf16.gmra.mrb[12].mxu1 %v3998_v45  ;;  %v3782_v45 = vld [vmem:[%s4371_s1 + $0x2a8] sm:$0xff]  }
  0xd0   : > { %3511 = vmatpush3.bf16.msra.mxu1 %v3777_v57  ;;  %3416 = vmatprep.subr.bf16.mxu0 %v3778_v39 }
  0xd1   : > { %3512 = vmatprep.subr.bf16.mxu1 %v3779_v58  ;;  %3426 = vmatprep.mubr.bf16.mxu0 %v4007_v48 }
  0xd2   : > { %3522 = vmatprep.mubr.bf16.mxu1 %v4007_v48  ;;  %v3785_v48 = vld [vmem:[%s4371_s1 + $0x3b0] sm:$0xff]  }
  0xd3   : > { %3417 = vmatpush3.bf16.msra.mxu0 %v3778_v39 }
  0xd4   : > { %3513 = vmatpush3.bf16.msra.mxu1 %v3779_v58  ;;  %3418 = vmatprep.subr.bf16.mxu0 %v3780_v42 }
  0xd5   : > { %3514 = vmatprep.subr.bf16.mxu1 %v3781_v60 }
  0xd7   : > { %3419 = vmatpush3.bf16.msra.mxu0 %v3780_v42 }
  0xd8   : > { %3515 = vmatpush3.bf16.msra.mxu1 %v3781_v60  ;;  %3420 = vmatprep.subr.bf16.mxu0 %v3782_v45 }
  0xd9   : > { %3516 = vmatprep.subr.bf16.mxu1 %v3783_v61 }
  0xdb   : > { %3421 = vmatpush3.bf16.msra.mxu0 %v3782_v45 }
  0xdc   : > { %3517 = vmatpush3.bf16.msra.mxu1 %v3783_v61  ;;  %3422 = vmatprep.subr.bf16.mxu0 %v3784_v63 }
  0xdd   : > { %3518 = vmatprep.subr.bf16.mxu1 %v3785_v48 }
  0xdf   : > { %3423 = vmatpush3.bf16.msra.mxu0 %v3784_v63 }
  0xe0   : > { %3519 = vmatpush3.bf16.msra.mxu1 %v3785_v48  ;;  %3424 = vmatprep.subr.bf16.mxu0 %v3786_v1 }
  0xe1   : > { %3520 = vmatprep.subr.bf16.mxu1 %v3787_v2 }
  0xe3   : > { %3425 = vmatpush3.bf16.msra.mxu0 %v3786_v1 }
  0xe4   : > { %3521 = vmatpush3.bf16.msra.mxu1 %v3787_v2  ;;  %3434 = vmatprep.subr.bf16.mxu0 %v3788_v3 }
  0xe5   : > { %3530 = vmatprep.subr.bf16.mxu1 %v3789_v5 }
  0xe6   : > { %3427 = vmatmul.mubr.bf16.vlgmr.msra.gmra.mrb[8].mxu0 %v4044_v59 }
  0xe7   : > { %3435 = vmatpush3.bf16.msra.mxu0 %v3788_v3  ;;  %3523 = vmatmul.mubr.bf16.vlgmr.msra.gmra.mrb[8].mxu1 %v4044_v59  ;;  %v3794_v59 = vld [vmem:[%s4371_s1 + $0x2d8] sm:$0xff]  }
  0xe8   : > { %3531 = vmatpush3.bf16.msra.mxu1 %v3789_v5  ;;  %3436 = vmatprep.subr.bf16.mxu0 %v3790_v6 }
  0xe9   : > { %3532 = vmatprep.subr.bf16.mxu1 %v3791_v7  ;;  %3430 = vmatprep.mubr.bf16.mxu0 %v4053_v62 }
  0xea   : > { %3526 = vmatprep.mubr.bf16.mxu1 %v4053_v62  ;;  %v3796_v62 = vld [vmem:[%s4371_s1 + $0x2e0] sm:$0xff]  }
  0xeb   : > { %3437 = vmatpush3.bf16.msra.mxu0 %v3790_v6 }
  0xec   : > { %3533 = vmatpush3.bf16.msra.mxu1 %v3791_v7  ;;  %3438 = vmatprep.subr.bf16.mxu0 %v3792_v8 }
  0xed   : > { %3534 = vmatprep.subr.bf16.mxu1 %v3793_v9 }
  0xee   : > { %3431 = vmatmul.mubr.bf16.gmra.mrb[12].mxu0 %v4061_v0 }
  0xef   : > { %3439 = vmatpush3.bf16.msra.mxu0 %v3792_v8  ;;  %3527 = vmatmul.mubr.bf16.gmra.mrb[12].mxu1 %v4061_v0  ;;  %v3798_v0 = vld [vmem:[%s4371_s1 + $0x2e8] sm:$0xff]  }
  0xf0   : > { %3535 = vmatpush3.bf16.msra.mxu1 %v3793_v9  ;;  %3440 = vmatprep.subr.bf16.mxu0 %v3794_v59 }
  0xf1   : > { %3536 = vmatprep.subr.bf16.mxu1 %v3795_v10  ;;  %3450 = vmatprep.mubr.bf16.mxu0 %v4075_v4 }
  0xf2   : > { %3546 = vmatprep.mubr.bf16.mxu1 %v4075_v4  ;;  %v3801_v4 = vld [vmem:[%s4371_s1 + $0x3f0] sm:$0xff]  }
  0xf3   : > { %3441 = vmatpush3.bf16.msra.mxu0 %v3794_v59 }
  0xf4   : > { %3537 = vmatpush3.bf16.msra.mxu1 %v3795_v10  ;;  %3442 = vmatprep.subr.bf16.mxu0 %v3796_v62 }
  0xf5   : > { %3538 = vmatprep.subr.bf16.mxu1 %v3797_v12 }
  0xf7   : > { %3443 = vmatpush3.bf16.msra.mxu0 %v3796_v62 }
  0xf8   : > { %3539 = vmatpush3.bf16.msra.mxu1 %v3797_v12  ;;  %3444 = vmatprep.subr.bf16.mxu0 %v3798_v0 }
  0xf9   : > { %3540 = vmatprep.subr.bf16.mxu1 %v3799_v13 }
  0xfb   : > { %3445 = vmatpush3.bf16.msra.mxu0 %v3798_v0 }
  0xfc   : > { %3541 = vmatpush3.bf16.msra.mxu1 %v3799_v13  ;;  %3446 = vmatprep.subr.bf16.mxu0 %v3800_v14 }
  0xfd   : > { %3542 = vmatprep.subr.bf16.mxu1 %v3801_v4 }
  0xff   : > { %3447 = vmatpush3.bf16.msra.mxu0 %v3800_v14 }
 0x100   : > { %3543 = vmatpush3.bf16.msra.mxu1 %v3801_v4  ;;  %3448 = vmatprep.subr.bf16.mxu0 %v3802_v15 }
 0x101   : > { %3544 = vmatprep.subr.bf16.mxu1 %v3803_v17 }
 0x103   : > { %3449 = vmatpush3.bf16.msra.mxu0 %v3802_v15 }
 0x104   : > { %3545 = vmatpush3.bf16.msra.mxu1 %v3803_v17 }
 0x106   : > { %3451 = vmatmul.mubr.bf16.vlgmr.msra.gmra.mrb[8].mxu0 %v4112_v16 }
 0x107   : > { %3547 = vmatmul.mubr.bf16.vlgmr.msra.gmra.mrb[8].mxu1 %v4112_v16  ;;  %3454 = vmatprep.mubr.bf16.mxu0 %v4121_v20 }
 0x108   : > { %3550 = vmatprep.mubr.bf16.mxu1 %v4121_v20 }
 0x10e   : > { %3455 = vmatmul.mubr.bf16.gmra.mrb[12].mxu0 %v4126_v21 }
 0x10f   : > { %3551 = vmatmul.mubr.bf16.gmra.mrb[12].mxu1 %v4126_v21 }
 0x159   : > { %v3260_v18 = vpop.f32.mrb[0].mxu0 }
 0x15a   : > { %v3356_v23 = vpop.f32.mrb[0].mxu1  ;;  %v783_v25 = vpop.f32.mrb[1].mxu0 }
 0x15b   : > { %v1352_v26 = vmax.f32 %v3260_v18, %v3356_v23  ;;  %v1313_v27 = vpop.f32.mrb[1].mxu1  ;;  %v3261_v29 = vpop.f32.mrb[2].mxu0 }
 0x15c   : > { %v1350_v30 = vmax.f32 %v783_v25, %v1313_v27  ;;  %v3357_v31 = vpop.f32.mrb[2].mxu1  ;;  %v786_v32 = vpop.f32.mrb[3].mxu0 }
 0x15d   : > { %v1353_v33 = vmax.f32 %v3261_v29, %v3357_v31  ;;  %v1316_v11 = vpop.f32.mrb[3].mxu1  ;;  %v2491_v29 = vld [vmem:[%s4351_s6 + $0x18] sm:$0x1] }
 0x15e   : > { %v1351_v16 = vmax.f32 %v786_v32, %v1316_v11 }
 0x161   : > { %v3264_v34 = vpop.f32.mrb[4].mxu0 }
 0x162   : > { %v3360_v35 = vpop.f32.mrb[4].mxu1  ;;  %v799_v36 = vpop.f32.mrb[5].mxu0 }
 0x163   : > { %v1356_v20 = vmax.f32 %v3264_v34, %v3360_v35  ;;  %v1329_v37 = vpop.f32.mrb[5].mxu1  ;;  %v3265_v38 = vpop.f32.mrb[6].mxu0 }
 0x164   : > { %v1354_v40 = vmax.f32 %v799_v36, %v1329_v37  ;;  %v3361_v21 = vpop.f32.mrb[6].mxu1  ;;  %v802_v41 = vpop.f32.mrb[7].mxu0 }
 0x165   : > { %v1332_v43 = vpop.f32.mrb[7].mxu1 }
 0x166   : > { %v1355_v19 = vmax.f32 %v802_v41, %v1332_v43 }
 0x1d9   : > { %v3452_v44 = vpop.f32.mrb[8].mxu0 }
 0x1da   : > { %v1889_v22 = vmax.f32 %v1352_v26, %v3452_v44  ;;  %v3548_v46 = vpop.f32.mrb[8].mxu1  ;;  %v1850_v24 = vpop.f32.mrb[9].mxu0 }
 0x1db   : > { %v1887_v49 = vmax.f32 %v1350_v30, %v1850_v24  ;;  %v2387_v28 = vpop.f32.mrb[9].mxu1  ;;  %v3453_v50 = vpop.f32.mrb[10].mxu0 }
 0x1dc   : > { %v2426_v51 = vmax.f32 %v1889_v22, %v3548_v46  ;;  %v1890_v52 = vmax.f32 %v1353_v33, %v3453_v50  ;;  %v3549_v53 = vpop.f32.mrb[10].mxu1  ;;  %v1853_v54 = vpop.f32.mrb[11].mxu0 }
 0x1dd   : > { %v2424_v55 = vmax.f32 %v1887_v49, %v2387_v28  ;;  %v1888_v56 = vmax.f32 %v1351_v16, %v1853_v54  ;;  %v2390_v57 = vpop.f32.mrb[11].mxu1 }
 0x1de   : > { %v2440_v39 = vadd.f32 %v2961_v47, %v2426_v51  ;;  %v2427_v58 = vmax.f32 %v1890_v52, %v3549_v53 }
 0x1df   : > { %v2438_v42 = vadd.f32 %v2961_v47, %v2424_v55  ;;  %v2425_v60 = vmax.f32 %v1888_v56, %v2390_v57 }
 0x1e0   : > { %v2447_v45 = vmax.f32 %v2440_v39, 0.0  ;;  %v2441_v61 = vadd.f32 %v2961_v47, %v2427_v58 }
 0x1e1   : > { %v2445_v63 = vmax.f32 %v2438_v42, 0.0  ;;  %v2439_v48 = vadd.f32 %v2961_v47, %v2425_v60  ;;  %v3456_v1 = vpop.f32.mrb[12].mxu0 }
 0x1e2   : > { %v2973_v2 = vpack.c.bf16 %v2447_v45, %v2447_v45  ;;  %v2448_v3 = vmax.f32 %v2441_v61, 0.0  ;;  %v1893_v5 = vmax.f32 %v1356_v20, %v3456_v1  ;;  %v3552_v6 = vpop.f32.mrb[12].mxu1  ;;  %v1866_v7 = vpop.f32.mrb[13].mxu0 }
 0x1e3   : > { %v2971_v8 = vpack.c.bf16 %v2445_v63, %v2445_v63  ;;  %v2446_v9 = vmax.f32 %v2439_v48, 0.0  ;;  %v1891_v59 = vmax.f32 %v1354_v40, %v1866_v7  ;;  %v2403_v10 = vpop.f32.mrb[13].mxu1  ;;  %v3457_v62 = vpop.f32.mrb[14].mxu0 }
 0x1e4   : > { %2484 = vst.msk [vmem:[%s4351_s6 + $0x8] sm:$0xf] %vm2481_vm0, %v2973_v2  ;;  %v2974_v12 = vpack.c.bf16 %v2448_v3, %v2448_v3  ;;  %v2430_v0 = vmax.f32 %v1893_v5, %v3552_v6  ;;  %v3553_v13 = vpop.f32.mrb[14].mxu1  ;;  %v1869_v14 = vpop.f32.mrb[15].mxu0 }
 0x1e5   : > { %2482 = vst.msk [vmem:[%s4351_s6] sm:$0xf] %vm2481_vm0, %v2971_v8  ;;  %v2972_v4 = vpack.c.bf16 %v2446_v9, %v2446_v9  ;;  %v2428_v15 = vmax.f32 %v1891_v59, %v2403_v10  ;;  %v1892_v17 = vmax.f32 %v1355_v19, %v1869_v14  ;;  %v2406_v18 = vpop.f32.mrb[15].mxu1 }
 0x1e6   : > { %2485 = vst.msk [vmem:[%s4351_s6 + $0xc] sm:$0xf] %vm2481_vm0, %v2974_v12  ;;  %v2444_v23 = vadd.f32 %v2961_v47, %v2430_v0 }
 0x1e7   : > { %2483 = vst.msk [vmem:[%s4351_s6 + $0x4] sm:$0xf] %vm2481_vm0, %v2972_v4  ;;  %v2442_v25 = vadd.f32 %v2961_v47, %v2428_v15  ;;  %v2429_v26 = vmax.f32 %v1892_v17, %v2406_v18 }
 0x1e8   : > { %v2451_v27 = vmax.f32 %v2444_v23, 0.0 }
 0x1e9   : > { %v2449_v30 = vmax.f32 %v2442_v25, 0.0  ;;  %v2443_v31 = vadd.f32 %v2961_v47, %v2429_v26 }
 0x1ea   : > { %v2977_v32 = vpack.c.bf16 %v2451_v27, %v2451_v27 }
 0x1eb   : > { %v2975_v33 = vpack.c.bf16 %v2449_v30, %v2449_v30  ;;  %v2450_v11 = vmax.f32 %v2443_v31, 0.0 }
 0x1ec   : > { %v2492_v16 = vsel %vm2490_vm3, %v2977_v32, %v2491_v29 }
 0x1ed   : > { %2493 = vst [vmem:[%s4351_s6 + $0x18] sm:$0x1] %v2492_v16  ;;  %2486 = vst.msk [vmem:[%s4351_s6 + $0x10] sm:$0xf] %vm2481_vm0, %v2975_v33  ;;  %v2976_v34 = vpack.c.bf16 %v2450_v11, %v2450_v11 }
 0x1ef   : > { %2487 = vst.msk [vmem:[%s4351_s6 + $0x14] sm:$0xf] %vm2481_vm0, %v2976_v34 }
 0x1f0 PF: > { %s13_s12 = sadd.s32 1, %s3810_s12  }
 0x1f1   : > { %p10_p4 = scmp.ge.s32.totalorder %s13_s12, 4  }
 0x1f3   :  { %12 = sbr.rel (!%p10_p4) target bundleno = 1 (0x1), region = 80 }

// kernel: forward.5
= control target key start
LH: loop header
LB: loop body
LE: loop exit
PB: predicated region body
PF: predicated region fallthrough
CT: control target
= control target key end

     0   :  { %v439_v27 = vlaneseq  ;;  %v3328_v35 = vmov 1966171168   ;;  %vm3330_vm0 = vmmov 0   ;;  %s4092_s0 = inlined_call_operand.vmem [shape: bf16[2,3136], index: 0, kind: input, shape index: {}]   ;;  %s4093_s1 = inlined_call_operand.vmem [shape: bf16[3136,128], index: 1, kind: input, shape index: {}]   ;;  %s4094_s2 = inlined_call_operand.vmem [shape: f32[1,128], index: 2, kind: input, shape index: {}]   ;;  %s4095_s3 = inlined_call_operand.vmem [shape: bf16[128,64], index: 3, kind: input, shape index: {}]   ;;  %s4096_s4 = inlined_call_operand.vmem [shape: f32[1,64], index: 4, kind: input, shape index: {}]   ;;  %s4097_s5 = inlined_call_operand.vmem [shape: bf16[64,10], index: 5, kind: input, shape index: {}]   ;;  %s4098_s6 = inlined_call_operand.vmem [shape: f32[1,10], index: 6, kind: input, shape index: {}]   ;;  %s4099_s7 = inlined_call_operand.hbm [shape: f32[2,10], index: 7, kind: output, shape index: {}]  }
   0x1   :  { %v3089_v0 = vld [vmem:[%s4093_s1 + $0x40] sm:$0xff]   ;;  %v3093_v4 = vld [vmem:[%s4093_s1 + $0x48] sm:$0xff]   ;;  %v3097_v8 = vld [vmem:[%s4093_s1 + $0x50] sm:$0xff]   ;;  %v437_v36 = vunpack.c.l.s4 %v3328_v35 }
   0x2   :  { %v3090_v1 = vld [vmem:[%s4093_s1] sm:$0xff]   ;;  %2758 = vmatprep.subr.bf16.mxu0 %v3089_v0  ;;  %v3094_v5 = vld [vmem:[%s4093_s1 + $0x8] sm:$0xff]   ;;  %v3098_v9 = vld [vmem:[%s4093_s1 + $0x10] sm:$0xff]   ;;  %v440_v32 = vshrl.u32 %v439_v27, 7 }
   0x3   :  { %v3091_v2 = vld [vmem:[%s4093_s1 + $0xc0] sm:$0xff]   ;;  %2759 = vmatpush3.bf16.msra.mxu0 %v3090_v1  ;;  %v3095_v6 = vld [vmem:[%s4093_s1 + $0xc8] sm:$0xff]   ;;  %v3099_v10 = vld [vmem:[%s4093_s1 + $0xd0] sm:$0xff]   ;;  %v438_v39 = vunpack.c.0.s8 %v437_v36 }
   0x4   :  { %v3092_v3 = vld [vmem:[%s4093_s1 + $0x80] sm:$0xff]   ;;  %2780 = vmatprep.subr.bf16.mxu1 %v3091_v2  ;;  %2760 = vmatprep.subr.bf16.mxu0 %v3093_v4  ;;  %v3096_v7 = vld [vmem:[%s4093_s1 + $0x88] sm:$0xff]   ;;  %v3100_v11 = vld [vmem:[%s4093_s1 + $0x90] sm:$0xff]  }
   0x5   :  { %2781 = vmatpush3.bf16.msra.mxu1 %v3092_v3  ;;  %v3101_v12 = vld [vmem:[%s4093_s1 + $0x58] sm:$0xff]   ;;  %v3105_v16 = vld [vmem:[%s4093_s1 + $0x60] sm:$0xff]   ;;  %v3109_v20 = vld [vmem:[%s4093_s1 + $0x68] sm:$0xff]   ;;  %v3477_v41 = vsub.s32 %v438_v39, %v440_v32 }
   0x6   :  { %2782 = vmatprep.subr.bf16.mxu1 %v3095_v6  ;;  %v3102_v13 = vld [vmem:[%s4093_s1 + $0x18] sm:$0xff]   ;;  %v3106_v17 = vld [vmem:[%s4093_s1 + $0x20] sm:$0xff]   ;;  %v3110_v21 = vld [vmem:[%s4093_s1 + $0x28] sm:$0xff]  }
   0x7   :  { %2761 = vmatpush3.bf16.msra.mxu0 %v3094_v5  ;;  %v3103_v14 = vld [vmem:[%s4093_s1 + $0xd8] sm:$0xff]   ;;  %v3107_v18 = vld [vmem:[%s4093_s1 + $0xe0] sm:$0xff]   ;;  %v3111_v22 = vld [vmem:[%s4093_s1 + $0xe8] sm:$0xff]  }
   0x8   :  { %2762 = vmatprep.subr.bf16.mxu0 %v3097_v8  ;;  %v3104_v15 = vld [vmem:[%s4093_s1 + $0x98] sm:$0xff]   ;;  %v3108_v19 = vld [vmem:[%s4093_s1 + $0xa0] sm:$0xff]   ;;  %v3112_v23 = vld [vmem:[%s4093_s1 + $0xa8] sm:$0xff]  }
   0x9   :  { %2783 = vmatpush3.bf16.msra.mxu1 %v3096_v7  ;;  %v3113_v24 = vld [vmem:[%s4093_s1 + $0x70] sm:$0xff]   ;;  %v3117_v29 = vld [vmem:[%s4093_s1 + $0x78] sm:$0xff]   ;;  %v28_v33 = vld [vmem:[%s4092_s0] sm:$0xff] }
   0xa   :  { %2784 = vmatprep.subr.bf16.mxu1 %v3099_v10  ;;  %v3114_v25 = vld [vmem:[%s4093_s1 + $0x30] sm:$0xff]   ;;  %v3118_v30 = vld [vmem:[%s4093_s1 + $0x38] sm:$0xff]   ;;  %v3122_v37 = vld [vmem:[%s4093_s1 + $0x140] sm:$0xff]   ;;  %v435_v38 = vcombine.high %v28_v33, %v28_v33  ;;  %v442_v42 = vrot.slane %v28_v33, %v3477_v41 }
   0xb   :  { %2763 = vmatpush3.bf16.msra.mxu0 %v3098_v9  ;;  %v3115_v26 = vld [vmem:[%s4093_s1 + $0xf0] sm:$0xff]   ;;  %v3119_v31 = vld [vmem:[%s4093_s1 + $0xf8] sm:$0xff]   ;;  %v3124_v40 = vld [vmem:[%s4093_s1 + $0x1c0] sm:$0xff]  }
   0xc   :  { %2764 = vmatprep.subr.bf16.mxu0 %v3101_v12  ;;  %v3116_v28 = vld [vmem:[%s4093_s1 + $0xb0] sm:$0xff]   ;;  %v3121_v34 = vld [vmem:[%s4093_s1 + $0xb8] sm:$0xff]   ;;  %v3481_v43 = vrot.slane %v435_v38, %v3477_v41  ;;  %v450_v44 = vcombine.high %v442_v42, %v442_v42  ;;  %v458_v45 = vrot.slane %v442_v42, %v3477_v41  ;;  %v3123_v48 = vld [vmem:[%s4093_s1 + $0x100] sm:$0xff]  }
   0xd   :  { %2785 = vmatpush3.bf16.msra.mxu1 %v3100_v11  ;;  %v3126_v51 = vld [vmem:[%s4093_s1 + $0x148] sm:$0xff]   ;;  %v3125_v53 = vld [vmem:[%s4093_s1 + $0x180] sm:$0xff]   ;;  %v3130_v57 = vld [vmem:[%s4093_s1 + $0x150] sm:$0xff]  }
   0xe   :  { %2786 = vmatprep.subr.bf16.mxu1 %v3103_v14  ;;  %v451_v46 = vcombine.high %v3481_v43, %v3481_v43  ;;  %v472_v47 = vrot.slane %v450_v44, %v3477_v41  ;;  %v480_v50 = vcombine.high %v458_v45, %v458_v45  ;;  %v3128_v54 = vld [vmem:[%s4093_s1 + $0x1c8] sm:$0xff]   ;;  %v3132_v59 = vld [vmem:[%s4093_s1 + $0x1d0] sm:$0xff]   ;;  %v3134_v61 = vld [vmem:[%s4093_s1 + $0x158] sm:$0xff]  }
   0xf   :  { %2765 = vmatpush3.bf16.msra.mxu0 %v3102_v13  ;;  %v3127_v56 = vld [vmem:[%s4093_s1 + $0x108] sm:$0xff]   ;;  %v3131_v60 = vld [vmem:[%s4093_s1 + $0x110] sm:$0xff]   ;;  %v3136_v63 = vld [vmem:[%s4093_s1 + $0x1d8] sm:$0xff]  }
  0x10   :  { %2766 = vmatprep.subr.bf16.mxu0 %v3105_v16  ;;  %v479_v49 = vrot.slane %v451_v46, %v3477_v41  ;;  %1832 = vmatprep.mubr.bf16.mxu0 %v472_v47  ;;  %v482_v52 = vcombine.high %v472_v47, %v472_v47  ;;  %v3129_v58 = vld [vmem:[%s4093_s1 + $0x188] sm:$0xff]   ;;  %v3133_v62 = vld [vmem:[%s4093_s1 + $0x190] sm:$0xff]   ;;  %v3135_v0 = vld [vmem:[%s4093_s1 + $0x118] sm:$0xff]  }
  0x11   :  { %2787 = vmatpush3.bf16.msra.mxu1 %v3104_v15  ;;  %v3138_v1 = vld [vmem:[%s4093_s1 + $0x160] sm:$0xff]   ;;  %v3137_v2 = vld [vmem:[%s4093_s1 + $0x198] sm:$0xff]   ;;  %v3142_v5 = vld [vmem:[%s4093_s1 + $0x168] sm:$0xff]  }
  0x12   :  { %2788 = vmatprep.subr.bf16.mxu1 %v3107_v18  ;;  %v483_v55 = vcombine.high %v479_v49, %v479_v49  ;;  %1872 = vmatprep.mubr.bf16.mxu1 %v482_v52  ;;  %v3140_v3 = vld [vmem:[%s4093_s1 + $0x1e0] sm:$0xff]   ;;  %v3144_v7 = vld [vmem:[%s4093_s1 + $0x1e8] sm:$0xff]   ;;  %v3146_v9 = vld [vmem:[%s4093_s1 + $0x170] sm:$0xff]  }
  0x13   :  { %2767 = vmatpush3.bf16.msra.mxu0 %v3106_v17  ;;  %v3139_v4 = vld [vmem:[%s4093_s1 + $0x120] sm:$0xff]   ;;  %v3143_v8 = vld [vmem:[%s4093_s1 + $0x128] sm:$0xff]   ;;  %v3148_v11 = vld [vmem:[%s4093_s1 + $0x1f0] sm:$0xff]   ;;  %v465_v17 = vrot.slane %v3481_v43, %v3477_v41 }
  0x14   :  { %2768 = vmatprep.subr.bf16.mxu0 %v3109_v20  ;;  %v3141_v6 = vld [vmem:[%s4093_s1 + $0x1a0] sm:$0xff]   ;;  %v3145_v10 = vld [vmem:[%s4093_s1 + $0x1a8] sm:$0xff]   ;;  %v3147_v12 = vld [vmem:[%s4093_s1 + $0x130] sm:$0xff]  }
  0x15   :  { %2789 = vmatpush3.bf16.msra.mxu1 %v3108_v19  ;;  %v3150_v13 = vld [vmem:[%s4093_s1 + $0x178] sm:$0xff]   ;;  %v3149_v14 = vld [vmem:[%s4093_s1 + $0x1b0] sm:$0xff]   ;;  %v3154_v18 = vld [vmem:[%s4093_s1 + $0x240] sm:$0xff]  }
  0x16   :  { %2790 = vmatprep.subr.bf16.mxu1 %v3111_v22  ;;  %v3152_v15 = vld [vmem:[%s4093_s1 + $0x1f8] sm:$0xff]   ;;  %v3156_v20 = vld [vmem:[%s4093_s1 + $0x2c0] sm:$0xff]   ;;  %v481_v22 = vcombine.high %v465_v17, %v465_v17  ;;  %v3162_v27 = vld [vmem:[%s4093_s1 + $0x250] sm:$0xff]  }
  0x17   :  { %2769 = vmatpush3.bf16.msra.mxu0 %v3110_v21  ;;  %v3151_v16 = vld [vmem:[%s4093_s1 + $0x138] sm:$0xff]   ;;  %v3155_v21 = vld [vmem:[%s4093_s1 + $0x200] sm:$0xff]   ;;  %v3165_v32 = vld [vmem:[%s4093_s1 + $0x290] sm:$0xff]  }
  0x18   :  { %2770 = vmatprep.subr.bf16.mxu0 %v3113_v24  ;;  %v3153_v19 = vld [vmem:[%s4093_s1 + $0x1b8] sm:$0xff]   ;;  %v3157_v24 = vld [vmem:[%s4093_s1 + $0x280] sm:$0xff]   ;;  %v3174_v39 = vld [vmem:[%s4093_s1 + $0x268] sm:$0xff]  }
  0x19   :  { %2791 = vmatpush3.bf16.msra.mxu1 %v3112_v23  ;;  %v3158_v23 = vld [vmem:[%s4093_s1 + $0x248] sm:$0xff]   ;;  %v3168_v33 = vld [vmem:[%s4093_s1 + $0x2d8] sm:$0xff]   ;;  %v3170_v35 = vld [vmem:[%s4093_s1 + $0x260] sm:$0xff]  }
  0x1a   :  { %2792 = vmatprep.subr.bf16.mxu1 %v3115_v26  ;;  %v3159_v26 = vld [vmem:[%s4093_s1 + $0x208] sm:$0xff]   ;;  %v3169_v36 = vld [vmem:[%s4093_s1 + $0x298] sm:$0xff]   ;;  %v3171_v38 = vld [vmem:[%s4093_s1 + $0x220] sm:$0xff]  }
  0x1b   :  { %2771 = vmatpush3.bf16.msra.mxu0 %v3114_v25  ;;  %v3160_v25 = vld [vmem:[%s4093_s1 + $0x2c8] sm:$0xff]   ;;  %v3178_v44 = vld [vmem:[%s4093_s1 + $0x270] sm:$0xff]  }
  0x1c   :  { %2772 = vmatprep.subr.bf16.mxu0 %v3117_v29  ;;  %v3164_v29 = vld [vmem:[%s4093_s1 + $0x2d0] sm:$0xff]   ;;  %v3176_v42 = vld [vmem:[%s4093_s1 + $0x2e8] sm:$0xff]  }
  0x1d   :  { %2793 = vmatpush3.bf16.msra.mxu1 %v3116_v28  ;;  %v3161_v28 = vld [vmem:[%s4093_s1 + $0x288] sm:$0xff]  }
  0x1e   :  { %2794 = vmatprep.subr.bf16.mxu1 %v3119_v31  ;;  %v3166_v31 = vld [vmem:[%s4093_s1 + $0x258] sm:$0xff]   ;;  %v3175_v43 = vld [vmem:[%s4093_s1 + $0x228] sm:$0xff]  }
  0x1f   :  { %2773 = vmatpush3.bf16.msra.mxu0 %v3118_v30  ;;  %v3163_v30 = vld [vmem:[%s4093_s1 + $0x210] sm:$0xff]   ;;  %v3177_v46 = vld [vmem:[%s4093_s1 + $0x2a8] sm:$0xff]  }
  0x20   :  { %2802 = vmatprep.subr.bf16.mxu0 %v3122_v37  ;;  %v3172_v37 = vld [vmem:[%s4093_s1 + $0x2e0] sm:$0xff]  }
  0x21   :  { %2795 = vmatpush3.bf16.msra.mxu1 %v3121_v34  ;;  %v3167_v34 = vld [vmem:[%s4093_s1 + $0x218] sm:$0xff]  }
  0x22   :  { %2824 = vmatprep.subr.bf16.mxu1 %v3124_v40  ;;  %1833 = vmatmul.mubr.bf16.vlgmr.msra.gmra.mrb[0].mxu0 %v458_v45  ;;  %v3173_v40 = vld [vmem:[%s4093_s1 + $0x2a0] sm:$0xff]   ;;  %v29_v45 = vld [vmem:[%s4092_s0 + $0x8] sm:$0xff] }
  0x23   :  { %2803 = vmatpush3.bf16.msra.mxu0 %v3123_v48  ;;  %1912 = vmatprep.mubr.bf16.mxu0 %v479_v49  ;;  %v491_v47 = vrot.slane %v29_v45, %v3477_v41  ;;  %v484_v48 = vcombine.high %v29_v45, %v29_v45  ;;  %v3180_v49 = vld [vmem:[%s4093_s1 + $0x2f0] sm:$0xff]  }
  0x24   :  { %1873 = vmatmul.mubr.bf16.vlgmr.msra.gmra.mrb[0].mxu1 %v480_v50  ;;  %2804 = vmatprep.subr.bf16.mxu0 %v3126_v51  ;;  %v3179_v50 = vld [vmem:[%s4093_s1 + $0x230] sm:$0xff]  }
  0x25   :  { %2825 = vmatpush3.bf16.msra.mxu1 %v3125_v53  ;;  %1952 = vmatprep.mubr.bf16.mxu1 %v483_v55  ;;  %v499_v51 = vcombine.high %v491_v47, %v491_v47  ;;  %v3666_v52 = vrot.slane %v484_v48, %v3477_v41  ;;  %v3182_v53 = vld [vmem:[%s4093_s1 + $0x278] sm:$0xff]   ;;  %v3229_v45 = vld [vmem:[%s4093_s1 + $0x4d0] sm:$0xff]  }
  0x26   :  { %2826 = vmatprep.subr.bf16.mxu1 %v3128_v54  ;;  %v3181_v54 = vld [vmem:[%s4093_s1 + $0x2b0] sm:$0xff]  }
  0x27   :  { %2805 = vmatpush3.bf16.msra.mxu0 %v3127_v56  ;;  %v521_v55 = vrot.slane %v499_v51, %v3477_v41  ;;  %v500_v56 = vcombine.high %v3666_v52, %v3666_v52  ;;  %v3230_v48 = vld [vmem:[%s4093_s1 + $0x490] sm:$0xff]   ;;  %v3235_v51 = vld [vmem:[%s4093_s1 + $0x460] sm:$0xff]  }
  0x28   :  { %2806 = vmatprep.subr.bf16.mxu0 %v3130_v57  ;;  %v3184_v57 = vld [vmem:[%s4093_s1 + $0x2f8] sm:$0xff]  }
  0x29   :  { %2827 = vmatpush3.bf16.msra.mxu1 %v3129_v58  ;;  %v3183_v58 = vld [vmem:[%s4093_s1 + $0x238] sm:$0xff]  }
  0x2a   :  { %2828 = vmatprep.subr.bf16.mxu1 %v3132_v59  ;;  %v531_v59 = vcombine.high %v521_v55, %v521_v55 }
  0x2b   :  { %2807 = vmatpush3.bf16.msra.mxu0 %v3131_v60  ;;  %v507_v60 = vrot.slane %v491_v47, %v3477_v41  ;;  %v3231_v47 = vld [vmem:[%s4093_s1 + $0x458] sm:$0xff]  }
  0x2c   :  { %2808 = vmatprep.subr.bf16.mxu0 %v3134_v61  ;;  %v3186_v61 = vld [vmem:[%s4093_s1 + $0x340] sm:$0xff]  }
  0x2d   :  { %2829 = vmatpush3.bf16.msra.mxu1 %v3133_v62  ;;  %v3185_v62 = vld [vmem:[%s4093_s1 + $0x2b8] sm:$0xff]  }
  0x2e   :  { %2830 = vmatprep.subr.bf16.mxu1 %v3136_v63  ;;  %v528_v63 = vrot.slane %v500_v56, %v3477_v41  ;;  %v3238_v56 = vld [vmem:[%s4093_s1 + $0x4a0] sm:$0xff]  }
  0x2f   :  { %2809 = vmatpush3.bf16.msra.mxu0 %v3135_v0  ;;  %v3188_v0 = vld [vmem:[%s4093_s1 + $0x3c0] sm:$0xff]  }
  0x30   :  { %2810 = vmatprep.subr.bf16.mxu0 %v3138_v1  ;;  %v3187_v1 = vld [vmem:[%s4093_s1 + $0x300] sm:$0xff]  }
  0x31   :  { %2831 = vmatpush3.bf16.msra.mxu1 %v3137_v2  ;;  %v529_v2 = vcombine.high %v507_v60, %v507_v60 }
  0x32   :  { %2832 = vmatprep.subr.bf16.mxu1 %v3140_v3  ;;  %v3190_v3 = vld [vmem:[%s4093_s1 + $0x348] sm:$0xff]  }
  0x33   :  { %2811 = vmatpush3.bf16.msra.mxu0 %v3139_v4  ;;  %v3189_v4 = vld [vmem:[%s4093_s1 + $0x380] sm:$0xff]  }
  0x34   :  { %2812 = vmatprep.subr.bf16.mxu0 %v3142_v5  ;;  %v532_v5 = vcombine.high %v528_v63, %v528_v63 }
  0x35   :  { %2833 = vmatpush3.bf16.msra.mxu1 %v3141_v6  ;;  %v3192_v6 = vld [vmem:[%s4093_s1 + $0x3c8] sm:$0xff]  }
  0x36   :  { %2834 = vmatprep.subr.bf16.mxu1 %v3144_v7  ;;  %v3191_v7 = vld [vmem:[%s4093_s1 + $0x308] sm:$0xff]  }
  0x37   :  { %2813 = vmatpush3.bf16.msra.mxu0 %v3143_v8  ;;  %v3194_v8 = vld [vmem:[%s4093_s1 + $0x350] sm:$0xff]  }
  0x38   :  { %2814 = vmatprep.subr.bf16.mxu0 %v3146_v9  ;;  %v3193_v9 = vld [vmem:[%s4093_s1 + $0x388] sm:$0xff]  }
  0x39   :  { %2835 = vmatpush3.bf16.msra.mxu1 %v3145_v10  ;;  %v3196_v10 = vld [vmem:[%s4093_s1 + $0x3d0] sm:$0xff]  }
  0x3a   :  { %2836 = vmatprep.subr.bf16.mxu1 %v3148_v11  ;;  %v3195_v11 = vld [vmem:[%s4093_s1 + $0x310] sm:$0xff]  }
  0x3b   :  { %2815 = vmatpush3.bf16.msra.mxu0 %v3147_v12  ;;  %v3198_v12 = vld [vmem:[%s4093_s1 + $0x358] sm:$0xff]  }
  0x3c   :  { %2816 = vmatprep.subr.bf16.mxu0 %v3150_v13  ;;  %v3197_v13 = vld [vmem:[%s4093_s1 + $0x390] sm:$0xff]  }
  0x3d   :  { %2837 = vmatpush3.bf16.msra.mxu1 %v3149_v14  ;;  %v3200_v14 = vld [vmem:[%s4093_s1 + $0x3d8] sm:$0xff]  }
  0x3e   :  { %2838 = vmatprep.subr.bf16.mxu1 %v3152_v15  ;;  %v3199_v15 = vld [vmem:[%s4093_s1 + $0x318] sm:$0xff]  }
  0x3f   :  { %2817 = vmatpush3.bf16.msra.mxu0 %v3151_v16  ;;  %v3202_v16 = vld [vmem:[%s4093_s1 + $0x360] sm:$0xff]  }
  0x40   :  { %2846 = vmatprep.subr.bf16.mxu0 %v3154_v18  ;;  %v3204_v18 = vld [vmem:[%s4093_s1 + $0x3e0] sm:$0xff]  }
  0x41   :  { %2839 = vmatpush3.bf16.msra.mxu1 %v3153_v19  ;;  %v3203_v19 = vld [vmem:[%s4093_s1 + $0x320] sm:$0xff]  }
  0x42   :  { %1913 = vmatmul.mubr.bf16.vlgmr.msra.gmra.mrb[4].mxu0 %v465_v17  ;;  %2868 = vmatprep.subr.bf16.mxu1 %v3156_v20  ;;  %v3201_v17 = vld [vmem:[%s4093_s1 + $0x398] sm:$0xff]   ;;  %v3206_v20 = vld [vmem:[%s4093_s1 + $0x368] sm:$0xff]  }
  0x43   :  { %2847 = vmatpush3.bf16.msra.mxu0 %v3155_v21  ;;  %1992 = vmatprep.mubr.bf16.mxu0 %v521_v55  ;;  %v3205_v21 = vld [vmem:[%s4093_s1 + $0x3a0] sm:$0xff]   ;;  %v3239_v55 = vld [vmem:[%s4093_s1 + $0x468] sm:$0xff]  }
  0x44   :  { %1953 = vmatmul.mubr.bf16.vlgmr.msra.gmra.mrb[4].mxu1 %v481_v22  ;;  %2848 = vmatprep.subr.bf16.mxu0 %v3158_v23  ;;  %v3208_v22 = vld [vmem:[%s4093_s1 + $0x3e8] sm:$0xff]  }
  0x45   :  { %2869 = vmatpush3.bf16.msra.mxu1 %v3157_v24  ;;  %2032 = vmatprep.mubr.bf16.mxu1 %v531_v59  ;;  %v3207_v23 = vld [vmem:[%s4093_s1 + $0x328] sm:$0xff]   ;;  %v3210_v24 = vld [vmem:[%s4093_s1 + $0x370] sm:$0xff]  }
  0x46   :  { %2870 = vmatprep.subr.bf16.mxu1 %v3160_v25  ;;  %v3209_v25 = vld [vmem:[%s4093_s1 + $0x3a8] sm:$0xff]   ;;  %v3243_v59 = vld [vmem:[%s4093_s1 + $0x470] sm:$0xff]  }
  0x47   :  { %2849 = vmatpush3.bf16.msra.mxu0 %v3159_v26  ;;  %v3212_v26 = vld [vmem:[%s4093_s1 + $0x3f0] sm:$0xff]  }
  0x48   :  { %2850 = vmatprep.subr.bf16.mxu0 %v3162_v27  ;;  %v3211_v27 = vld [vmem:[%s4093_s1 + $0x330] sm:$0xff]  }
  0x49   :  { %2871 = vmatpush3.bf16.msra.mxu1 %v3161_v28  ;;  %v3214_v28 = vld [vmem:[%s4093_s1 + $0x378] sm:$0xff]  }
  0x4a   :  { %2872 = vmatprep.subr.bf16.mxu1 %v3164_v29  ;;  %v3213_v29 = vld [vmem:[%s4093_s1 + $0x3b0] sm:$0xff]  }
  0x4b   :  { %2851 = vmatpush3.bf16.msra.mxu0 %v3163_v30  ;;  %v3216_v30 = vld [vmem:[%s4093_s1 + $0x3f8] sm:$0xff]  }
  0x4c   :  { %2852 = vmatprep.subr.bf16.mxu0 %v3166_v31  ;;  %v3215_v31 = vld [vmem:[%s4093_s1 + $0x338] sm:$0xff]  }
  0x4d   :  { %2873 = vmatpush3.bf16.msra.mxu1 %v3165_v32  ;;  %v514_v32 = vrot.slane %v3666_v52, %v3477_v41  ;;  %v3234_v52 = vld [vmem:[%s4093_s1 + $0x498] sm:$0xff]  }
  0x4e   :  { %2874 = vmatprep.subr.bf16.mxu1 %v3168_v33  ;;  %v3219_v33 = vld [vmem:[%s4093_s1 + $0x440] sm:$0xff]  }
  0x4f   :  { %2853 = vmatpush3.bf16.msra.mxu0 %v3167_v34  ;;  %v3218_v34 = vld [vmem:[%s4093_s1 + $0x3b8] sm:$0xff]  }
  0x50   :  { %2854 = vmatprep.subr.bf16.mxu0 %v3170_v35  ;;  %v3221_v35 = vld [vmem:[%s4093_s1 + $0x4c0] sm:$0xff]  }
  0x51   :  { %2875 = vmatpush3.bf16.msra.mxu1 %v3169_v36  ;;  %v3220_v36 = vld [vmem:[%s4093_s1 + $0x400] sm:$0xff]  }
  0x52   :  { %2876 = vmatprep.subr.bf16.mxu1 %v3172_v37  ;;  %v530_v37 = vcombine.high %v514_v32, %v514_v32 }
  0x53   :  { %2855 = vmatpush3.bf16.msra.mxu0 %v3171_v38  ;;  %v3223_v38 = vld [vmem:[%s4093_s1 + $0x448] sm:$0xff]  }
  0x54   :  { %2856 = vmatprep.subr.bf16.mxu0 %v3174_v39  ;;  %v3222_v39 = vld [vmem:[%s4093_s1 + $0x480] sm:$0xff]  }
  0x55   :  { %2877 = vmatpush3.bf16.msra.mxu1 %v3173_v40  ;;  %v3225_v40 = vld [vmem:[%s4093_s1 + $0x4c8] sm:$0xff]  }
  0x56   :  { %2878 = vmatprep.subr.bf16.mxu1 %v3176_v42  ;;  %v3224_v42 = vld [vmem:[%s4093_s1 + $0x408] sm:$0xff]  }
  0x57   :  { %2857 = vmatpush3.bf16.msra.mxu0 %v3175_v43  ;;  %v3227_v43 = vld [vmem:[%s4093_s1 + $0x450] sm:$0xff]  }
  0x58   :  { %2858 = vmatprep.subr.bf16.mxu0 %v3178_v44  ;;  %v3226_v44 = vld [vmem:[%s4093_s1 + $0x488] sm:$0xff]  }
  0x59   :  { %2879 = vmatpush3.bf16.msra.mxu1 %v3177_v46  ;;  %v3228_v46 = vld [vmem:[%s4093_s1 + $0x410] sm:$0xff]  }
  0x5a   :  { %2880 = vmatprep.subr.bf16.mxu1 %v3180_v49  ;;  %v3233_v49 = vld [vmem:[%s4093_s1 + $0x4d8] sm:$0xff]  }
  0x5b   :  { %2859 = vmatpush3.bf16.msra.mxu0 %v3179_v50  ;;  %v3232_v50 = vld [vmem:[%s4093_s1 + $0x418] sm:$0xff]  }
  0x5c   :  { %2860 = vmatprep.subr.bf16.mxu0 %v3182_v53  ;;  %v3237_v53 = vld [vmem:[%s4093_s1 + $0x4e0] sm:$0xff]  }
  0x5d   :  { %2881 = vmatpush3.bf16.msra.mxu1 %v3181_v54  ;;  %v3236_v54 = vld [vmem:[%s4093_s1 + $0x420] sm:$0xff]  }
  0x5e   :  { %2882 = vmatprep.subr.bf16.mxu1 %v3184_v57  ;;  %v3241_v57 = vld [vmem:[%s4093_s1 + $0x4e8] sm:$0xff]  }
  0x5f   :  { %2861 = vmatpush3.bf16.msra.mxu0 %v3183_v58  ;;  %v3240_v58 = vld [vmem:[%s4093_s1 + $0x428] sm:$0xff]  }
  0x60   :  { %2890 = vmatprep.subr.bf16.mxu0 %v3186_v61  ;;  %v3242_v61 = vld [vmem:[%s4093_s1 + $0x4a8] sm:$0xff]  }
  0x61   :  { %2883 = vmatpush3.bf16.msra.mxu1 %v3185_v62 }
  0x62   :  { %1993 = vmatmul.mubr.bf16.vlgmr.msra.gmra.mrb[8].mxu0 %v507_v60  ;;  %2912 = vmatprep.subr.bf16.mxu1 %v3188_v0  ;;  %v30_v60 = vld [vmem:[%s4092_s0 + $0x10] sm:$0xff] }
  0x63   :  { %2891 = vmatpush3.bf16.msra.mxu0 %v3187_v1  ;;  %2072 = vmatprep.mubr.bf16.mxu0 %v528_v63  ;;  %v540_v62 = vrot.slane %v30_v60, %v3477_v41  ;;  %v533_v63 = vcombine.high %v30_v60, %v30_v60  ;;  %v3245_v0 = vld [vmem:[%s4093_s1 + $0x4f0] sm:$0xff]  }
  0x64   :  { %2033 = vmatmul.mubr.bf16.vlgmr.msra.gmra.mrb[8].mxu1 %v529_v2  ;;  %2892 = vmatprep.subr.bf16.mxu0 %v3190_v3  ;;  %v3244_v1 = vld [vmem:[%s4093_s1 + $0x430] sm:$0xff]  }
  0x65   :  { %2913 = vmatpush3.bf16.msra.mxu1 %v3189_v4  ;;  %2112 = vmatprep.mubr.bf16.mxu1 %v532_v5  ;;  %v548_v2 = vcombine.high %v540_v62, %v540_v62  ;;  %v3872_v3 = vrot.slane %v533_v63, %v3477_v41  ;;  %v3247_v4 = vld [vmem:[%s4093_s1 + $0x478] sm:$0xff]   ;;  %v3246_v5 = vld [vmem:[%s4093_s1 + $0x4b0] sm:$0xff]  }
  0x66   :  { %2914 = vmatprep.subr.bf16.mxu1 %v3192_v6 }
  0x67   :  { %2893 = vmatpush3.bf16.msra.mxu0 %v3191_v7  ;;  %v570_v6 = vrot.slane %v548_v2, %v3477_v41  ;;  %v549_v7 = vcombine.high %v3872_v3, %v3872_v3 }
  0x68   :  { %2894 = vmatprep.subr.bf16.mxu0 %v3194_v8  ;;  %v3249_v8 = vld [vmem:[%s4093_s1 + $0x4f8] sm:$0xff]  }
  0x69   :  { %2915 = vmatpush3.bf16.msra.mxu1 %v3193_v9  ;;  %v3248_v9 = vld [vmem:[%s4093_s1 + $0x438] sm:$0xff]  }
  0x6a   :  { %2916 = vmatprep.subr.bf16.mxu1 %v3196_v10  ;;  %v580_v10 = vcombine.high %v570_v6, %v570_v6 }
  0x6b   :  { %2895 = vmatpush3.bf16.msra.mxu0 %v3195_v11  ;;  %v556_v11 = vrot.slane %v540_v62, %v3477_v41 }
  0x6c   :  { %2896 = vmatprep.subr.bf16.mxu0 %v3198_v12  ;;  %v3251_v12 = vld [vmem:[%s4093_s1 + $0x540] sm:$0xff]  }
  0x6d   :  { %2917 = vmatpush3.bf16.msra.mxu1 %v3197_v13  ;;  %v3250_v13 = vld [vmem:[%s4093_s1 + $0x4b8] sm:$0xff]  }
  0x6e   :  { %2918 = vmatprep.subr.bf16.mxu1 %v3200_v14  ;;  %v577_v14 = vrot.slane %v549_v7, %v3477_v41 }
  0x6f   :  { %2897 = vmatpush3.bf16.msra.mxu0 %v3199_v15  ;;  %v3253_v15 = vld [vmem:[%s4093_s1 + $0x5c0] sm:$0xff]  }
  0x70   :  { %2898 = vmatprep.subr.bf16.mxu0 %v3202_v16  ;;  %v3252_v16 = vld [vmem:[%s4093_s1 + $0x500] sm:$0xff]  }
  0x71   :  { %2919 = vmatpush3.bf16.msra.mxu1 %v3201_v17  ;;  %v578_v17 = vcombine.high %v556_v11, %v556_v11 }
  0x72   :  { %2920 = vmatprep.subr.bf16.mxu1 %v3204_v18  ;;  %v3255_v18 = vld [vmem:[%s4093_s1 + $0x548] sm:$0xff]  }
  0x73   :  { %2899 = vmatpush3.bf16.msra.mxu0 %v3203_v19  ;;  %v3254_v19 = vld [vmem:[%s4093_s1 + $0x580] sm:$0xff]  }
  0x74   :  { %2900 = vmatprep.subr.bf16.mxu0 %v3206_v20  ;;  %v581_v20 = vcombine.high %v577_v14, %v577_v14 }
  0x75   :  { %2921 = vmatpush3.bf16.msra.mxu1 %v3205_v21  ;;  %v3257_v21 = vld [vmem:[%s4093_s1 + $0x5c8] sm:$0xff]  }
  0x76   :  { %2922 = vmatprep.subr.bf16.mxu1 %v3208_v22  ;;  %v3256_v22 = vld [vmem:[%s4093_s1 + $0x508] sm:$0xff]  }
  0x77   :  { %2901 = vmatpush3.bf16.msra.mxu0 %v3207_v23  ;;  %v3259_v23 = vld [vmem:[%s4093_s1 + $0x550] sm:$0xff]  }
  0x78   :  { %2902 = vmatprep.subr.bf16.mxu0 %v3210_v24  ;;  %v3258_v24 = vld [vmem:[%s4093_s1 + $0x588] sm:$0xff]  }
  0x79   :  { %2923 = vmatpush3.bf16.msra.mxu1 %v3209_v25  ;;  %v3261_v25 = vld [vmem:[%s4093_s1 + $0x5d0] sm:$0xff]  }
  0x7a   :  { %2924 = vmatprep.subr.bf16.mxu1 %v3212_v26  ;;  %v3260_v26 = vld [vmem:[%s4093_s1 + $0x510] sm:$0xff]  }
  0x7b   :  { %2903 = vmatpush3.bf16.msra.mxu0 %v3211_v27  ;;  %v3263_v27 = vld [vmem:[%s4093_s1 + $0x558] sm:$0xff]  }
  0x7c   :  { %2904 = vmatprep.subr.bf16.mxu0 %v3214_v28  ;;  %v3262_v28 = vld [vmem:[%s4093_s1 + $0x590] sm:$0xff]  }
  0x7d   :  { %2925 = vmatpush3.bf16.msra.mxu1 %v3213_v29  ;;  %v3265_v29 = vld [vmem:[%s4093_s1 + $0x5d8] sm:$0xff]  }
  0x7e   :  { %2926 = vmatprep.subr.bf16.mxu1 %v3216_v30  ;;  %v3264_v30 = vld [vmem:[%s4093_s1 + $0x518] sm:$0xff]  }
  0x7f   :  { %2905 = vmatpush3.bf16.msra.mxu0 %v3215_v31  ;;  %v3267_v31 = vld [vmem:[%s4093_s1 + $0x560] sm:$0xff]  }
  0x80   :  { %2934 = vmatprep.subr.bf16.mxu0 %v3219_v33  ;;  %v3269_v33 = vld [vmem:[%s4093_s1 + $0x5e0] sm:$0xff]  }
  0x81   :  { %2927 = vmatpush3.bf16.msra.mxu1 %v3218_v34  ;;  %v3268_v34 = vld [vmem:[%s4093_s1 + $0x520] sm:$0xff]  }
  0x82   :  { %2073 = vmatmul.mubr.bf16.vlgmr.msra.gmra.mrb[12].mxu0 %v514_v32  ;;  %2956 = vmatprep.subr.bf16.mxu1 %v3221_v35  ;;  %v3266_v32 = vld [vmem:[%s4093_s1 + $0x598] sm:$0xff]   ;;  %v3271_v35 = vld [vmem:[%s4093_s1 + $0x568] sm:$0xff]  }
  0x83   :  { %2935 = vmatpush3.bf16.msra.mxu0 %v3220_v36  ;;  %2152 = vmatprep.mubr.bf16.mxu0 %v570_v6  ;;  %v3270_v36 = vld [vmem:[%s4093_s1 + $0x5a0] sm:$0xff]  }
  0x84   :  { %2113 = vmatmul.mubr.bf16.vlgmr.msra.gmra.mrb[12].mxu1 %v530_v37  ;;  %2936 = vmatprep.subr.bf16.mxu0 %v3223_v38  ;;  %v3273_v37 = vld [vmem:[%s4093_s1 + $0x5e8] sm:$0xff]  }
  0x85   :  { %2957 = vmatpush3.bf16.msra.mxu1 %v3222_v39  ;;  %2192 = vmatprep.mubr.bf16.mxu1 %v580_v10  ;;  %v3272_v38 = vld [vmem:[%s4093_s1 + $0x528] sm:$0xff]   ;;  %v3275_v39 = vld [vmem:[%s4093_s1 + $0x570] sm:$0xff]  }
  0x86   :  { %2958 = vmatprep.subr.bf16.mxu1 %v3225_v40  ;;  %v3274_v40 = vld [vmem:[%s4093_s1 + $0x5a8] sm:$0xff]  }
  0x87   :  { %2937 = vmatpush3.bf16.msra.mxu0 %v3224_v42  ;;  %v3277_v42 = vld [vmem:[%s4093_s1 + $0x5f0] sm:$0xff]  }
  0x88   :  { %2938 = vmatprep.subr.bf16.mxu0 %v3227_v43  ;;  %v3276_v43 = vld [vmem:[%s4093_s1 + $0x530] sm:$0xff]  }
  0x89   :  { %2959 = vmatpush3.bf16.msra.mxu1 %v3226_v44  ;;  %v3279_v44 = vld [vmem:[%s4093_s1 + $0x578] sm:$0xff]  }
  0x8a   :  { %2960 = vmatprep.subr.bf16.mxu1 %v3229_v45  ;;  %v3278_v45 = vld [vmem:[%s4093_s1 + $0x5b0] sm:$0xff]  }
  0x8b   :  { %2939 = vmatpush3.bf16.msra.mxu0 %v3228_v46  ;;  %v3280_v46 = vld [vmem:[%s4093_s1 + $0x538] sm:$0xff]  }
  0x8c   :  { %2940 = vmatprep.subr.bf16.mxu0 %v3231_v47  ;;  %v3281_v47 = vld [vmem:[%s4093_s1 + $0x5f8] sm:$0xff]  }
  0x8d   :  { %2961 = vmatpush3.bf16.msra.mxu1 %v3230_v48  ;;  %v3283_v48 = vld [vmem:[%s4093_s1 + $0x5b8] sm:$0xff]  }
  0x8e   :  { %2962 = vmatprep.subr.bf16.mxu1 %v3233_v49  ;;  %v563_v49 = vrot.slane %v3872_v3, %v3477_v41 }
  0x8f   :  { %2941 = vmatpush3.bf16.msra.mxu0 %v3232_v50  ;;  %v3284_v50 = vld [vmem:[%s4093_s1 + $0x600] sm:$0xff]  }
  0x90   :  { %2942 = vmatprep.subr.bf16.mxu0 %v3235_v51  ;;  %v3329_v51 = vmov 0.0  }
  0x91   :  { %2963 = vmatpush3.bf16.msra.mxu1 %v3234_v52  ;;  %v579_v52 = vcombine.high %v563_v49, %v563_v49 }
  0x92   :  { %2964 = vmatprep.subr.bf16.mxu1 %v3237_v53  ;;  %v3285_v53 = vld [vmem:[%s4093_s1 + $0x608] sm:$0xff]  }
  0x93   :  { %2943 = vmatpush3.bf16.msra.mxu0 %v3236_v54 }
  0x94   :  { %2944 = vmatprep.subr.bf16.mxu0 %v3239_v55 }
  0x95   :  { %2965 = vmatpush3.bf16.msra.mxu1 %v3238_v56 }
  0x96   :  { %2966 = vmatprep.subr.bf16.mxu1 %v3241_v57 }
  0x97   :  { %2945 = vmatpush3.bf16.msra.mxu0 %v3240_v58 }
  0x98   :  { %2946 = vmatprep.subr.bf16.mxu0 %v3243_v59 }
  0x99   :  { %2967 = vmatpush3.bf16.msra.mxu1 %v3242_v61 }
  0x9a   :  { %2968 = vmatprep.subr.bf16.mxu1 %v3245_v0 }
  0x9b   :  { %2947 = vmatpush3.bf16.msra.mxu0 %v3244_v1 }
  0x9c   :  { %2948 = vmatprep.subr.bf16.mxu0 %v3247_v4 }
  0x9d   :  { %2969 = vmatpush3.bf16.msra.mxu1 %v3246_v5 }
  0x9e   :  { %2970 = vmatprep.subr.bf16.mxu1 %v3249_v8 }
  0x9f   :  { %2949 = vmatpush3.bf16.msra.mxu0 %v3248_v9 }
  0xa0   :  { %2978 = vmatprep.subr.bf16.mxu0 %v3251_v12 }
  0xa1   :  { %2971 = vmatpush3.bf16.msra.mxu1 %v3250_v13 }
  0xa2   :  { %2153 = vmatmul.mubr.bf16.vlgmr.msra.gmra.mrb[16].mxu0 %v556_v11  ;;  %3000 = vmatprep.subr.bf16.mxu1 %v3253_v15 }
  0xa3   :  { %2979 = vmatpush3.bf16.msra.mxu0 %v3252_v16  ;;  %2232 = vmatprep.mubr.bf16.mxu0 %v577_v14 }
  0xa4   :  { %2193 = vmatmul.mubr.bf16.vlgmr.msra.gmra.mrb[16].mxu1 %v578_v17  ;;  %2980 = vmatprep.subr.bf16.mxu0 %v3255_v18 }
  0xa5   :  { %3001 = vmatpush3.bf16.msra.mxu1 %v3254_v19  ;;  %2272 = vmatprep.mubr.bf16.mxu1 %v581_v20 }
  0xa6   :  { %3002 = vmatprep.subr.bf16.mxu1 %v3257_v21 }
  0xa7   :  { %2981 = vmatpush3.bf16.msra.mxu0 %v3256_v22 }
  0xa8   :  { %2982 = vmatprep.subr.bf16.mxu0 %v3259_v23 }
  0xa9   :  { %3003 = vmatpush3.bf16.msra.mxu1 %v3258_v24 }
  0xaa   :  { %3004 = vmatprep.subr.bf16.mxu1 %v3261_v25 }
  0xab   :  { %2983 = vmatpush3.bf16.msra.mxu0 %v3260_v26 }
  0xac   :  { %2984 = vmatprep.subr.bf16.mxu0 %v3263_v27 }
  0xad   :  { %3005 = vmatpush3.bf16.msra.mxu1 %v3262_v28 }
  0xae   :  { %3006 = vmatprep.subr.bf16.mxu1 %v3265_v29 }
  0xaf   :  { %2985 = vmatpush3.bf16.msra.mxu0 %v3264_v30 }
  0xb0   :  { %2986 = vmatprep.subr.bf16.mxu0 %v3267_v31 }
  0xb1   :  { %3007 = vmatpush3.bf16.msra.mxu1 %v3266_v32 }
  0xb2   :  { %3008 = vmatprep.subr.bf16.mxu1 %v3269_v33 }
  0xb3   :  { %2987 = vmatpush3.bf16.msra.mxu0 %v3268_v34 }
  0xb4   :  { %2988 = vmatprep.subr.bf16.mxu0 %v3271_v35 }
  0xb5   :  { %3009 = vmatpush3.bf16.msra.mxu1 %v3270_v36 }
  0xb6   :  { %3010 = vmatprep.subr.bf16.mxu1 %v3273_v37 }
  0xb7   :  { %2989 = vmatpush3.bf16.msra.mxu0 %v3272_v38 }
  0xb8   :  { %2990 = vmatprep.subr.bf16.mxu0 %v3275_v39 }
  0xb9   :  { %3011 = vmatpush3.bf16.msra.mxu1 %v3274_v40 }
  0xba   :  { %3012 = vmatprep.subr.bf16.mxu1 %v3277_v42 }
  0xbb   :  { %2991 = vmatpush3.bf16.msra.mxu0 %v3276_v43 }
  0xbc   :  { %2992 = vmatprep.subr.bf16.mxu0 %v3279_v44 }
  0xbd   :  { %3013 = vmatpush3.bf16.msra.mxu1 %v3278_v45 }
  0xbe   :  { %3014 = vmatprep.subr.bf16.mxu1 %v3281_v47 }
  0xbf   :  { %2993 = vmatpush3.bf16.msra.mxu0 %v3280_v46 }
  0xc0   :  { %3041 = vmatprep.subr.bf16.mxu0 %v3329_v51 }
  0xc1   :  { %3015 = vmatpush3.bf16.msra.mxu1 %v3283_v48 }
  0xc2   :  { %2233 = vmatmul.mubr.bf16.vlgmr.msra.gmra.mrb[20].mxu0 %v563_v49  ;;  %3053 = vmatprep.subr.bf16.mxu1 %v3329_v51 }
  0xc3   :  { %3042 = vmatpush3.bf16.msra.mxu0 %v3284_v50  ;;  %3049 = vmatprep.mubr.msk.bf16.mxu0 %vm3330_vm0, %v3329_v51 }
  0xc4   :  { %12 = vsyncpa [#allocation3], 0  ;;  %2273 = vmatmul.mubr.bf16.vlgmr.msra.gmra.mrb[20].mxu1 %v579_v52  ;;  %3043 = vmatprep.subr.bf16.mxu0 %v3329_v51  ;;  %v3286_v54 = vld [vmem:[%s4093_s1 + $0x610] sm:$0xff]   ;;  %v3287_v55 = vld [vmem:[%s4093_s1 + $0x618] sm:$0xff]   ;;  %vm1796_vm1 = vcmask 523264   ;;  %vm2517_vm2 = vcmask 74752  }
  0xc5   :  { %3069 = vmatprep.mubr.msk.bf16.mxu1 %vm3330_vm0, %v3329_v51  ;;  %v2545_v56 = vld.sshfl [vmem:[%s4092_s0 + $0x18] sm:$0x1 pattern:$0x75316420]  ;;  %v2544_v59 = vld [vmem:[%s4094_s2] ss:$0 sm:$0xff] }
  0xc6   :  { %v595_v57 = vrot.slane %v2545_v56, %v3477_v41  ;;  %v3288_v6 = vld [vmem:[%s4095_s3] sm:$0xff]   ;;  %v3289_v7 = vld [vmem:[%s4095_s3 + $0x8] sm:$0xff]   ;;  %v3290_v8 = vld [vmem:[%s4095_s3 + $0x10] sm:$0xff]  }
  0xc7   :  { %3044 = vmatpush3.bf16.msra.mxu0 %v3285_v53  ;;  %3054 = vmatpush3.bf16.msra.mxu1 %v3288_v6  ;;  %v3291_v14 = vld [vmem:[%s4095_s3 + $0x18] sm:$0xff]   ;;  %v3292_v20 = vld [vmem:[%s4095_s3 + $0x20] sm:$0xff]   ;;  %v3293_v23 = vld [vmem:[%s4095_s3 + $0x28] sm:$0xff]  }
  0xc8   :  { %3045 = vmatprep.subr.bf16.mxu0 %v3329_v51  ;;  %3055 = vmatprep.subr.bf16.mxu1 %v3329_v51  ;;  %v3294_v24 = vld [vmem:[%s4095_s3 + $0x30] sm:$0xff]   ;;  %v3295_v25 = vld [vmem:[%s4095_s3 + $0x38] sm:$0xff]   ;;  %v3296_v26 = vld [vmem:[%s4097_s5] sm:$0xff]  }
  0xc9   :  { %v3297_v27 = vld [vmem:[%s4097_s5 + $0x8] sm:$0xff]  }
  0xcb   :  { %3046 = vmatpush3.bf16.msra.mxu0 %v3286_v54  ;;  %3056 = vmatpush3.bf16.msra.mxu1 %v3289_v7 }
  0xcc   :  { %3047 = vmatprep.subr.bf16.mxu0 %v3329_v51  ;;  %3057 = vmatprep.subr.bf16.mxu1 %v3329_v51 }
  0xcf   :  { %3048 = vmatpush3.bf16.msra.mxu0 %v3287_v55  ;;  %3058 = vmatpush3.bf16.msra.mxu1 %v3290_v8 }
  0xd0   :  { %3073 = vmatprep.subr.bf16.mxu0 %v3329_v51  ;;  %3059 = vmatprep.subr.bf16.mxu1 %v3329_v51 }
  0xd2   :  { %3050 = vmatmul.mubr.msk.bf16.vlgmr.msra.gmra.mrb[24].mxu0 %vm1796_vm1, %v595_v57 }
  0xd3   :  { %3081 = vmatprep.mubr.msk.bf16.mxu0 %vm3330_vm0, %v3329_v51  ;;  %3060 = vmatpush3.bf16.msra.mxu1 %v3291_v14 }
  0xd4   :  { %3061 = vmatprep.subr.bf16.mxu1 %v3329_v51  ;;  %3074 = vmatpush3.bf16.msra.mxu0 %v3296_v26 }
  0xd5   :  { %3075 = vmatprep.subr.bf16.mxu0 %v3329_v51 }
  0xd7   :  { %3062 = vmatpush3.bf16.msra.mxu1 %v3292_v20  ;;  %v3298_v20 = vld [vmem:[%s4097_s5 + $0x10] sm:$0xff]  }
  0xd8   :  { %3063 = vmatprep.subr.bf16.mxu1 %v3329_v51  ;;  %3076 = vmatpush3.bf16.msra.mxu0 %v3297_v27 }
  0xd9   :  { %3077 = vmatprep.subr.bf16.mxu0 %v3329_v51 }
  0xdb   :  { %3064 = vmatpush3.bf16.msra.mxu1 %v3293_v23 }
  0xdc   :  { %3065 = vmatprep.subr.bf16.mxu1 %v3329_v51  ;;  %3078 = vmatpush3.bf16.msra.mxu0 %v3298_v20 }
  0xdd   :  { %3079 = vmatprep.subr.bf16.mxu0 %v3329_v51 }
  0xdf   :  { %3066 = vmatpush3.bf16.msra.mxu1 %v3294_v24 }
  0xe0   :  { %3067 = vmatprep.subr.bf16.mxu1 %v3329_v51  ;;  %v2752_v51 = vld [vmem:[%s4098_s6] ss:$0 sm:$0xff] }
  0xe3   :  { %3068 = vmatpush3.bf16.msra.mxu1 %v3295_v25 }
  0xf5   :  { %v2774_v58 = vpop.f32.mrb[0].mxu0 }
  0xf6   :  { %v2775_v60 = vpop.f32.mrb[1].mxu0 }
  0xf7   :  { %v2776_v61 = vadd.f32 %v2775_v60, %v2774_v58  ;;  %v2777_v62 = vpop.f32.mrb[2].mxu0  ;;  %v2796_v63 = vpop.f32.mrb[0].mxu1 }
  0xf8   :  { %v2778_v0 = vpop.f32.mrb[3].mxu0  ;;  %v2797_v41 = vpop.f32.mrb[1].mxu1 }
  0xf9   :  { %v1835_v1 = vadd.f32 %v2776_v61, %v2544_v59  ;;  %v2798_v2 = vadd.f32 %v2797_v41, %v2796_v63  ;;  %v2799_v3 = vpop.f32.mrb[2].mxu1 }
  0xfa   :  { %v2800_v4 = vpop.f32.mrb[3].mxu1 }
  0xfb   :  { %v1875_v5 = vadd.f32 %v2798_v2, %v1835_v1 }
 0x115   :  { %v2818_v9 = vpop.f32.mrb[4].mxu0 }
 0x116   :  { %v2819_v10 = vpop.f32.mrb[5].mxu0 }
 0x117   :  { %v2820_v11 = vadd.f32 %v2819_v10, %v2818_v9  ;;  %v2821_v12 = vpop.f32.mrb[6].mxu0  ;;  %v2840_v13 = vpop.f32.mrb[4].mxu1 }
 0x118   :  { %v2822_v15 = vpop.f32.mrb[7].mxu0  ;;  %v2841_v16 = vpop.f32.mrb[5].mxu1 }
 0x119   :  { %v1915_v17 = vadd.f32 %v2820_v11, %v1875_v5  ;;  %v2842_v18 = vadd.f32 %v2841_v16, %v2840_v13  ;;  %v2843_v19 = vpop.f32.mrb[6].mxu1 }
 0x11a   :  { %v2844_v21 = vpop.f32.mrb[7].mxu1 }
 0x11b   :  { %v1955_v22 = vadd.f32 %v2842_v18, %v1915_v17  ;;  %v3299_v21 = vld [vmem:[%s4097_s5 + $0x18] sm:$0xff]  }
 0x11c   :  { %3080 = vmatpush3.bf16.msra.mxu0 %v3299_v21 }
 0x135   :  { %v2862_v28 = vpop.f32.mrb[8].mxu0 }
 0x136   :  { %v2863_v29 = vpop.f32.mrb[9].mxu0 }
 0x137   :  { %v2864_v30 = vadd.f32 %v2863_v29, %v2862_v28  ;;  %v2865_v31 = vpop.f32.mrb[10].mxu0  ;;  %v2884_v32 = vpop.f32.mrb[8].mxu1 }
 0x138   :  { %v2866_v33 = vpop.f32.mrb[11].mxu0  ;;  %v2885_v34 = vpop.f32.mrb[9].mxu1 }
 0x139   :  { %v1995_v35 = vadd.f32 %v2864_v30, %v1955_v22  ;;  %v2886_v36 = vadd.f32 %v2885_v34, %v2884_v32  ;;  %v2887_v37 = vpop.f32.mrb[10].mxu1  ;;  %v2743_v22 = vld [vmem:[%s4096_s4] ss:$0 sm:$0xff]  ;;  %s3331_s4 = smov [#allocation2]  }
 0x13a   :  { %v2888_v38 = vpop.f32.mrb[11].mxu1  ;;  %s2536_s5 = sshll.u32 %s3331_s4, 4  ;;  %s2537_s5 = int_to_ptr.vmem [resolvable:$true] %s2536_s5 }
 0x13b   :  { %v2035_v39 = vadd.f32 %v2886_v36, %v1995_v35  ;;  %s3304_s6 = scalar_lea.vmem %s2537_s5, 32  ;;  %p3309_p1 = scmp.lt.s32.totalorder %s2537_s5, %s2537_s5 }
 0x13c   :  { %p3305_p0 = scmp.ne.s32.totalorder %s2537_s5, %s3304_s6  ;;  %p3310_p2 = scmp.lt.s32.totalorder %s3304_s6, %s3304_s6 }
 0x13e   :  { %p3311_p3 = por %p3310_p2, %p3309_p1 }
 0x140   :  { %p3312_p4 = pnand %p3311_p3, %p3305_p0 }
 0x155   :  { %v2906_v40 = vpop.f32.mrb[12].mxu0 }
 0x156   :  { %v2907_v42 = vpop.f32.mrb[13].mxu0 }
 0x157   :  { %v2908_v43 = vadd.f32 %v2907_v42, %v2906_v40  ;;  %v2909_v44 = vpop.f32.mrb[14].mxu0  ;;  %v2928_v45 = vpop.f32.mrb[12].mxu1 }
 0x158   :  { %v2910_v46 = vpop.f32.mrb[15].mxu0  ;;  %v2929_v47 = vpop.f32.mrb[13].mxu1 }
 0x159   :  { %v2075_v48 = vadd.f32 %v2908_v43, %v2035_v39  ;;  %v2930_v49 = vadd.f32 %v2929_v47, %v2928_v45  ;;  %v2931_v50 = vpop.f32.mrb[14].mxu1 }
 0x15a   :  { %v2932_v52 = vpop.f32.mrb[15].mxu1 }
 0x15b   :  { %v2115_v53 = vadd.f32 %v2930_v49, %v2075_v48 }
 0x175   :  { %v2950_v54 = vpop.f32.mrb[16].mxu0 }
 0x176   :  { %v2951_v55 = vpop.f32.mrb[17].mxu0 }
 0x177   :  { %v2952_v56 = vadd.f32 %v2951_v55, %v2950_v54  ;;  %v2953_v57 = vpop.f32.mrb[18].mxu0  ;;  %v2972_v58 = vpop.f32.mrb[16].mxu1 }
 0x178   :  { %v2954_v59 = vpop.f32.mrb[19].mxu0  ;;  %v2973_v60 = vpop.f32.mrb[17].mxu1 }
 0x179   :  { %v2155_v61 = vadd.f32 %v2952_v56, %v2115_v53  ;;  %v2974_v62 = vadd.f32 %v2973_v60, %v2972_v58  ;;  %v2975_v63 = vpop.f32.mrb[18].mxu1 }
 0x17a   :  { %v2976_v0 = vpop.f32.mrb[19].mxu1 }
 0x17b   :  { %v2195_v41 = vadd.f32 %v2974_v62, %v2155_v61 }
 0x195   :  { %v2994_v1 = vpop.f32.mrb[20].mxu0 }
 0x196   :  { %v2995_v2 = vpop.f32.mrb[21].mxu0 }
 0x197   :  { %v2996_v3 = vadd.f32 %v2995_v2, %v2994_v1  ;;  %v2997_v4 = vpop.f32.mrb[22].mxu0  ;;  %v3016_v5 = vpop.f32.mrb[20].mxu1 }
 0x198   :  { %v2998_v6 = vpop.f32.mrb[23].mxu0  ;;  %v3017_v7 = vpop.f32.mrb[21].mxu1 }
 0x199   :  { %v2235_v8 = vadd.f32 %v2996_v3, %v2195_v41  ;;  %v3018_v9 = vadd.f32 %v3017_v7, %v3016_v5  ;;  %v3019_v10 = vpop.f32.mrb[22].mxu1 }
 0x19a   :  { %v3020_v11 = vpop.f32.mrb[23].mxu1 }
 0x19b   :  { %v2275_v12 = vadd.f32 %v3018_v9, %v2235_v8 }
 0x1a5   :  { %v2314_v13 = vpop.f32.mrb[24].mxu0 }
 0x1a6   :  { %v2315_v14 = vadd.f32 %v2314_v13, %v2275_v12  ;;  %v3051_v15 = vpop.f32.mrb[25].mxu0 }
 0x1a7   :  { %v2317_v16 = vpop.f32.mrb[26].mxu0 }
 0x1a8   :  { %v2320_v17 = vmax.f32 %v2315_v14, 0.0  ;;  %v3052_v18 = vpop.f32.mrb[27].mxu0 }
 0x1aa   :  { %v2321_v19 = vpack.c.bf16 %v2320_v17, %v2320_v17 }
 0x1ac   :  { %3070 = vmatmul.mubr.bf16.vlgmr.msra.gmra.mrb[24].mxu1 %v2321_v19 }
 0x27f   :  { %v2427_v23 = vpop.f32.mrb[24].mxu1 }
 0x280   :  { %v2428_v24 = vadd.f32 %v2743_v22, %v2427_v23  ;;  %v3071_v25 = vpop.f32.mrb[25].mxu1 }
 0x281   :  { %v2430_v26 = vpop.f32.mrb[26].mxu1 }
 0x282   :  { %v2433_v27 = vmax.f32 %v2428_v24, 0.0  ;;  %v3072_v28 = vpop.f32.mrb[27].mxu1 }
 0x284   :  { %v2434_v29 = vpack.c.bf16 %v2433_v27, %v2433_v27 }
 0x286   :  { %3082 = vmatmul.mubr.msk.bf16.vlgmr.msra.gmra.mrb[28].mxu0 %vm1796_vm1, %v2434_v29 }
 0x359   :  { %v2511_v30 = vpop.f32.mrb[28].mxu0 }
 0x35a   :  { %v2512_v31 = vadd.f32 %v2752_v51, %v2511_v30  ;;  %v3083_v32 = vpop.f32.mrb[29].mxu0 }
 0x35b   :  { %v2514_v33 = vpop.f32.mrb[30].mxu0 }
 0x35c   :  { %v3084_v34 = vpop.f32.mrb[31].mxu0  ;;  %v2518_v35 = vsel %vm2517_vm2, %v2512_v31, -inf }
 0x35d   :  { %2519 = vmax.xlane.f32.xlu0 %v2518_v35 }
 0x3ea   :  { %v2520_v36 = vpop.xlane.xlu0 %2519 }
 0x3eb   :  { %v2521_v37 = vsub.f32 %v2512_v31, %v2520_v36 }
 0x3ed   :  { %v2522_v38 = vmul.f32 1.442695, %v2521_v37 }
 0x3ef   :  { %3300 = vpow2.f32 %v2522_v38 }
 0x3f9   :  { %v3301_v39 = vpop.eup %3300 }
 0x3fa   :  { %v2524_v40 = vsel %vm2517_vm2, %v3301_v39, 0.0 }
 0x3fb   :  { %2525 = vadd.xlane.f32.xlu0 %v2524_v40 }
 0x488   :  { %v2526_v42 = vpop.xlane.xlu0 %2525 }
 0x489   :  { %3302 = vrcp.f32 %v2526_v42 }
 0x493   :  { %v3303_v43 = vpop.eup %3302 }
 0x494   :  { %v2528_v44 = vmul.f32 %v3303_v43, %v3301_v39 }
 0x496   :  { %2529 = vst.msk [vmem:[#allocation2] sm:$0x3] %vm2517_vm2, %v2528_v44 }
 0x497   :  { %3315 = shalt.err (!%p3312_p4)
}
 0x498   :  { %s3316_s13 = scalar_lea.hbm %s4099_s7, 32 }
 0x499   :  { %p3317_p5 = scmp.ne.s32.totalorder %s4099_s7, %s3316_s13  ;;  %p3320_p6 = scmp.lt.u32.totalorder %s3316_s13, %s4099_s7 }
 0x49b   :  { %p3322_p7 = pnand %p3320_p6, %p3317_p5 }
 0x49d   :  { %3325 = shalt.err (!%p3322_p7)
}
 0x49e   :  { %2539 = dma.vmem_to_hbm [thread:$0]  %s2537_s5, 32, %s4099_s7, [#allocation3]  }
 0x49f   :  { %3326 = dma.done.wait [#allocation3], 32  }
 0x4a0   :  { %3327 = vsyncadd [#allocation3], 4294967264 }
 0x4a1   :  { %2543 = vsyncpa [#allocation3], 1 }

</bundles_post_ra>
